<compile_context>
chip_gen: v7x
topology: tpu7x:2x2x1
jax: 0.10.0
libtpu: 0.0.40
codegen_flags: <defaults>
</compile_context>

<pallas_src>
import jax
import jax.numpy as jnp
from jax import lax
from jax.experimental import pallas as pl
from jax.experimental.pallas import tpu as pltpu


# ----------------------------------------------------------------------------
# Shared BiLSTM recurrence (both directions interleaved, input projection
# hoisted).  x_flat is time-major flattened: row = t * Bv + b.
# ----------------------------------------------------------------------------
def _lstm_cell(gates, c_prev, H):
    i_g = jax.nn.sigmoid(gates[:, 0 * H:1 * H])
    f_g = jax.nn.sigmoid(gates[:, 1 * H:2 * H])
    g_g = jnp.tanh(gates[:, 2 * H:3 * H])
    o_g = jax.nn.sigmoid(gates[:, 3 * H:4 * H])
    c_new = f_g * c_prev + i_g * g_g
    h_new = o_g * jnp.tanh(c_new)
    return h_new, c_new


def _bilstm_core(x_flat, wih_ref, whhf_ref, whhb_ref, b_ref,
                 xgf_sc, xgb_sc, yf_sc, yb_sc, hf, cf, hb, cb):
    T, Bv, H = yf_sc.shape

    # (1) hoisted input projection: one big matmul for all timesteps and both
    #     directions (wih packs [fwd 4H | bwd 4H]); bf16 operands, f32 acc.
    gin = (jnp.dot(x_flat.astype(jnp.bfloat16), wih_ref[...],
                   preferred_element_type=jnp.float32) + b_ref[...])
    xgf_sc[...] = gin[:, :4 * H].reshape(T, Bv, 4 * H)
    xgb_sc[...] = gin[:, 4 * H:].reshape(T, Bv, 4 * H)

    hf[...] = jnp.zeros_like(hf)
    cf[...] = jnp.zeros_like(cf)
    hb[...] = jnp.zeros_like(hb)
    cb[...] = jnp.zeros_like(cb)

    # invariant weight loads hoisted out of the recurrence
    whh_f = whhf_ref[...]
    whh_b = whhb_ref[...]

    # (2) serial recurrence: only the small h @ Whh matmul per step.  Backward
    #     direction indexes time in reverse inside the loop -- no HBM
    #     reversals, no separate kernel launch.
    @pl.loop(0, T)
    def _(t):
        tb = T - 1 - t

        gates_f = xgf_sc[t] + jnp.dot(hf[...].astype(jnp.bfloat16), whh_f,
                                      preferred_element_type=jnp.float32)
        h_new, c_new = _lstm_cell(gates_f, cf[...], H)
        hf[...] = h_new
        cf[...] = c_new
        yf_sc[t] = h_new

        gates_b = xgb_sc[tb] + jnp.dot(hb[...].astype(jnp.bfloat16), whh_b,
                                       preferred_element_type=jnp.float32)
        hb_new, cb_new = _lstm_cell(gates_b, cb[...], H)
        hb[...] = hb_new
        cb[...] = cb_new
        yb_sc[tb] = hb_new


# ----------------------------------------------------------------------------
# Kernel 1: input-encoding BiLSTM (premise + hypothesis fused on a role grid).
# ----------------------------------------------------------------------------
def _encoder_bilstm_kernel(x_ref, wih_ref, whhf_ref, whhb_ref, b_ref, y_ref,
                           xgf_sc, xgb_sc, yf_sc, yb_sc, hf, cf, hb, cb):
    _bilstm_core(x_ref[0], wih_ref, whhf_ref, whhb_ref, b_ref,
                 xgf_sc, xgb_sc, yf_sc, yb_sc, hf, cf, hb, cb)
    # single lane-dense store of the whole (T, B, 2H) block (2H = 128 lanes)
    y_ref[0] = jnp.concatenate([yf_sc[...], yb_sc[...]], axis=-1)


def encoder_bilstm(x_flat, seq_len, batch, p):
    """x_flat: (2, T*B, E) time-major-flattened premise/hypothesis embeddings."""
    R, _, E = x_flat.shape
    H = p["whh_f"].shape[0]
    T, B = seq_len, batch
    return pl.pallas_call(
        _encoder_bilstm_kernel,
        grid=(R,),
        in_specs=[
            pl.BlockSpec((1, T * B, E), lambda r: (r, 0, 0)),
            pl.BlockSpec(p["wih"].shape, lambda r: (0, 0)),
            pl.BlockSpec(p["whh_f"].shape, lambda r: (0, 0)),
            pl.BlockSpec(p["whh_b"].shape, lambda r: (0, 0)),
            pl.BlockSpec(p["b"].shape, lambda r: (0, 0)),
        ],
        out_specs=pl.BlockSpec((1, T, B, 2 * H), lambda r: (r, 0, 0, 0)),
        out_shape=jax.ShapeDtypeStruct((R, T, B, 2 * H), jnp.float32),
        scratch_shapes=[
            pltpu.VMEM((T, B, 4 * H), jnp.float32),   # fwd input gates
            pltpu.VMEM((T, B, 4 * H), jnp.float32),   # bwd input gates
            pltpu.VMEM((T, B, H), jnp.float32),       # fwd output slab
            pltpu.VMEM((T, B, H), jnp.float32),       # bwd output slab
            pltpu.VMEM((B, H), jnp.float32),          # h_f
            pltpu.VMEM((B, H), jnp.float32),          # c_f
            pltpu.VMEM((B, H), jnp.float32),          # h_b
            pltpu.VMEM((B, H), jnp.float32),          # c_b
        ],
        compiler_params=pltpu.CompilerParams(dimension_semantics=("parallel",)),
    )(x_flat, p["wih"], p["whh_f"], p["whh_b"], p["b"])


# ----------------------------------------------------------------------------
# Kernel 2: soft-alignment attention + ESIM enhancement, fused per batch row.
# The unused p2h attention matrix output is dropped entirely.
# ----------------------------------------------------------------------------
def _attn_enh_kernel(p_ref, h_ref, penh_ref, henh_ref):
    Lp, D = p_ref.shape[2], p_ref.shape[3]
    Lh = h_ref.shape[2]
    p = p_ref[...].reshape(Lp, D)   # premise_encoded
    h = h_ref[...].reshape(Lh, D)   # hypothesis_encoded

    # attention_scores = premise @ hypothesis^T (contract feature dim directly,
    # no explicit transpose op).
    scores = lax.dot_general(
        p.astype(jnp.bfloat16), h.astype(jnp.bfloat16),
        dimension_numbers=(((1,), (1,)), ((), ())),
        preferred_element_type=jnp.float32)                     # (Lp, Lh)

    # p2h: softmax over hypothesis positions.
    m1 = jnp.max(scores, axis=-1, keepdims=True)
    e1 = jnp.exp(scores - m1)
    p2h = e1 * pl.reciprocal(jnp.sum(e1, axis=-1, keepdims=True), approx=True)
    # h2p (kept untransposed): softmax over premise positions.
    m0 = jnp.max(scores, axis=0, keepdims=True)
    e0 = jnp.exp(scores - m0)
    h2p_t = e0 * pl.reciprocal(jnp.sum(e0, axis=0, keepdims=True), approx=True)

    # attended_hypothesis = p2h @ hypothesis              -> (Lp, D)
    att_h = jnp.dot(p2h.astype(jnp.bfloat16), h.astype(jnp.bfloat16),
                    preferred_element_type=jnp.float32)
    # attended_premise = h2p @ premise = h2p_t^T @ premise -> (Lh, D)
    att_p = lax.dot_general(
        h2p_t.astype(jnp.bfloat16), p.astype(jnp.bfloat16),
        dimension_numbers=(((0,), (0,)), ((), ())),
        preferred_element_type=jnp.float32)

    # torch pairing (requires Lp == Lh, as in the reference forward):
    #   premise_enhanced    = [p; attended_premise;    p - ap; p * ap]
    #   hypothesis_enhanced = [h; attended_hypothesis; h - ah; h * ah]
    p_enh = jnp.concatenate([p, att_p, p - att_p, p * att_p], axis=-1)
    h_enh = jnp.concatenate([h, att_h, h - att_h, h * att_h], axis=-1)
    penh_ref[0] = p_enh
    henh_ref[0] = h_enh


def attention_enhance(y_enc_bm):
    """y_enc_bm: (2, B, T, D) with role 0 = premise, 1 = hypothesis."""
    _, B, T, D = y_enc_bm.shape
    return pl.pallas_call(
        _attn_enh_kernel,
        grid=(B,),
        in_specs=[
            pl.BlockSpec((1, 1, T, D), lambda b: (0, b, 0, 0)),   # premise
            pl.BlockSpec((1, 1, T, D), lambda b: (1, b, 0, 0)),   # hypothesis
        ],
        out_specs=[
            pl.BlockSpec((1, T, 4 * D), lambda b: (b, 0, 0)),
            pl.BlockSpec((1, T, 4 * D), lambda b: (b, 0, 0)),
        ],
        out_shape=(
            jax.ShapeDtypeStruct((B, T, 4 * D), jnp.float32),     # premise_enhanced
            jax.ShapeDtypeStruct((B, T, 4 * D), jnp.float32),     # hypothesis_enhanced
        ),
        compiler_params=pltpu.CompilerParams(dimension_semantics=("parallel",)),
    )(y_enc_bm, y_enc_bm)


# ----------------------------------------------------------------------------
# Kernel 3: composition BiLSTM + max/mean pooling + classifier MLP, fused.
# The composed sequence stays in VMEM; only logits are written out.
# ----------------------------------------------------------------------------
def _comp_pool_cls_kernel(x_ref, wih_ref, whhf_ref, whhb_ref, b_ref,
                          w1_ref, b1_ref, w2_ref, b2_ref, w3_ref, b3_ref,
                          out_ref,
                          xgf_sc, xgb_sc, yf_sc, yb_sc, hf, cf, hb, cb):
    T, B2, H = yf_sc.shape
    B = B2 // 2    # rows [0:B] = premise, [B:2B] = hypothesis

    _bilstm_core(x_ref[...], wih_ref, whhf_ref, whhb_ref, b_ref,
                 xgf_sc, xgb_sc, yf_sc, yb_sc, hf, cf, hb, cb)

    # max / mean pooling over the sequence axis (mask=None path) directly from
    # the VMEM slabs.
    yf = yf_sc[...]
    yb = yb_sc[...]
    inv_t = 1.0 / T
    mx = jnp.concatenate([jnp.max(yf, axis=0), jnp.max(yb, axis=0)], axis=-1)
    mn = jnp.concatenate([jnp.sum(yf, axis=0), jnp.sum(yb, axis=0)],
                         axis=-1) * inv_t
    pooled = jnp.concatenate([mx[:B], mn[:B], mx[B:], mn[B:]], axis=-1)  # (B, 8H)

    # classifier MLP: Linear -> ReLU -> Linear -> ReLU -> Linear
    # (dropout = identity in eval mode; kept in f32).
    h1 = jnp.maximum(
        jnp.dot(pooled, w1_ref[...], preferred_element_type=jnp.float32)
        + b1_ref[...], 0.0)
    h2 = jnp.maximum(
        jnp.dot(h1, w2_ref[...], preferred_element_type=jnp.float32)
        + b2_ref[...], 0.0)
    out_ref[...] = (
        jnp.dot(h2, w3_ref[...], preferred_element_type=jnp.float32) + b3_ref[...])


def composition_pool_classify(comp_in, n_batch, seq_len, comp, cls):
    """comp_in: (T*2B, 8H) time-major-flattened enhanced features."""
    H = comp["whh_f"].shape[0]
    num_classes = cls["w3"].shape[1]
    T, B2 = seq_len, 2 * n_batch
    return pl.pallas_call(
        _comp_pool_cls_kernel,
        out_shape=jax.ShapeDtypeStruct((n_batch, num_classes), jnp.float32),
        scratch_shapes=[
            pltpu.VMEM((T, B2, 4 * H), jnp.float32),
            pltpu.VMEM((T, B2, 4 * H), jnp.float32),
            pltpu.VMEM((T, B2, H), jnp.float32),
            pltpu.VMEM((T, B2, H), jnp.float32),
            pltpu.VMEM((B2, H), jnp.float32),
            pltpu.VMEM((B2, H), jnp.float32),
            pltpu.VMEM((B2, H), jnp.float32),
            pltpu.VMEM((B2, H), jnp.float32),
        ],
    )(comp_in, comp["wih"], comp["whh_f"], comp["whh_b"], comp["b"],
      cls["w1"], cls["b1"], cls["w2"], cls["b2"], cls["w3"], cls["b3"])


# ----------------------------------------------------------------------------
# Parameter init (deterministic, synthetic).  LSTM matmul weights in bf16.
# ----------------------------------------------------------------------------
def init_params(key, vocab_size, embedding_dim, hidden_dim, num_classes):
    def u(k, shape, scale=0.1):
        return jax.random.uniform(k, shape, jnp.float32, -scale, scale)

    keys = iter(jax.random.split(key, 32))

    emb = u(next(keys), (vocab_size, embedding_dim))
    emb = emb.at[0].set(0.0)   # padding_idx = 0

    def lstm_params(in_dim, hid):
        # wih packs [forward | backward] input->gate weights along the last
        # axis; gate order (i, f, g, o) as in torch.nn.LSTM.  Matmul operands
        # are held in bf16 (MXU); bias / state / gate math stay f32.
        return {
            "wih": u(next(keys), (in_dim, 8 * hid)).astype(jnp.bfloat16),
            "whh_f": u(next(keys), (hid, 4 * hid)).astype(jnp.bfloat16),
            "whh_b": u(next(keys), (hid, 4 * hid)).astype(jnp.bfloat16),
            "b": u(next(keys), (1, 8 * hid)),
        }

    enc = lstm_params(embedding_dim, hidden_dim)
    comp = lstm_params(hidden_dim * 8, hidden_dim)

    output_dim = hidden_dim * 2
    cls = {
        "w1": u(next(keys), (output_dim * 4, hidden_dim)),
        "b1": u(next(keys), (1, hidden_dim)),
        "w2": u(next(keys), (hidden_dim, hidden_dim // 2)),
        "b2": u(next(keys), (1, hidden_dim // 2)),
        "w3": u(next(keys), (hidden_dim // 2, num_classes)),
        "b3": u(next(keys), (1, num_classes)),
    }
    return {"embedding": emb, "enc": enc, "comp": comp, "cls": cls}


# ----------------------------------------------------------------------------
# ESIM forward.
# ----------------------------------------------------------------------------
@jax.jit
def esim_forward(params, premise_ids, hypothesis_ids):
    emb = params["embedding"]
    B, T = premise_ids.shape
    H = params["enc"]["whh_f"].shape[0]
    D = 2 * H

    # Embedding lookup for both sequences, laid out time-major for the
    # recurrence (row = t*B + b).
    # TODO(synk): the embedding gather stays a JAX-level jnp.take (XLA gather);
    # a Pallas DMA-gather kernel is possible but not worth it at these sizes.
    ids = jnp.stack([premise_ids, hypothesis_ids], axis=0)              # (2, B, T)
    ids_tm = jnp.transpose(ids, (0, 2, 1)).reshape(2, T * B)            # (2, T*B)
    x_flat = jnp.take(emb, ids_tm, axis=0)                              # (2, T*B, E)

    # 1) input-encoding BiLSTM: premise + hypothesis in one kernel launch.
    y_enc_tm = encoder_bilstm(x_flat, T, B, params["enc"])              # (2, T, B, 2H)
    # small layout change (time-major -> batch-major) kept at the JAX level
    # for lowering robustness.
    y_enc_bm = jnp.transpose(y_enc_tm, (0, 2, 1, 3))                    # (2, B, T, 2H)

    # 2) attention + enhancement fused; unused attention matrix dropped.
    p_enh, h_enh = attention_enhance(y_enc_bm)                          # (B, T, 4D) x2

    # 3) composition BiLSTM + pooling + classifier fused.  Enhanced features
    #    are repacked time-major at the JAX level (rows [0:B] premise,
    #    [B:2B] hypothesis per timestep).
    comp_in = jnp.transpose(jnp.concatenate([p_enh, h_enh], axis=0),
                            (1, 0, 2)).reshape(T * 2 * B, 4 * D)        # (T*2B, 8H)
    logits = composition_pool_classify(comp_in, B, T,
                                       params["comp"], params["cls"])
    return logits


if __name__ == "__main__":
    B = 2            # batch
    T = 8            # premise_len == hypothesis_len
    VOCAB = 50
    EMB = 64
    HID = 64         # 2*HID = 128 -> encoder/attention features are lane-dense
    NUM_CLASSES = 3

    key = jax.random.PRNGKey(0)
    k_param, k_p, k_h = jax.random.split(key, 3)

    params = init_params(k_param, VOCAB, EMB, HID, NUM_CLASSES)
    premise_ids = jax.random.randint(k_p, (B, T), 1, VOCAB, dtype=jnp.int32)
    hypothesis_ids = jax.random.randint(k_h, (B, T), 1, VOCAB, dtype=jnp.int32)

    logits = esim_forward(params, premise_ids, hypothesis_ids)
    logits = jax.block_until_ready(logits)

    assert logits.shape == (B, NUM_CLASSES)
    assert bool(jnp.all(jnp.isfinite(logits)))
    print("KERNEL_OK")
</pallas_src>

<mosaic_0001>
module attributes {stable_mosaic.version = 11 : i64} {
  func.func @_encoder_bilstm_kernel(%arg0: i32, %arg1: memref<1x16x64xf32, #tpu.memory_space<vmem>>, %arg2: memref<64x512xbf16, #tpu.memory_space<vmem>>, %arg3: memref<64x256xbf16, #tpu.memory_space<vmem>>, %arg4: memref<64x256xbf16, #tpu.memory_space<vmem>>, %arg5: memref<1x512xf32, #tpu.memory_space<vmem>>, %arg6: memref<1x8x2x128xf32, #tpu.memory_space<vmem>>, %arg7: memref<8x2x256xf32, #tpu.memory_space<vmem>>, %arg8: memref<8x2x256xf32, #tpu.memory_space<vmem>>, %arg9: memref<8x2x64xf32, #tpu.memory_space<vmem>>, %arg10: memref<8x2x64xf32, #tpu.memory_space<vmem>>, %arg11: memref<2x64xf32, #tpu.memory_space<vmem>>, %arg12: memref<2x64xf32, #tpu.memory_space<vmem>>, %arg13: memref<2x64xf32, #tpu.memory_space<vmem>>, %arg14: memref<2x64xf32, #tpu.memory_space<vmem>>) attributes {dimension_semantics = [#tpu.dimension_semantics<parallel>], iteration_bounds = array<i64: 2>, scalar_prefetch = 0 : i64, scratch_operands = 8 : i64, tpu.core_type = #tpu.core_type<tc>, window_params = [{transform_indices = @transform_0, window_bounds = array<i64: 1, 16, 64>}, {pipeline_mode = #tpu.pipeline_mode<synchronous>, transform_indices = @transform_1, window_bounds = array<i64: 64, 512>}, {pipeline_mode = #tpu.pipeline_mode<synchronous>, transform_indices = @transform_2, window_bounds = array<i64: 64, 256>}, {pipeline_mode = #tpu.pipeline_mode<synchronous>, transform_indices = @transform_3, window_bounds = array<i64: 64, 256>}, {pipeline_mode = #tpu.pipeline_mode<synchronous>, transform_indices = @transform_4, window_bounds = array<i64: 1, 512>}, {transform_indices = @transform_5, window_bounds = array<i64: 1, 8, 2, 128>}]} {
    %c0 = arith.constant 0 : index
    %c0_0 = arith.constant 0 : index
    %c0_1 = arith.constant 0 : index
    %0 = vector.load %arg1[%c0, %c0_0, %c0_1] : memref<1x16x64xf32, #tpu.memory_space<vmem>>, vector<1x16x64xf32>
    %1 = vector.shape_cast %0 : vector<1x16x64xf32> to vector<16x64xf32>
    %2 = arith.truncf %1 : vector<16x64xf32> to vector<16x64xbf16>
    %c0_2 = arith.constant 0 : index
    %c0_3 = arith.constant 0 : index
    %3 = vector.load %arg2[%c0_2, %c0_3] : memref<64x512xbf16, #tpu.memory_space<vmem>>, vector<64x512xbf16>
    %cst = arith.constant dense<0.000000e+00> : vector<16x512xf32>
    %4 = tpu.matmul %2, %3, %cst {dimension_numbers = #tpu.dot_dimension_numbers<[1], [0], [0], [1], [0, 0, 1, 1], [], []>} : vector<16x64xbf16>, vector<64x512xbf16>, vector<16x512xf32> -> vector<16x512xf32>
    %c0_4 = arith.constant 0 : index
    %c0_5 = arith.constant 0 : index
    %5 = vector.load %arg5[%c0_4, %c0_5] : memref<1x512xf32, #tpu.memory_space<vmem>>, vector<1x512xf32>
    %6 = vector.broadcast %5 : vector<1x512xf32> to vector<16x512xf32>
    %7 = arith.addf %4, %6 : vector<16x512xf32>
    %8 = vector.extract_strided_slice %7 {offsets = [0, 0], sizes = [16, 256], strides = [1, 1]} : vector<16x512xf32> to vector<16x256xf32>
    %9 = vector.shape_cast %8 : vector<16x256xf32> to vector<8x2x256xf32>
    %c0_6 = arith.constant 0 : index
    %c0_7 = arith.constant 0 : index
    %c0_8 = arith.constant 0 : index
    %10 = vector.load %arg7[%c0_6, %c0_7, %c0_8] : memref<8x2x256xf32, #tpu.memory_space<vmem>>, vector<8x2x256xf32>
    tpu.vector_store %arg7[%c0_6, %c0_7, %c0_8], %9 {strides = array<i32>} : memref<8x2x256xf32, #tpu.memory_space<vmem>>, vector<8x2x256xf32>,
    %11 = vector.extract_strided_slice %7 {offsets = [0, 256], sizes = [16, 256], strides = [1, 1]} : vector<16x512xf32> to vector<16x256xf32>
    %12 = vector.shape_cast %11 : vector<16x256xf32> to vector<8x2x256xf32>
    %c0_9 = arith.constant 0 : index
    %c0_10 = arith.constant 0 : index
    %c0_11 = arith.constant 0 : index
    %13 = vector.load %arg8[%c0_9, %c0_10, %c0_11] : memref<8x2x256xf32, #tpu.memory_space<vmem>>, vector<8x2x256xf32>
    tpu.vector_store %arg8[%c0_9, %c0_10, %c0_11], %12 {strides = array<i32>} : memref<8x2x256xf32, #tpu.memory_space<vmem>>, vector<8x2x256xf32>,
    %cst_12 = arith.constant 0.000000e+00 : f32
    %14 = vector.broadcast %cst_12 : f32 to vector<2x64xf32>
    %c0_13 = arith.constant 0 : index
    %c0_14 = arith.constant 0 : index
    %15 = vector.load %arg11[%c0_13, %c0_14] : memref<2x64xf32, #tpu.memory_space<vmem>>, vector<2x64xf32>
    tpu.vector_store %arg11[%c0_13, %c0_14], %14 {strides = array<i32>} : memref<2x64xf32, #tpu.memory_space<vmem>>, vector<2x64xf32>,
    %cst_15 = arith.constant 0.000000e+00 : f32
    %16 = vector.broadcast %cst_15 : f32 to vector<2x64xf32>
    %c0_16 = arith.constant 0 : index
    %c0_17 = arith.constant 0 : index
    %17 = vector.load %arg12[%c0_16, %c0_17] : memref<2x64xf32, #tpu.memory_space<vmem>>, vector<2x64xf32>
    tpu.vector_store %arg12[%c0_16, %c0_17], %16 {strides = array<i32>} : memref<2x64xf32, #tpu.memory_space<vmem>>, vector<2x64xf32>,
    %cst_18 = arith.constant 0.000000e+00 : f32
    %18 = vector.broadcast %cst_18 : f32 to vector<2x64xf32>
    %c0_19 = arith.constant 0 : index
    %c0_20 = arith.constant 0 : index
    %19 = vector.load %arg13[%c0_19, %c0_20] : memref<2x64xf32, #tpu.memory_space<vmem>>, vector<2x64xf32>
    tpu.vector_store %arg13[%c0_19, %c0_20], %18 {strides = array<i32>} : memref<2x64xf32, #tpu.memory_space<vmem>>, vector<2x64xf32>,
    %cst_21 = arith.constant 0.000000e+00 : f32
    %20 = vector.broadcast %cst_21 : f32 to vector<2x64xf32>
    %c0_22 = arith.constant 0 : index
    %c0_23 = arith.constant 0 : index
    %21 = vector.load %arg14[%c0_22, %c0_23] : memref<2x64xf32, #tpu.memory_space<vmem>>, vector<2x64xf32>
    tpu.vector_store %arg14[%c0_22, %c0_23], %20 {strides = array<i32>} : memref<2x64xf32, #tpu.memory_space<vmem>>, vector<2x64xf32>,
    %c0_24 = arith.constant 0 : index
    %c0_25 = arith.constant 0 : index
    %22 = vector.load %arg3[%c0_24, %c0_25] : memref<64x256xbf16, #tpu.memory_space<vmem>>, vector<64x256xbf16>
    %c0_26 = arith.constant 0 : index
    %c0_27 = arith.constant 0 : index
    %23 = vector.load %arg4[%c0_26, %c0_27] : memref<64x256xbf16, #tpu.memory_space<vmem>>, vector<64x256xbf16>
    %c0_i32 = arith.constant 0 : i32
    %c8_i32 = arith.constant 8 : i32
    %24 = arith.addi %c0_i32, %c8_i32 : i32
    %c1_i32 = arith.constant 1 : i32
    scf.for %arg15 = %c0_i32 to %24 step %c1_i32  : i32 {
      %c1_i32_39 = arith.constant 1 : i32
      %31 = arith.muli %arg15, %c1_i32_39 : i32
      %c0_i32_40 = arith.constant 0 : i32
      %32 = arith.addi %c0_i32_40, %31 : i32
      %c7_i32 = arith.constant 7 : i32
      %33 = arith.subi %c7_i32, %32 : i32
      %34 = arith.index_cast %32 : i32 to index
      %c0_41 = arith.constant 0 : index
      %c0_42 = arith.constant 0 : index
      %35 = vector.load %arg7[%34, %c0_41, %c0_42] : memref<8x2x256xf32, #tpu.memory_space<vmem>>, vector<1x2x256xf32>
      %36 = vector.shape_cast %35 : vector<1x2x256xf32> to vector<2x256xf32>
      %c0_43 = arith.constant 0 : index
      %c0_44 = arith.constant 0 : index
      %37 = vector.load %arg11[%c0_43, %c0_44] : memref<2x64xf32, #tpu.memory_space<vmem>>, vector<2x64xf32>
      %38 = arith.truncf %37 : vector<2x64xf32> to vector<2x64xbf16>
      %cst_45 = arith.constant dense<0.000000e+00> : vector<2x256xf32>
      %39 = tpu.matmul %38, %22, %cst_45 {dimension_numbers = #tpu.dot_dimension_numbers<[1], [0], [0], [1], [0, 0, 1, 1], [], []>} : vector<2x64xbf16>, vector<64x256xbf16>, vector<2x256xf32> -> vector<2x256xf32>
      %40 = arith.addf %36, %39 : vector<2x256xf32>
      %c0_46 = arith.constant 0 : index
      %c0_47 = arith.constant 0 : index
      %41 = vector.load %arg12[%c0_46, %c0_47] : memref<2x64xf32, #tpu.memory_space<vmem>>, vector<2x64xf32>
      %42 = vector.extract_strided_slice %40 {offsets = [0, 0], sizes = [2, 64], strides = [1, 1]} : vector<2x256xf32> to vector<2x64xf32>
      %43 = arith.negf %42 : vector<2x64xf32>
      %44 = math.exp %43 : vector<2x64xf32>
      %cst_48 = arith.constant 1.000000e+00 : f32
      %45 = vector.broadcast %cst_48 : f32 to vector<2x64xf32>
      %46 = arith.addf %45, %44 : vector<2x64xf32>
      %47 = arith.divf %45, %46 : vector<2x64xf32>
      %48 = vector.extract_strided_slice %40 {offsets = [0, 64], sizes = [2, 64], strides = [1, 1]} : vector<2x256xf32> to vector<2x64xf32>
      %49 = arith.negf %48 : vector<2x64xf32>
      %50 = math.exp %49 : vector<2x64xf32>
      %cst_49 = arith.constant 1.000000e+00 : f32
      %51 = vector.broadcast %cst_49 : f32 to vector<2x64xf32>
      %52 = arith.addf %51, %50 : vector<2x64xf32>
      %53 = arith.divf %51, %52 : vector<2x64xf32>
      %54 = vector.extract_strided_slice %40 {offsets = [0, 128], sizes = [2, 64], strides = [1, 1]} : vector<2x256xf32> to vector<2x64xf32>
      %55 = math.tanh %54 : vector<2x64xf32>
      %56 = vector.extract_strided_slice %40 {offsets = [0, 192], sizes = [2, 64], strides = [1, 1]} : vector<2x256xf32> to vector<2x64xf32>
      %57 = arith.negf %56 : vector<2x64xf32>
      %58 = math.exp %57 : vector<2x64xf32>
      %cst_50 = arith.constant 1.000000e+00 : f32
      %59 = vector.broadcast %cst_50 : f32 to vector<2x64xf32>
      %60 = arith.addf %59, %58 : vector<2x64xf32>
      %61 = arith.divf %59, %60 : vector<2x64xf32>
      %62 = arith.mulf %53, %41 : vector<2x64xf32>
      %63 = arith.mulf %47, %55 : vector<2x64xf32>
      %64 = arith.addf %62, %63 : vector<2x64xf32>
      %65 = math.tanh %64 : vector<2x64xf32>
      %66 = arith.mulf %61, %65 : vector<2x64xf32>
      %c0_51 = arith.constant 0 : index
      %c0_52 = arith.constant 0 : index
      %67 = vector.load %arg11[%c0_51, %c0_52] : memref<2x64xf32, #tpu.memory_space<vmem>>, vector<2x64xf32>
      tpu.vector_store %arg11[%c0_51, %c0_52], %66 {strides = array<i32>} : memref<2x64xf32, #tpu.memory_space<vmem>>, vector<2x64xf32>,
      %c0_53 = arith.constant 0 : index
      %c0_54 = arith.constant 0 : index
      %68 = vector.load %arg12[%c0_53, %c0_54] : memref<2x64xf32, #tpu.memory_space<vmem>>, vector<2x64xf32>
      tpu.vector_store %arg12[%c0_53, %c0_54], %64 {strides = array<i32>} : memref<2x64xf32, #tpu.memory_space<vmem>>, vector<2x64xf32>,
      %69 = arith.index_cast %32 : i32 to index
      %c0_55 = arith.constant 0 : index
      %c0_56 = arith.constant 0 : index
      %70 = vector.load %arg9[%69, %c0_55, %c0_56] : memref<8x2x64xf32, #tpu.memory_space<vmem>>, vector<1x2x64xf32>
      %71 = vector.shape_cast %70 : vector<1x2x64xf32> to vector<2x64xf32>
      %72 = vector.shape_cast %66 : vector<2x64xf32> to vector<1x2x64xf32>
      tpu.vector_store %arg9[%69, %c0_55, %c0_56], %72 {strides = array<i32>} : memref<8x2x64xf32, #tpu.memory_space<vmem>>, vector<1x2x64xf32>,
      %73 = arith.index_cast %33 : i32 to index
      %c0_57 = arith.constant 0 : index
      %c0_58 = arith.constant 0 : index
      %74 = vector.load %arg8[%73, %c0_57, %c0_58] : memref<8x2x256xf32, #tpu.memory_space<vmem>>, vector<1x2x256xf32>
      %75 = vector.shape_cast %74 : vector<1x2x256xf32> to vector<2x256xf32>
      %c0_59 = arith.constant 0 : index
      %c0_60 = arith.constant 0 : index
      %76 = vector.load %arg13[%c0_59, %c0_60] : memref<2x64xf32, #tpu.memory_space<vmem>>, vector<2x64xf32>
      %77 = arith.truncf %76 : vector<2x64xf32> to vector<2x64xbf16>
      %cst_61 = arith.constant dense<0.000000e+00> : vector<2x256xf32>
      %78 = tpu.matmul %77, %23, %cst_61 {dimension_numbers = #tpu.dot_dimension_numbers<[1], [0], [0], [1], [0, 0, 1, 1], [], []>} : vector<2x64xbf16>, vector<64x256xbf16>, vector<2x256xf32> -> vector<2x256xf32>
      %79 = arith.addf %75, %78 : vector<2x256xf32>
      %c0_62 = arith.constant 0 : index
      %c0_63 = arith.constant 0 : index
      %80 = vector.load %arg14[%c0_62, %c0_63] : memref<2x64xf32, #tpu.memory_space<vmem>>, vector<2x64xf32>
      %81 = vector.extract_strided_slice %79 {offsets = [0, 0], sizes = [2, 64], strides = [1, 1]} : vector<2x256xf32> to vector<2x64xf32>
      %82 = arith.negf %81 : vector<2x64xf32>
      %83 = math.exp %82 : vector<2x64xf32>
      %cst_64 = arith.constant 1.000000e+00 : f32
      %84 = vector.broadcast %cst_64 : f32 to vector<2x64xf32>
      %85 = arith.addf %84, %83 : vector<2x64xf32>
      %86 = arith.divf %84, %85 : vector<2x64xf32>
      %87 = vector.extract_strided_slice %79 {offsets = [0, 64], sizes = [2, 64], strides = [1, 1]} : vector<2x256xf32> to vector<2x64xf32>
      %88 = arith.negf %87 : vector<2x64xf32>
      %89 = math.exp %88 : vector<2x64xf32>
      %cst_65 = arith.constant 1.000000e+00 : f32
      %90 = vector.broadcast %cst_65 : f32 to vector<2x64xf32>
      %91 = arith.addf %90, %89 : vector<2x64xf32>
      %92 = arith.divf %90, %91 : vector<2x64xf32>
      %93 = vector.extract_strided_slice %79 {offsets = [0, 128], sizes = [2, 64], strides = [1, 1]} : vector<2x256xf32> to vector<2x64xf32>
      %94 = math.tanh %93 : vector<2x64xf32>
      %95 = vector.extract_strided_slice %79 {offsets = [0, 192], sizes = [2, 64], strides = [1, 1]} : vector<2x256xf32> to vector<2x64xf32>
      %96 = arith.negf %95 : vector<2x64xf32>
      %97 = math.exp %96 : vector<2x64xf32>
      %cst_66 = arith.constant 1.000000e+00 : f32
      %98 = vector.broadcast %cst_66 : f32 to vector<2x64xf32>
      %99 = arith.addf %98, %97 : vector<2x64xf32>
      %100 = arith.divf %98, %99 : vector<2x64xf32>
      %101 = arith.mulf %92, %80 : vector<2x64xf32>
      %102 = arith.mulf %86, %94 : vector<2x64xf32>
      %103 = arith.addf %101, %102 : vector<2x64xf32>
      %104 = math.tanh %103 : vector<2x64xf32>
      %105 = arith.mulf %100, %104 : vector<2x64xf32>
      %c0_67 = arith.constant 0 : index
      %c0_68 = arith.constant 0 : index
      %106 = vector.load %arg13[%c0_67, %c0_68] : memref<2x64xf32, #tpu.memory_space<vmem>>, vector<2x64xf32>
      tpu.vector_store %arg13[%c0_67, %c0_68], %105 {strides = array<i32>} : memref<2x64xf32, #tpu.memory_space<vmem>>, vector<2x64xf32>,
      %c0_69 = arith.constant 0 : index
      %c0_70 = arith.constant 0 : index
      %107 = vector.load %arg14[%c0_69, %c0_70] : memref<2x64xf32, #tpu.memory_space<vmem>>, vector<2x64xf32>
      tpu.vector_store %arg14[%c0_69, %c0_70], %103 {strides = array<i32>} : memref<2x64xf32, #tpu.memory_space<vmem>>, vector<2x64xf32>,
      %108 = arith.index_cast %33 : i32 to index
      %c0_71 = arith.constant 0 : index
      %c0_72 = arith.constant 0 : index
      %109 = vector.load %arg10[%108, %c0_71, %c0_72] : memref<8x2x64xf32, #tpu.memory_space<vmem>>, vector<1x2x64xf32>
      %110 = vector.shape_cast %109 : vector<1x2x64xf32> to vector<2x64xf32>
      %111 = vector.shape_cast %105 : vector<2x64xf32> to vector<1x2x64xf32>
      tpu.vector_store %arg10[%108, %c0_71, %c0_72], %111 {strides = array<i32>} : memref<8x2x64xf32, #tpu.memory_space<vmem>>, vector<1x2x64xf32>,
    }
    %c8_i32_28 = arith.constant 8 : i32
    %c0_29 = arith.constant 0 : index
    %c0_30 = arith.constant 0 : index
    %c0_31 = arith.constant 0 : index
    %25 = vector.load %arg9[%c0_29, %c0_30, %c0_31] : memref<8x2x64xf32, #tpu.memory_space<vmem>>, vector<8x2x64xf32>
    %c0_32 = arith.constant 0 : index
    %c0_33 = arith.constant 0 : index
    %c0_34 = arith.constant 0 : index
    %26 = vector.load %arg10[%c0_32, %c0_33, %c0_34] : memref<8x2x64xf32, #tpu.memory_space<vmem>>, vector<8x2x64xf32>
    %27 = tpu.concatenate %25, %26 in 2 : vector<8x2x64xf32>, vector<8x2x64xf32> -> vector<8x2x128xf32>
    %c0_35 = arith.constant 0 : index
    %c0_36 = arith.constant 0 : index
    %c0_37 = arith.constant 0 : index
    %c0_38 = arith.constant 0 : index
    %28 = vector.load %arg6[%c0_35, %c0_36, %c0_37, %c0_38] : memref<1x8x2x128xf32, #tpu.memory_space<vmem>>, vector<1x8x2x128xf32>
    %29 = vector.shape_cast %28 : vector<1x8x2x128xf32> to vector<8x2x128xf32>
    %30 = vector.shape_cast %27 : vector<8x2x128xf32> to vector<1x8x2x128xf32>
    tpu.vector_store %arg6[%c0_35, %c0_36, %c0_37, %c0_38], %30 {strides = array<i32>} : memref<1x8x2x128xf32, #tpu.memory_space<vmem>>, vector<1x8x2x128xf32>,
    return
  }
  func.func @transform_0(%arg0: i32) -> (i32, i32, i32) {
    %c0_i32 = arith.constant 0 : i32
    %c0_i32_0 = arith.constant 0 : i32
    %c0_i32_1 = arith.constant 0 : i32
    return %arg0, %c0_i32, %c0_i32_0 : i32, i32, i32
  }
  func.func @transform_1(%arg0: i32) -> (i32, i32) {
    %c0_i32 = arith.constant 0 : i32
    %c0_i32_0 = arith.constant 0 : i32
    %c0_i32_1 = arith.constant 0 : i32
    return %c0_i32, %c0_i32_0 : i32, i32
  }
  func.func @transform_2(%arg0: i32) -> (i32, i32) {
    %c0_i32 = arith.constant 0 : i32
    %c0_i32_0 = arith.constant 0 : i32
    %c0_i32_1 = arith.constant 0 : i32
    return %c0_i32, %c0_i32_0 : i32, i32
  }
  func.func @transform_3(%arg0: i32) -> (i32, i32) {
    %c0_i32 = arith.constant 0 : i32
    %c0_i32_0 = arith.constant 0 : i32
    %c0_i32_1 = arith.constant 0 : i32
    return %c0_i32, %c0_i32_0 : i32, i32
  }
  func.func @transform_4(%arg0: i32) -> (i32, i32) {
    %c0_i32 = arith.constant 0 : i32
    %c0_i32_0 = arith.constant 0 : i32
    %c0_i32_1 = arith.constant 0 : i32
    return %c0_i32, %c0_i32_0 : i32, i32
  }
  func.func @transform_5(%arg0: i32) -> (i32, i32, i32, i32) {
    %c0_i32 = arith.constant 0 : i32
    %c0_i32_0 = arith.constant 0 : i32
    %c0_i32_1 = arith.constant 0 : i32
    %c0_i32_2 = arith.constant 0 : i32
    return %arg0, %c0_i32, %c0_i32_0, %c0_i32_1 : i32, i32, i32, i32
  }
}

module attributes {stable_mosaic.version = 11 : i64} {
  func.func @_attn_enh_kernel(%arg0: i32, %arg1: memref<1x1x8x128xf32, #tpu.memory_space<vmem>>, %arg2: memref<1x1x8x128xf32, #tpu.memory_space<vmem>>, %arg3: memref<1x8x512xf32, #tpu.memory_space<vmem>>, %arg4: memref<1x8x512xf32, #tpu.memory_space<vmem>>) attributes {dimension_semantics = [#tpu.dimension_semantics<parallel>], iteration_bounds = array<i64: 2>, scalar_prefetch = 0 : i64, scratch_operands = 0 : i64, tpu.core_type = #tpu.core_type<tc>, window_params = [{transform_indices = @transform_0, window_bounds = array<i64: 1, 1, 8, 128>}, {transform_indices = @transform_1, window_bounds = array<i64: 1, 1, 8, 128>}, {transform_indices = @transform_2, window_bounds = array<i64: 1, 8, 512>}, {transform_indices = @transform_3, window_bounds = array<i64: 1, 8, 512>}]} {
    %c0 = arith.constant 0 : index
    %c0_0 = arith.constant 0 : index
    %c0_1 = arith.constant 0 : index
    %c0_2 = arith.constant 0 : index
    %0 = vector.load %arg1[%c0, %c0_0, %c0_1, %c0_2] : memref<1x1x8x128xf32, #tpu.memory_space<vmem>>, vector<1x1x8x128xf32>
    %1 = vector.shape_cast %0 : vector<1x1x8x128xf32> to vector<8x128xf32>
    %c0_3 = arith.constant 0 : index
    %c0_4 = arith.constant 0 : index
    %c0_5 = arith.constant 0 : index
    %c0_6 = arith.constant 0 : index
    %2 = vector.load %arg2[%c0_3, %c0_4, %c0_5, %c0_6] : memref<1x1x8x128xf32, #tpu.memory_space<vmem>>, vector<1x1x8x128xf32>
    %3 = vector.shape_cast %2 : vector<1x1x8x128xf32> to vector<8x128xf32>
    %4 = arith.truncf %1 : vector<8x128xf32> to vector<8x128xbf16>
    %5 = arith.truncf %3 : vector<8x128xf32> to vector<8x128xbf16>
    %cst = arith.constant dense<0.000000e+00> : vector<8x8xf32>
    %6 = tpu.matmul %4, %5, %cst {dimension_numbers = #tpu.dot_dimension_numbers<[1], [1], [0], [0], [0, 0, 1, 0], [], []>} : vector<8x128xbf16>, vector<8x128xbf16>, vector<8x8xf32> -> vector<8x8xf32>
    %cst_7 = arith.constant dense<0xFF800000> : vector<8xf32>
    %7 = vector.multi_reduction <maximumf>, %6, %cst_7 [1] : vector<8x8xf32> to vector<8xf32>
    %8 = vector.shape_cast %7 : vector<8xf32> to vector<8x1xf32>
    %9 = vector.broadcast %8 : vector<8x1xf32> to vector<8x8xf32>
    %10 = arith.subf %6, %9 : vector<8x8xf32>
    %11 = math.exp %10 : vector<8x8xf32>
    %cst_8 = arith.constant dense<0.000000e+00> : vector<8xf32>
    %12 = vector.multi_reduction <add>, %11, %cst_8 [1] : vector<8x8xf32> to vector<8xf32>
    %13 = vector.shape_cast %12 : vector<8xf32> to vector<8x1xf32>
    %14 = tpu.reciprocal %13 {approx = true} : vector<8x1xf32> -> vector<8x1xf32>
    %15 = vector.broadcast %14 : vector<8x1xf32> to vector<8x8xf32>
    %16 = arith.mulf %11, %15 : vector<8x8xf32>
    %cst_9 = arith.constant dense<0xFF800000> : vector<8xf32>
    %17 = vector.multi_reduction <maximumf>, %6, %cst_9 [0] : vector<8x8xf32> to vector<8xf32>
    %18 = vector.shape_cast %17 : vector<8xf32> to vector<1x8xf32>
    %19 = vector.broadcast %18 : vector<1x8xf32> to vector<8x8xf32>
    %20 = arith.subf %6, %19 : vector<8x8xf32>
    %21 = math.exp %20 : vector<8x8xf32>
    %cst_10 = arith.constant dense<0.000000e+00> : vector<8xf32>
    %22 = vector.multi_reduction <add>, %21, %cst_10 [0] : vector<8x8xf32> to vector<8xf32>
    %23 = vector.shape_cast %22 : vector<8xf32> to vector<1x8xf32>
    %24 = tpu.reciprocal %23 {approx = true} : vector<1x8xf32> -> vector<1x8xf32>
    %25 = vector.broadcast %24 : vector<1x8xf32> to vector<8x8xf32>
    %26 = arith.mulf %21, %25 : vector<8x8xf32>
    %27 = arith.truncf %16 : vector<8x8xf32> to vector<8x8xbf16>
    %28 = arith.truncf %3 : vector<8x128xf32> to vector<8x128xbf16>
    %cst_11 = arith.constant dense<0.000000e+00> : vector<8x128xf32>
    %29 = tpu.matmul %27, %28, %cst_11 {dimension_numbers = #tpu.dot_dimension_numbers<[1], [0], [0], [1], [0, 0, 1, 1], [], []>} : vector<8x8xbf16>, vector<8x128xbf16>, vector<8x128xf32> -> vector<8x128xf32>
    %30 = arith.truncf %26 : vector<8x8xf32> to vector<8x8xbf16>
    %31 = arith.truncf %1 : vector<8x128xf32> to vector<8x128xbf16>
    %cst_12 = arith.constant dense<0.000000e+00> : vector<8x128xf32>
    %32 = tpu.matmul %30, %31, %cst_12 {dimension_numbers = #tpu.dot_dimension_numbers<[0], [0], [1], [1], [0, 1, 1, 1], [], []>} : vector<8x8xbf16>, vector<8x128xbf16>, vector<8x128xf32> -> vector<8x128xf32>
    %33 = arith.subf %1, %32 : vector<8x128xf32>
    %34 = arith.mulf %1, %32 : vector<8x128xf32>
    %35 = tpu.concatenate %1, %32, %33, %34 in 1 : vector<8x128xf32>, vector<8x128xf32>, vector<8x128xf32>, vector<8x128xf32> -> vector<8x512xf32>
    %36 = arith.subf %3, %29 : vector<8x128xf32>
    %37 = arith.mulf %3, %29 : vector<8x128xf32>
    %38 = tpu.concatenate %3, %29, %36, %37 in 1 : vector<8x128xf32>, vector<8x128xf32>, vector<8x128xf32>, vector<8x128xf32> -> vector<8x512xf32>
    %c0_13 = arith.constant 0 : index
    %c0_14 = arith.constant 0 : index
    %c0_15 = arith.constant 0 : index
    %39 = vector.load %arg3[%c0_13, %c0_14, %c0_15] : memref<1x8x512xf32, #tpu.memory_space<vmem>>, vector<1x8x512xf32>
    %40 = vector.shape_cast %39 : vector<1x8x512xf32> to vector<8x512xf32>
    %41 = vector.shape_cast %35 : vector<8x512xf32> to vector<1x8x512xf32>
    tpu.vector_store %arg3[%c0_13, %c0_14, %c0_15], %41 {strides = array<i32>} : memref<1x8x512xf32, #tpu.memory_space<vmem>>, vector<1x8x512xf32>,
    %c0_16 = arith.constant 0 : index
    %c0_17 = arith.constant 0 : index
    %c0_18 = arith.constant 0 : index
    %42 = vector.load %arg4[%c0_16, %c0_17, %c0_18] : memref<1x8x512xf32, #tpu.memory_space<vmem>>, vector<1x8x512xf32>
    %43 = vector.shape_cast %42 : vector<1x8x512xf32> to vector<8x512xf32>
    %44 = vector.shape_cast %38 : vector<8x512xf32> to vector<1x8x512xf32>
    tpu.vector_store %arg4[%c0_16, %c0_17, %c0_18], %44 {strides = array<i32>} : memref<1x8x512xf32, #tpu.memory_space<vmem>>, vector<1x8x512xf32>,
    return
  }
  func.func @transform_0(%arg0: i32) -> (i32, i32, i32, i32) {
    %c0_i32 = arith.constant 0 : i32
    %c0_i32_0 = arith.constant 0 : i32
    %c0_i32_1 = arith.constant 0 : i32
    %c0_i32_2 = arith.constant 0 : i32
    return %c0_i32, %arg0, %c0_i32_0, %c0_i32_1 : i32, i32, i32, i32
  }
  func.func @transform_1(%arg0: i32) -> (i32, i32, i32, i32) {
    %c1_i32 = arith.constant 1 : i32
    %c0_i32 = arith.constant 0 : i32
    %c0_i32_0 = arith.constant 0 : i32
    %c0_i32_1 = arith.constant 0 : i32
    return %c1_i32, %arg0, %c0_i32, %c0_i32_0 : i32, i32, i32, i32
  }
  func.func @transform_2(%arg0: i32) -> (i32, i32, i32) {
    %c0_i32 = arith.constant 0 : i32
    %c0_i32_0 = arith.constant 0 : i32
    %c0_i32_1 = arith.constant 0 : i32
    return %arg0, %c0_i32, %c0_i32_0 : i32, i32, i32
  }
  func.func @transform_3(%arg0: i32) -> (i32, i32, i32) {
    %c0_i32 = arith.constant 0 : i32
    %c0_i32_0 = arith.constant 0 : i32
    %c0_i32_1 = arith.constant 0 : i32
    return %arg0, %c0_i32, %c0_i32_0 : i32, i32, i32
  }
}

module attributes {stable_mosaic.version = 11 : i64} {
  func.func @_comp_pool_cls_kernel(%arg0: memref<32x512xf32, #tpu.memory_space<vmem>>, %arg1: memref<512x512xbf16, #tpu.memory_space<vmem>>, %arg2: memref<64x256xbf16, #tpu.memory_space<vmem>>, %arg3: memref<64x256xbf16, #tpu.memory_space<vmem>>, %arg4: memref<1x512xf32, #tpu.memory_space<vmem>>, %arg5: memref<512x64xf32, #tpu.memory_space<vmem>>, %arg6: memref<1x64xf32, #tpu.memory_space<vmem>>, %arg7: memref<64x32xf32, #tpu.memory_space<vmem>>, %arg8: memref<1x32xf32, #tpu.memory_space<vmem>>, %arg9: memref<32x3xf32, #tpu.memory_space<vmem>>, %arg10: memref<1x3xf32, #tpu.memory_space<vmem>>, %arg11: memref<2x3xf32, #tpu.memory_space<vmem>>, %arg12: memref<8x4x256xf32, #tpu.memory_space<vmem>>, %arg13: memref<8x4x256xf32, #tpu.memory_space<vmem>>, %arg14: memref<8x4x64xf32, #tpu.memory_space<vmem>>, %arg15: memref<8x4x64xf32, #tpu.memory_space<vmem>>, %arg16: memref<4x64xf32, #tpu.memory_space<vmem>>, %arg17: memref<4x64xf32, #tpu.memory_space<vmem>>, %arg18: memref<4x64xf32, #tpu.memory_space<vmem>>, %arg19: memref<4x64xf32, #tpu.memory_space<vmem>>) attributes {dimension_semantics = [], scalar_prefetch = 0 : i64, scratch_operands = 8 : i64, tpu.core_type = #tpu.core_type<tc>} {
    %c0 = arith.constant 0 : index
    %c0_0 = arith.constant 0 : index
    %0 = vector.load %arg0[%c0, %c0_0] : memref<32x512xf32, #tpu.memory_space<vmem>>, vector<32x512xf32>
    %1 = arith.truncf %0 : vector<32x512xf32> to vector<32x512xbf16>
    %c0_1 = arith.constant 0 : index
    %c0_2 = arith.constant 0 : index
    %2 = vector.load %arg1[%c0_1, %c0_2] : memref<512x512xbf16, #tpu.memory_space<vmem>>, vector<512x512xbf16>
    %cst = arith.constant dense<0.000000e+00> : vector<32x512xf32>
    %3 = tpu.matmul %1, %2, %cst {dimension_numbers = #tpu.dot_dimension_numbers<[1], [0], [0], [1], [0, 0, 1, 1], [], []>} : vector<32x512xbf16>, vector<512x512xbf16>, vector<32x512xf32> -> vector<32x512xf32>
    %c0_3 = arith.constant 0 : index
    %c0_4 = arith.constant 0 : index
    %4 = vector.load %arg4[%c0_3, %c0_4] : memref<1x512xf32, #tpu.memory_space<vmem>>, vector<1x512xf32>
    %5 = vector.broadcast %4 : vector<1x512xf32> to vector<32x512xf32>
    %6 = arith.addf %3, %5 : vector<32x512xf32>
    %7 = vector.extract_strided_slice %6 {offsets = [0, 0], sizes = [32, 256], strides = [1, 1]} : vector<32x512xf32> to vector<32x256xf32>
    %8 = vector.shape_cast %7 : vector<32x256xf32> to vector<8x4x256xf32>
    %c0_5 = arith.constant 0 : index
    %c0_6 = arith.constant 0 : index
    %c0_7 = arith.constant 0 : index
    %9 = vector.load %arg12[%c0_5, %c0_6, %c0_7] : memref<8x4x256xf32, #tpu.memory_space<vmem>>, vector<8x4x256xf32>
    tpu.vector_store %arg12[%c0_5, %c0_6, %c0_7], %8 {strides = array<i32>} : memref<8x4x256xf32, #tpu.memory_space<vmem>>, vector<8x4x256xf32>,
    %10 = vector.extract_strided_slice %6 {offsets = [0, 256], sizes = [32, 256], strides = [1, 1]} : vector<32x512xf32> to vector<32x256xf32>
    %11 = vector.shape_cast %10 : vector<32x256xf32> to vector<8x4x256xf32>
    %c0_8 = arith.constant 0 : index
    %c0_9 = arith.constant 0 : index
    %c0_10 = arith.constant 0 : index
    %12 = vector.load %arg13[%c0_8, %c0_9, %c0_10] : memref<8x4x256xf32, #tpu.memory_space<vmem>>, vector<8x4x256xf32>
    tpu.vector_store %arg13[%c0_8, %c0_9, %c0_10], %11 {strides = array<i32>} : memref<8x4x256xf32, #tpu.memory_space<vmem>>, vector<8x4x256xf32>,
    %cst_11 = arith.constant 0.000000e+00 : f32
    %13 = vector.broadcast %cst_11 : f32 to vector<4x64xf32>
    %c0_12 = arith.constant 0 : index
    %c0_13 = arith.constant 0 : index
    %14 = vector.load %arg16[%c0_12, %c0_13] : memref<4x64xf32, #tpu.memory_space<vmem>>, vector<4x64xf32>
    tpu.vector_store %arg16[%c0_12, %c0_13], %13 {strides = array<i32>} : memref<4x64xf32, #tpu.memory_space<vmem>>, vector<4x64xf32>,
    %cst_14 = arith.constant 0.000000e+00 : f32
    %15 = vector.broadcast %cst_14 : f32 to vector<4x64xf32>
    %c0_15 = arith.constant 0 : index
    %c0_16 = arith.constant 0 : index
    %16 = vector.load %arg17[%c0_15, %c0_16] : memref<4x64xf32, #tpu.memory_space<vmem>>, vector<4x64xf32>
    tpu.vector_store %arg17[%c0_15, %c0_16], %15 {strides = array<i32>} : memref<4x64xf32, #tpu.memory_space<vmem>>, vector<4x64xf32>,
    %cst_17 = arith.constant 0.000000e+00 : f32
    %17 = vector.broadcast %cst_17 : f32 to vector<4x64xf32>
    %c0_18 = arith.constant 0 : index
    %c0_19 = arith.constant 0 : index
    %18 = vector.load %arg18[%c0_18, %c0_19] : memref<4x64xf32, #tpu.memory_space<vmem>>, vector<4x64xf32>
    tpu.vector_store %arg18[%c0_18, %c0_19], %17 {strides = array<i32>} : memref<4x64xf32, #tpu.memory_space<vmem>>, vector<4x64xf32>,
    %cst_20 = arith.constant 0.000000e+00 : f32
    %19 = vector.broadcast %cst_20 : f32 to vector<4x64xf32>
    %c0_21 = arith.constant 0 : index
    %c0_22 = arith.constant 0 : index
    %20 = vector.load %arg19[%c0_21, %c0_22] : memref<4x64xf32, #tpu.memory_space<vmem>>, vector<4x64xf32>
    tpu.vector_store %arg19[%c0_21, %c0_22], %19 {strides = array<i32>} : memref<4x64xf32, #tpu.memory_space<vmem>>, vector<4x64xf32>,
    %c0_23 = arith.constant 0 : index
    %c0_24 = arith.constant 0 : index
    %21 = vector.load %arg2[%c0_23, %c0_24] : memref<64x256xbf16, #tpu.memory_space<vmem>>, vector<64x256xbf16>
    %c0_25 = arith.constant 0 : index
    %c0_26 = arith.constant 0 : index
    %22 = vector.load %arg3[%c0_25, %c0_26] : memref<64x256xbf16, #tpu.memory_space<vmem>>, vector<64x256xbf16>
    %c0_i32 = arith.constant 0 : i32
    %c8_i32 = arith.constant 8 : i32
    %23 = arith.addi %c0_i32, %c8_i32 : i32
    %c1_i32 = arith.constant 1 : i32
    scf.for %arg20 = %c0_i32 to %23 step %c1_i32  : i32 {
      %c1_i32_58 = arith.constant 1 : i32
      %59 = arith.muli %arg20, %c1_i32_58 : i32
      %c0_i32_59 = arith.constant 0 : i32
      %60 = arith.addi %c0_i32_59, %59 : i32
      %c7_i32 = arith.constant 7 : i32
      %61 = arith.subi %c7_i32, %60 : i32
      %62 = arith.index_cast %60 : i32 to index
      %c0_60 = arith.constant 0 : index
      %c0_61 = arith.constant 0 : index
      %63 = vector.load %arg12[%62, %c0_60, %c0_61] : memref<8x4x256xf32, #tpu.memory_space<vmem>>, vector<1x4x256xf32>
      %64 = vector.shape_cast %63 : vector<1x4x256xf32> to vector<4x256xf32>
      %c0_62 = arith.constant 0 : index
      %c0_63 = arith.constant 0 : index
      %65 = vector.load %arg16[%c0_62, %c0_63] : memref<4x64xf32, #tpu.memory_space<vmem>>, vector<4x64xf32>
      %66 = arith.truncf %65 : vector<4x64xf32> to vector<4x64xbf16>
      %cst_64 = arith.constant dense<0.000000e+00> : vector<4x256xf32>
      %67 = tpu.matmul %66, %21, %cst_64 {dimension_numbers = #tpu.dot_dimension_numbers<[1], [0], [0], [1], [0, 0, 1, 1], [], []>} : vector<4x64xbf16>, vector<64x256xbf16>, vector<4x256xf32> -> vector<4x256xf32>
      %68 = arith.addf %64, %67 : vector<4x256xf32>
      %c0_65 = arith.constant 0 : index
      %c0_66 = arith.constant 0 : index
      %69 = vector.load %arg17[%c0_65, %c0_66] : memref<4x64xf32, #tpu.memory_space<vmem>>, vector<4x64xf32>
      %70 = vector.extract_strided_slice %68 {offsets = [0, 0], sizes = [4, 64], strides = [1, 1]} : vector<4x256xf32> to vector<4x64xf32>
      %71 = arith.negf %70 : vector<4x64xf32>
      %72 = math.exp %71 : vector<4x64xf32>
      %cst_67 = arith.constant 1.000000e+00 : f32
      %73 = vector.broadcast %cst_67 : f32 to vector<4x64xf32>
      %74 = arith.addf %73, %72 : vector<4x64xf32>
      %75 = arith.divf %73, %74 : vector<4x64xf32>
      %76 = vector.extract_strided_slice %68 {offsets = [0, 64], sizes = [4, 64], strides = [1, 1]} : vector<4x256xf32> to vector<4x64xf32>
      %77 = arith.negf %76 : vector<4x64xf32>
      %78 = math.exp %77 : vector<4x64xf32>
      %cst_68 = arith.constant 1.000000e+00 : f32
      %79 = vector.broadcast %cst_68 : f32 to vector<4x64xf32>
      %80 = arith.addf %79, %78 : vector<4x64xf32>
      %81 = arith.divf %79, %80 : vector<4x64xf32>
      %82 = vector.extract_strided_slice %68 {offsets = [0, 128], sizes = [4, 64], strides = [1, 1]} : vector<4x256xf32> to vector<4x64xf32>
      %83 = math.tanh %82 : vector<4x64xf32>
      %84 = vector.extract_strided_slice %68 {offsets = [0, 192], sizes = [4, 64], strides = [1, 1]} : vector<4x256xf32> to vector<4x64xf32>
      %85 = arith.negf %84 : vector<4x64xf32>
      %86 = math.exp %85 : vector<4x64xf32>
      %cst_69 = arith.constant 1.000000e+00 : f32
      %87 = vector.broadcast %cst_69 : f32 to vector<4x64xf32>
      %88 = arith.addf %87, %86 : vector<4x64xf32>
      %89 = arith.divf %87, %88 : vector<4x64xf32>
      %90 = arith.mulf %81, %69 : vector<4x64xf32>
      %91 = arith.mulf %75, %83 : vector<4x64xf32>
      %92 = arith.addf %90, %91 : vector<4x64xf32>
      %93 = math.tanh %92 : vector<4x64xf32>
      %94 = arith.mulf %89, %93 : vector<4x64xf32>
      %c0_70 = arith.constant 0 : index
      %c0_71 = arith.constant 0 : index
      %95 = vector.load %arg16[%c0_70, %c0_71] : memref<4x64xf32, #tpu.memory_space<vmem>>, vector<4x64xf32>
      tpu.vector_store %arg16[%c0_70, %c0_71], %94 {strides = array<i32>} : memref<4x64xf32, #tpu.memory_space<vmem>>, vector<4x64xf32>,
      %c0_72 = arith.constant 0 : index
      %c0_73 = arith.constant 0 : index
      %96 = vector.load %arg17[%c0_72, %c0_73] : memref<4x64xf32, #tpu.memory_space<vmem>>, vector<4x64xf32>
      tpu.vector_store %arg17[%c0_72, %c0_73], %92 {strides = array<i32>} : memref<4x64xf32, #tpu.memory_space<vmem>>, vector<4x64xf32>,
      %97 = arith.index_cast %60 : i32 to index
      %c0_74 = arith.constant 0 : index
      %c0_75 = arith.constant 0 : index
      %98 = vector.load %arg14[%97, %c0_74, %c0_75] : memref<8x4x64xf32, #tpu.memory_space<vmem>>, vector<1x4x64xf32>
      %99 = vector.shape_cast %98 : vector<1x4x64xf32> to vector<4x64xf32>
      %100 = vector.shape_cast %94 : vector<4x64xf32> to vector<1x4x64xf32>
      tpu.vector_store %arg14[%97, %c0_74, %c0_75], %100 {strides = array<i32>} : memref<8x4x64xf32, #tpu.memory_space<vmem>>, vector<1x4x64xf32>,
      %101 = arith.index_cast %61 : i32 to index
      %c0_76 = arith.constant 0 : index
      %c0_77 = arith.constant 0 : index
      %102 = vector.load %arg13[%101, %c0_76, %c0_77] : memref<8x4x256xf32, #tpu.memory_space<vmem>>, vector<1x4x256xf32>
      %103 = vector.shape_cast %102 : vector<1x4x256xf32> to vector<4x256xf32>
      %c0_78 = arith.constant 0 : index
      %c0_79 = arith.constant 0 : index
      %104 = vector.load %arg18[%c0_78, %c0_79] : memref<4x64xf32, #tpu.memory_space<vmem>>, vector<4x64xf32>
      %105 = arith.truncf %104 : vector<4x64xf32> to vector<4x64xbf16>
      %cst_80 = arith.constant dense<0.000000e+00> : vector<4x256xf32>
      %106 = tpu.matmul %105, %22, %cst_80 {dimension_numbers = #tpu.dot_dimension_numbers<[1], [0], [0], [1], [0, 0, 1, 1], [], []>} : vector<4x64xbf16>, vector<64x256xbf16>, vector<4x256xf32> -> vector<4x256xf32>
      %107 = arith.addf %103, %106 : vector<4x256xf32>
      %c0_81 = arith.constant 0 : index
      %c0_82 = arith.constant 0 : index
      %108 = vector.load %arg19[%c0_81, %c0_82] : memref<4x64xf32, #tpu.memory_space<vmem>>, vector<4x64xf32>
      %109 = vector.extract_strided_slice %107 {offsets = [0, 0], sizes = [4, 64], strides = [1, 1]} : vector<4x256xf32> to vector<4x64xf32>
      %110 = arith.negf %109 : vector<4x64xf32>
      %111 = math.exp %110 : vector<4x64xf32>
      %cst_83 = arith.constant 1.000000e+00 : f32
      %112 = vector.broadcast %cst_83 : f32 to vector<4x64xf32>
      %113 = arith.addf %112, %111 : vector<4x64xf32>
      %114 = arith.divf %112, %113 : vector<4x64xf32>
      %115 = vector.extract_strided_slice %107 {offsets = [0, 64], sizes = [4, 64], strides = [1, 1]} : vector<4x256xf32> to vector<4x64xf32>
      %116 = arith.negf %115 : vector<4x64xf32>
      %117 = math.exp %116 : vector<4x64xf32>
      %cst_84 = arith.constant 1.000000e+00 : f32
      %118 = vector.broadcast %cst_84 : f32 to vector<4x64xf32>
      %119 = arith.addf %118, %117 : vector<4x64xf32>
      %120 = arith.divf %118, %119 : vector<4x64xf32>
      %121 = vector.extract_strided_slice %107 {offsets = [0, 128], sizes = [4, 64], strides = [1, 1]} : vector<4x256xf32> to vector<4x64xf32>
      %122 = math.tanh %121 : vector<4x64xf32>
      %123 = vector.extract_strided_slice %107 {offsets = [0, 192], sizes = [4, 64], strides = [1, 1]} : vector<4x256xf32> to vector<4x64xf32>
      %124 = arith.negf %123 : vector<4x64xf32>
      %125 = math.exp %124 : vector<4x64xf32>
      %cst_85 = arith.constant 1.000000e+00 : f32
      %126 = vector.broadcast %cst_85 : f32 to vector<4x64xf32>
      %127 = arith.addf %126, %125 : vector<4x64xf32>
      %128 = arith.divf %126, %127 : vector<4x64xf32>
      %129 = arith.mulf %120, %108 : vector<4x64xf32>
      %130 = arith.mulf %114, %122 : vector<4x64xf32>
      %131 = arith.addf %129, %130 : vector<4x64xf32>
      %132 = math.tanh %131 : vector<4x64xf32>
      %133 = arith.mulf %128, %132 : vector<4x64xf32>
      %c0_86 = arith.constant 0 : index
      %c0_87 = arith.constant 0 : index
      %134 = vector.load %arg18[%c0_86, %c0_87] : memref<4x64xf32, #tpu.memory_space<vmem>>, vector<4x64xf32>
      tpu.vector_store %arg18[%c0_86, %c0_87], %133 {strides = array<i32>} : memref<4x64xf32, #tpu.memory_space<vmem>>, vector<4x64xf32>,
      %c0_88 = arith.constant 0 : index
      %c0_89 = arith.constant 0 : index
      %135 = vector.load %arg19[%c0_88, %c0_89] : memref<4x64xf32, #tpu.memory_space<vmem>>, vector<4x64xf32>
      tpu.vector_store %arg19[%c0_88, %c0_89], %131 {strides = array<i32>} : memref<4x64xf32, #tpu.memory_space<vmem>>, vector<4x64xf32>,
      %136 = arith.index_cast %61 : i32 to index
      %c0_90 = arith.constant 0 : index
      %c0_91 = arith.constant 0 : index
      %137 = vector.load %arg15[%136, %c0_90, %c0_91] : memref<8x4x64xf32, #tpu.memory_space<vmem>>, vector<1x4x64xf32>
      %138 = vector.shape_cast %137 : vector<1x4x64xf32> to vector<4x64xf32>
      %139 = vector.shape_cast %133 : vector<4x64xf32> to vector<1x4x64xf32>
      tpu.vector_store %arg15[%136, %c0_90, %c0_91], %139 {strides = array<i32>} : memref<8x4x64xf32, #tpu.memory_space<vmem>>, vector<1x4x64xf32>,
    }
    %c8_i32_27 = arith.constant 8 : i32
    %c0_28 = arith.constant 0 : index
    %c0_29 = arith.constant 0 : index
    %c0_30 = arith.constant 0 : index
    %24 = vector.load %arg14[%c0_28, %c0_29, %c0_30] : memref<8x4x64xf32, #tpu.memory_space<vmem>>, vector<8x4x64xf32>
    %c0_31 = arith.constant 0 : index
    %c0_32 = arith.constant 0 : index
    %c0_33 = arith.constant 0 : index
    %25 = vector.load %arg15[%c0_31, %c0_32, %c0_33] : memref<8x4x64xf32, #tpu.memory_space<vmem>>, vector<8x4x64xf32>
    %cst_34 = arith.constant dense<0xFF800000> : vector<4x64xf32>
    %26 = vector.multi_reduction <maximumf>, %24, %cst_34 [0] : vector<8x4x64xf32> to vector<4x64xf32>
    %cst_35 = arith.constant dense<0xFF800000> : vector<4x64xf32>
    %27 = vector.multi_reduction <maximumf>, %25, %cst_35 [0] : vector<8x4x64xf32> to vector<4x64xf32>
    %28 = tpu.concatenate %26, %27 in 1 : vector<4x64xf32>, vector<4x64xf32> -> vector<4x128xf32>
    %cst_36 = arith.constant dense<0.000000e+00> : vector<4x64xf32>
    %29 = vector.multi_reduction <add>, %24, %cst_36 [0] : vector<8x4x64xf32> to vector<4x64xf32>
    %cst_37 = arith.constant dense<0.000000e+00> : vector<4x64xf32>
    %30 = vector.multi_reduction <add>, %25, %cst_37 [0] : vector<8x4x64xf32> to vector<4x64xf32>
    %31 = tpu.concatenate %29, %30 in 1 : vector<4x64xf32>, vector<4x64xf32> -> vector<4x128xf32>
    %cst_38 = arith.constant 1.250000e-01 : f32
    %32 = vector.broadcast %cst_38 : f32 to vector<4x128xf32>
    %33 = arith.mulf %31, %32 : vector<4x128xf32>
    %34 = vector.extract_strided_slice %28 {offsets = [0, 0], sizes = [2, 128], strides = [1, 1]} : vector<4x128xf32> to vector<2x128xf32>
    %35 = vector.extract_strided_slice %33 {offsets = [0, 0], sizes = [2, 128], strides = [1, 1]} : vector<4x128xf32> to vector<2x128xf32>
    %36 = vector.extract_strided_slice %28 {offsets = [2, 0], sizes = [2, 128], strides = [1, 1]} : vector<4x128xf32> to vector<2x128xf32>
    %37 = vector.extract_strided_slice %33 {offsets = [2, 0], sizes = [2, 128], strides = [1, 1]} : vector<4x128xf32> to vector<2x128xf32>
    %38 = tpu.concatenate %34, %35, %36, %37 in 1 : vector<2x128xf32>, vector<2x128xf32>, vector<2x128xf32>, vector<2x128xf32> -> vector<2x512xf32>
    %c0_39 = arith.constant 0 : index
    %c0_40 = arith.constant 0 : index
    %39 = vector.load %arg5[%c0_39, %c0_40] : memref<512x64xf32, #tpu.memory_space<vmem>>, vector<512x64xf32>
    %cst_41 = arith.constant dense<0.000000e+00> : vector<2x64xf32>
    %40 = tpu.matmul %38, %39, %cst_41 {dimension_numbers = #tpu.dot_dimension_numbers<[1], [0], [0], [1], [0, 0, 1, 1], [], []>} : vector<2x512xf32>, vector<512x64xf32>, vector<2x64xf32> -> vector<2x64xf32>
    %c0_42 = arith.constant 0 : index
    %c0_43 = arith.constant 0 : index
    %41 = vector.load %arg6[%c0_42, %c0_43] : memref<1x64xf32, #tpu.memory_space<vmem>>, vector<1x64xf32>
    %42 = vector.broadcast %41 : vector<1x64xf32> to vector<2x64xf32>
    %43 = arith.addf %40, %42 : vector<2x64xf32>
    %cst_44 = arith.constant 0.000000e+00 : f32
    %44 = vector.broadcast %cst_44 : f32 to vector<2x64xf32>
    %45 = arith.maximumf %43, %44 : vector<2x64xf32>
    %c0_45 = arith.constant 0 : index
    %c0_46 = arith.constant 0 : index
    %46 = vector.load %arg7[%c0_45, %c0_46] : memref<64x32xf32, #tpu.memory_space<vmem>>, vector<64x32xf32>
    %cst_47 = arith.constant dense<0.000000e+00> : vector<2x32xf32>
    %47 = tpu.matmul %45, %46, %cst_47 {dimension_numbers = #tpu.dot_dimension_numbers<[1], [0], [0], [1], [0, 0, 1, 1], [], []>} : vector<2x64xf32>, vector<64x32xf32>, vector<2x32xf32> -> vector<2x32xf32>
    %c0_48 = arith.constant 0 : index
    %c0_49 = arith.constant 0 : index
    %48 = vector.load %arg8[%c0_48, %c0_49] : memref<1x32xf32, #tpu.memory_space<vmem>>, vector<1x32xf32>
    %49 = vector.broadcast %48 : vector<1x32xf32> to vector<2x32xf32>
    %50 = arith.addf %47, %49 : vector<2x32xf32>
    %cst_50 = arith.constant 0.000000e+00 : f32
    %51 = vector.broadcast %cst_50 : f32 to vector<2x32xf32>
    %52 = arith.maximumf %50, %51 : vector<2x32xf32>
    %c0_51 = arith.constant 0 : index
    %c0_52 = arith.constant 0 : index
    %53 = vector.load %arg9[%c0_51, %c0_52] : memref<32x3xf32, #tpu.memory_space<vmem>>, vector<32x3xf32>
    %cst_53 = arith.constant dense<0.000000e+00> : vector<2x3xf32>
    %54 = tpu.matmul %52, %53, %cst_53 {dimension_numbers = #tpu.dot_dimension_numbers<[1], [0], [0], [1], [0, 0, 1, 1], [], []>} : vector<2x32xf32>, vector<32x3xf32>, vector<2x3xf32> -> vector<2x3xf32>
    %c0_54 = arith.constant 0 : index
    %c0_55 = arith.constant 0 : index
    %55 = vector.load %arg10[%c0_54, %c0_55] : memref<1x3xf32, #tpu.memory_space<vmem>>, vector<1x3xf32>
    %56 = vector.broadcast %55 : vector<1x3xf32> to vector<2x3xf32>
    %57 = arith.addf %54, %56 : vector<2x3xf32>
    %c0_56 = arith.constant 0 : index
    %c0_57 = arith.constant 0 : index
    %58 = vector.load %arg11[%c0_56, %c0_57] : memref<2x3xf32, #tpu.memory_space<vmem>>, vector<2x3xf32>
    tpu.vector_store %arg11[%c0_56, %c0_57], %57 {strides = array<i32>} : memref<2x3xf32, #tpu.memory_space<vmem>>, vector<2x3xf32>,
    return
  }
}

</mosaic_0001>

<bundles_post_ra>
// kernel: esim_forward.4
= control target key start
LH: loop header
LB: loop body
LE: loop exit
PB: predicated region body
PF: predicated region fallthrough
CT: control target
= control target key end

     0   :  { %s593_s12 = smov 0   ;;  %s648_s0 = inlined_call_operand.vmem [shape: f32[2,2,8,128], index: 0, kind: input, shape index: {}, may-alias: {0,1}]   ;;  %s649_s1 = inlined_call_operand.vmem [shape: f32[2,2,8,128], index: 1, kind: input, shape index: {}, may-alias: {0,1}]   ;;  %s650_s2 = inlined_call_operand.vmem [shape: f32[2,8,512], index: 2, kind: output, shape index: {0}]   ;;  %s651_s3 = inlined_call_operand.vmem [shape: f32[2,8,512], index: 3, kind: output, shape index: {1}]  }
   0x1 LB: > { %s502_s13 = sadd.s32 4294967295, %s569_s12   ;;  %p506_p0 = scmp.ge.s32.totalorder %s569_s12, 1  ;;  %s569_s12 = sphi %s593_s12, %s14_s12  }
   0x2   : > { %p149_p1 = scmp.lt.s32.totalorder %s569_s12, 3 }
   0x4   : > { %p150_p2 = pnand %p506_p0, %p149_p1 }
   0x5   : > { %p182_p3 = scmp.lt.s32.totalorder (!%p150_p2), %s502_s13, 1  ;;  %v571_v0 = vmov (!%p150_p2), 0.0   ;;  %vm572_vm0 = vmmov (!%p150_p2), 0   ;;  %vm246_vm1 = vcmask (!%p150_p2), 64512   ;;  %vm280_vm2 = vcmask (!%p150_p2), 1043456  }
   0x6   : > { %153 = sbr.rel (%p150_p2) target bundleno = 777 (0x309), region = 28  ;;  %526 = vmatprep.subr.bf16.mxu0 (!%p150_p2), %v571_v0  ;;  %528 = vmatprep.mubr.msk.bf16.mxu0 (!%p150_p2), %vm572_vm0, %v571_v0 }
   0x7   : > { %532 = vmatprep.subr.bf16.mxu1 (!%p150_p2), %v571_v0  ;;  %534 = vmatprep.mubr.msk.bf16.mxu1 (!%p150_p2), %vm572_vm0, %v571_v0 }
   0xd   : > { %s653_s13 = smov (!%p182_p3, %s502_s13), 1 }
   0xe   : > { %s507_s14 = sshll.u32 %s653_s13, 3  ;;  %s518_s21 = sshll.u32 %s653_s13, 5 }
   0xf   : > { %s453_s17 = scalar_lea.vmem %s649_s1, %s507_s14  ;;  %s185_s20 = scalar_lea.vmem %s648_s0, %s507_s14 }
  0x10   : > { %v616_v1 = vld [vmem:[%s453_s17 + $0x10] sm:$0xff]  ;;  %v620_v3 = vld [vmem:[%s185_s20] sm:$0xff]  ;;  %s200_s24 = scalar_lea.vmem %s651_s3, %s518_s21  ;;  %s195_s27 = scalar_lea.vmem %s650_s2, %s518_s21 }
  0x11   : > { %v205_v2 = vpack.c.bf16 %v616_v1, %v616_v1  ;;  %v204_v4 = vpack.c.bf16 %v620_v3, %v620_v3  ;;  %395 = vst [vmem:[%s200_s24] sm:$0xff] %v616_v1  ;;  %391 = vst [vmem:[%s195_s27] sm:$0xff] %v620_v3 }
  0x13   : > { %527 = vmatpush3.bf16.xpose.msra.mxu0 %v205_v2  ;;  %v282_v34 = vsel %vm280_vm2, %v205_v2, 0  ;;  %v345_v38 = vsel %vm280_vm2, %v204_v4, 0 }
  0x14   : > { %533 = vmatpush3.bf16.msra.mxu1 %v282_v34 }
  0x15   : > { %538 = vmatprep.subr.bf16.mxu1 %v571_v0 }
  0x1a   : > { %529 = vmatmul.mubr.bf16.vlgmr.msra.gmra.mrb[0].mxu0 %v204_v4 }
  0xed   : > { %v240_v5 = vpop.f32.mrb[0].mxu0 }
  0xee   : > { %v530_v6 = vpop.f32.mrb[1].mxu0  ;;  %v247_v7 = vsel %vm246_vm1, %v240_v5, -inf }
  0xef   : > { %248 = vmax.xlane.f32.xlu0 %v247_v7  ;;  %v258_v8 = vrot.slane %v247_v7, 4  ;;  %v243_v9 = vpop.f32.mrb[2].mxu0 }
  0xf0   : > { %v531_v10 = vpop.f32.mrb[3].mxu0 }
  0xf1   : > { %v259_v11 = vmax.f32 %v247_v7, %v258_v8 }
  0xf3   : > { %v260_v12 = vrot.slane %v259_v11, 2 }
  0xf5   : > { %v261_v13 = vmax.f32 %v259_v11, %v260_v12 }
  0xf7   : > { %v262_v14 = vrot.slane %v261_v13, 1 }
  0xf9   : > { %v263_v15 = vmax.f32 %v261_v13, %v262_v14 }
  0xfb   : > { %v264_v16 = vsub.f32 %v240_v5, %v263_v15 }
  0xfd   : > { %v265_v17 = vmul.f32 1.442695, %v264_v16 }
  0xff   : > { %555 = vpow2.f32 %v265_v17 }
 0x109   : > { %v556_v18 = vpop.eup %555 }
 0x10a   : > { %v267_v19 = vsel %vm246_vm1, %v556_v18, 0.0 }
 0x10b   : > { %v268_v20 = vrot.slane %v267_v19, 4 }
 0x10d   : > { %v269_v21 = vadd.f32 %v268_v20, %v267_v19 }
 0x10f   : > { %v270_v22 = vrot.slane %v269_v21, 2 }
 0x111   : > { %v271_v23 = vadd.f32 %v270_v22, %v269_v21 }
 0x113   : > { %v272_v24 = vrot.slane %v271_v23, 1 }
 0x115   : > { %v273_v25 = vadd.f32 %v272_v24, %v271_v23 }
 0x117   : > { %557 = vrcp.f32 %v273_v25 }
 0x121   : > { %v558_v26 = vpop.eup %557 }
 0x122   : > { %v275_v27 = vmul.f32 %v558_v26, %v556_v18 }
 0x124   : > { %v324_v28 = vpack.c.bf16 %v275_v27, %v275_v27 }
 0x126   : > { %325 = vxpose.xlu1.c.b16.start.end [1/1] (short) (narrow) %v324_v28, 16 }
 0x17c   : > { %v249_v29 = vpop.xlane.xlu0 %248 }
 0x17d   : > { %v250_v30 = vsub.f32 %v240_v5, %v249_v29 }
 0x17f   : > { %v251_v31 = vmul.f32 1.442695, %v250_v30 }
 0x181   : > { %559 = vpow2.f32 %v251_v31 }
 0x18b   : > { %v560_v32 = vpop.eup %559 }
 0x18c   : > { %v253_v33 = vsel %vm246_vm1, %v560_v32, 0.0  ;;  %v333_v40 = vpop.trf.xlu1 }
 0x18d   : > { %254 = vadd.xlane.f32.xlu0 %v253_v33 }
 0x21a   : > { %v255_v35 = vpop.xlane.xlu0 %254 }
 0x21b   : > { %561 = vrcp.f32 %v255_v35 }
 0x225   : > { %v562_v36 = vpop.eup %561 }
 0x226   : > { %v257_v37 = vmul.f32 %v562_v36, %v560_v32 }
 0x228   : > { %v276_v39 = vpack.c.bf16 %v257_v37, %v257_v37 }
 0x22a   : > { %535 = vmatmul.mubr.msk.bf16.vlgmr.msra.gmra.mrb[0].mxu1 %vm246_vm1, %v276_v39 }
 0x22b   : > { %539 = vmatpush3.bf16.msra.mxu1 %v345_v38  ;;  %540 = vmatprep.mubr.msk.bf16.mxu1 %vm572_vm0, %v571_v0 }
 0x232   : > { %541 = vmatmul.mubr.msk.bf16.vlgmr.msra.gmra.mrb[4].mxu1 %vm246_vm1, %v333_v40 }
 0x2fd   : > { %v318_v41 = vpop.f32.mrb[0].mxu1 }
 0x2fe   : > { %v389_v42 = vsub.f32 %v616_v1, %v318_v41  ;;  %v390_v43 = vmul.f32 %v616_v1, %v318_v41  ;;  %396 = vst [vmem:[%s200_s24 + $0x8] sm:$0xff] %v318_v41  ;;  %v536_v44 = vpop.f32.mrb[1].mxu1 }
 0x2ff   : > { %v321_v45 = vpop.f32.mrb[2].mxu1 }
 0x300   : > { %397 = vst [vmem:[%s200_s24 + $0x10] sm:$0xff] %v389_v42  ;;  %398 = vst [vmem:[%s200_s24 + $0x18] sm:$0xff] %v390_v43  ;;  %v537_v46 = vpop.f32.mrb[3].mxu1 }
 0x305   : > { %v381_v47 = vpop.f32.mrb[4].mxu1 }
 0x306   : > { %v387_v48 = vsub.f32 %v620_v3, %v381_v47  ;;  %v388_v49 = vmul.f32 %v381_v47, %v620_v3  ;;  %392 = vst [vmem:[%s195_s27 + $0x8] sm:$0xff] %v381_v47  ;;  %v542_v50 = vpop.f32.mrb[5].mxu1 }
 0x307   : > { %v384_v51 = vpop.f32.mrb[6].mxu1 }
 0x308   : > { %393 = vst [vmem:[%s195_s27 + $0x10] sm:$0xff] %v387_v48  ;;  %394 = vst [vmem:[%s195_s27 + $0x18] sm:$0xff] %v388_v49  ;;  %v543_v52 = vpop.f32.mrb[7].mxu1 }
 0x309 PF: > { %s14_s12 = sadd.s32 1, %s569_s12  }
 0x30a   : > { %p11_p4 = scmp.ge.s32.totalorder %s14_s12, 4  }
 0x30c   :  { %13 = sbr.rel (!%p11_p4) target bundleno = 1 (0x1), region = 73 }

// kernel: esim_forward.3
= control target key start
LH: loop header
LB: loop body
LE: loop exit
PB: predicated region body
PF: predicated region fallthrough
CT: control target
= control target key end

     0   :  { %s1224_s18 = smov 0   ;;  %s1475_s0 = inlined_call_operand.vmem [shape: f32[2,16,64], index: 0, kind: input, shape index: {}]   ;;  %s1476_s1 = inlined_call_operand.vmem [shape: bf16[64,512], index: 1, kind: input, shape index: {}]   ;;  %s1477_s2 = inlined_call_operand.vmem [shape: bf16[64,256], index: 2, kind: input, shape index: {}]   ;;  %s1478_s3 = inlined_call_operand.vmem [shape: bf16[64,256], index: 3, kind: input, shape index: {}]   ;;  %s1479_s4 = inlined_call_operand.vmem [shape: f32[1,512], index: 4, kind: input, shape index: {}]   ;;  %s1480_s5 = inlined_call_operand.vmem [shape: f32[2,8,2,128], index: 5, kind: output, shape index: {}]  }
   0x1 LB: > { %s1033_s19 = sadd.s32 4294967295, %s1182_s18   ;;  %p1037_p0 = scmp.ge.s32.totalorder %s1182_s18, 1  ;;  %s1182_s18 = sphi %s1224_s18, %s15_s18  }
   0x2   : > { %p187_p1 = scmp.lt.s32.totalorder %s1182_s18, 3 }
   0x4   : > { %p188_p2 = pnand %p1037_p0, %p187_p1 }
   0x5   : > { %v1124_v0 = vld [vmem:[%s1476_s1 + $0x4] ss:$16 sps:$4 sm:$0xff] (!%p188_p2)   ;;  %p215_p3 = scmp.lt.s32.totalorder (!%p188_p2), %s1033_s19, 1  ;;  %v1126_v1 = vld [vmem:[%s1476_s1 + $0xc] ss:$16 sps:$4 sm:$0xff] (!%p188_p2)   ;;  %v1188_v2 = vmov (!%p188_p2), 0   ;;  %v247_v37 = vlaneseq (!%p188_p2) }
   0x6   : > { %191 = sbr.rel (%p188_p2) target bundleno = 901 (0x385), region = 40  ;;  %383 = vmatprep.mubr.bf16.mxu0 (!%p188_p2), %v1188_v2  ;;  %426 = vmatprep.mubr.bf16.mxu1 (!%p188_p2), %v1188_v2  ;;  %v1128_v3 = vld [vmem:[%s1476_s1] ss:$16 sps:$4 sm:$0xff] (!%p188_p2)   ;;  %v1129_v4 = vld [vmem:[%s1476_s1 + $0x8] ss:$16 sps:$4 sm:$0xff] (!%p188_p2)   ;;  %vm347_vm0 = vcmask (!%p188_p2), 523264  }
   0x7   : > { %351 = vmatprep.subr.bf16.mxu0 (!%p188_p2), %v1124_v0  ;;  %394 = vmatprep.subr.bf16.mxu1 (!%p188_p2), %v1126_v1  ;;  %v1130_v5 = vld [vmem:[%s1476_s1 + $0x24] ss:$16 sps:$4 sm:$0xff] (!%p188_p2)   ;;  %v1132_v6 = vld [vmem:[%s1476_s1 + $0x2c] ss:$16 sps:$4 sm:$0xff] (!%p188_p2)   ;;  %v1134_v7 = vld [vmem:[%s1476_s1 + $0x20] ss:$16 sps:$4 sm:$0xff] (!%p188_p2)  }
   0x8   : > { %352 = vmatpush1.bf16.msra.mxu0 (!%p188_p2), %v1128_v3  ;;  %395 = vmatpush1.bf16.msra.mxu1 (!%p188_p2), %v1129_v4  ;;  %v1135_v8 = vld [vmem:[%s1476_s1 + $0x28] ss:$16 sps:$4 sm:$0xff] (!%p188_p2)   ;;  %v1136_v9 = vld [vmem:[%s1476_s1 + $0x44] ss:$16 sps:$4 sm:$0xff] (!%p188_p2)   ;;  %v1138_v10 = vld [vmem:[%s1476_s1 + $0x4c] ss:$16 sps:$4 sm:$0xff] (!%p188_p2)  }
   0x9   : > { %353 = vmatprep.subr.bf16.mxu0 (!%p188_p2), %v1130_v5  ;;  %396 = vmatprep.subr.bf16.mxu1 (!%p188_p2), %v1132_v6  ;;  %v1140_v11 = vld [vmem:[%s1476_s1 + $0x40] ss:$16 sps:$4 sm:$0xff] (!%p188_p2)   ;;  %v1141_v12 = vld [vmem:[%s1476_s1 + $0x48] ss:$16 sps:$4 sm:$0xff] (!%p188_p2)   ;;  %v1142_v13 = vld [vmem:[%s1476_s1 + $0x64] ss:$16 sps:$4 sm:$0xff] (!%p188_p2)  }
   0xa   : > { %v1144_v14 = vld [vmem:[%s1476_s1 + $0x6c] ss:$16 sps:$4 sm:$0xff] (!%p188_p2)   ;;  %v1146_v15 = vld [vmem:[%s1476_s1 + $0x60] ss:$16 sps:$4 sm:$0xff] (!%p188_p2)   ;;  %v1147_v16 = vld [vmem:[%s1476_s1 + $0x68] ss:$16 sps:$4 sm:$0xff] (!%p188_p2)  }
   0xb   : > { %vm549_vm1 = vcmask (!%p188_p2), 517120   ;;  %v1189_v20 = vmov (!%p188_p2), 0.0   ;;  %v1297_v21 = vld [vmem:[%s1477_s2] sm:$0xff] (!%p188_p2)  ;;  %v1302_v22 = vld [vmem:[%s1477_s2 + $0x8] sm:$0xff] (!%p188_p2)  ;;  %v1307_v23 = vld [vmem:[%s1477_s2 + $0x10] sm:$0xff] (!%p188_p2)  ;;  %v248_v38 = vshrl.u32 (!%p188_p2), %v247_v37, 7 }
   0xc   : > { %354 = vmatpush1.bf16.msra.mxu0 (!%p188_p2), %v1134_v7  ;;  %397 = vmatpush1.bf16.msra.mxu1 (!%p188_p2), %v1135_v8  ;;  %550 = vst.msk [vmem:[#allocation6] sm:$0x3] (!%p188_p2), %vm549_vm1, %v1189_v20  ;;  %551 = vst.msk [vmem:[#allocation7] sm:$0x3] (!%p188_p2), %vm549_vm1, %v1189_v20  ;;  %v1312_v24 = vld [vmem:[%s1477_s2 + $0x18] sm:$0xff] (!%p188_p2)  ;;  %v1317_v25 = vld [vmem:[%s1477_s2 + $0x20] sm:$0xff] (!%p188_p2) }
   0xd   : > { %s1482_s19 = smov (!%p215_p3, %s1033_s19), 1  ;;  %355 = vmatprep.subr.bf16.mxu0 %v1136_v9  ;;  %398 = vmatprep.subr.bf16.mxu1 %v1138_v10  ;;  %552 = vst.msk [vmem:[#allocation8] sm:$0x3] %vm549_vm1, %v1189_v20  ;;  %553 = vst.msk [vmem:[#allocation9] sm:$0x3] %vm549_vm1, %v1189_v20  ;;  %v1322_v26 = vld [vmem:[%s1477_s2 + $0x28] sm:$0xff] }
   0xe   : > { %s1098_s9 = sshll.u32 %s1482_s19, 4  ;;  %v1327_v27 = vld [vmem:[%s1477_s2 + $0x30] sm:$0xff]  ;;  %v1332_v28 = vld [vmem:[%s1477_s2 + $0x38] sm:$0xff]  ;;  %v1337_v29 = vld [vmem:[%s1478_s3] sm:$0xff]  ;;  %v249_v39 = vsub.s32 0, %v248_v38  ;;  %v257_v40 = vsub.s32 2, %v248_v38 }
   0xf   : > { %s1259_s14 = scalar_lea.vmem %s1480_s5, %s1098_s9  ;;  %s219_s30 = scalar_lea.vmem %s1475_s0, %s1098_s9  ;;  %v1342_v30 = vld [vmem:[%s1478_s3 + $0x8] sm:$0xff]  ;;  %v1347_v31 = vld [vmem:[%s1478_s3 + $0x10] sm:$0xff]  ;;  %v1352_v32 = vld [vmem:[%s1478_s3 + $0x18] sm:$0xff]  ;;  %v1190_v42 = vmov 1983009808   ;;  %v253_v44 = vsub.s32 1, %v248_v38 }
  0x10   : > { %356 = vmatpush1.bf16.msra.mxu0 %v1140_v11  ;;  %399 = vmatpush1.bf16.msra.mxu1 %v1141_v12  ;;  %v226_v17 = vld [vmem:[%s219_s30] sm:$0xff]  ;;  %v227_v18 = vld [vmem:[%s219_s30 + $0x8] sm:$0xff]  ;;  %v1367_v35 = vld [vmem:[%s1478_s3 + $0x30] sm:$0xff]  ;;  %v444_v43 = vunpack.c.l.s4 %v1190_v42  ;;  %v261_v45 = vsub.s32 3, %v248_v38  ;;  %s1387_s23 = smov 0  }
  0x11   : > { %357 = vmatprep.subr.bf16.mxu0 %v1142_v13  ;;  %400 = vmatprep.subr.bf16.mxu1 %v1144_v14  ;;  %v228_v19 = vpack.c.bf16 %v227_v18, %v226_v17  ;;  %v1357_v33 = vld [vmem:[%s1478_s3 + $0x20] sm:$0xff]  ;;  %v1362_v34 = vld [vmem:[%s1478_s3 + $0x28] sm:$0xff]  ;;  %v1372_v36 = vld [vmem:[%s1478_s3 + $0x38] sm:$0xff] }
  0x12   : > { %v245_v41 = vld [vmem:[%s1479_s4] sm:$0xf]  ;;  %v445_v48 = vunpack.c.0.s8 %v444_v43 }
  0x13   : > { %v250_v46 = vrot.slane %v245_v41, %v249_v39  ;;  %v258_v47 = vrot.slane %v245_v41, %v257_v40  ;;  %v254_v49 = vrot.slane %v245_v41, %v253_v44  ;;  %v262_v50 = vrot.slane %v245_v41, %v261_v45 }
  0x14   : > { %358 = vmatpush1.bf16.msra.mxu0 %v1146_v15  ;;  %401 = vmatpush1.bf16.msra.mxu1 %v1147_v16  ;;  %v1377_v57 = vsub.s32 %v445_v48, %v248_v38 }
  0x17   : > { %1058 = vmatmul.mubr.msk.bf16.vlgmr.msra.gmra.mrb[0].mxu0 %vm347_vm0, %v228_v19  ;;  %1059 = vmatmul.mubr.msk.bf16.vlgmr.msra.gmra.mrb[0].mxu1 %vm347_vm0, %v228_v19 }
  0xea   : > { %v385_v51 = vpop.f32.mrb[0].mxu0  ;;  %v428_v52 = vpop.f32.mrb[0].mxu1 }
  0xeb   : > { %v386_v53 = vadd.f32 %v385_v51, %v250_v46  ;;  %v429_v54 = vadd.f32 %v428_v52, %v258_v47  ;;  %v387_v55 = vpop.f32.mrb[1].mxu0  ;;  %v430_v56 = vpop.f32.mrb[1].mxu1 }
  0xec   : > { %v388_v58 = vadd.f32 %v387_v55, %v254_v49  ;;  %v431_v59 = vadd.f32 %v430_v56, %v262_v50  ;;  %v389_v60 = vpop.f32.mrb[2].mxu0  ;;  %v432_v61 = vpop.f32.mrb[2].mxu1 }
  0xed   : > { %v390_v62 = vadd.f32 %v389_v60, %v250_v46  ;;  %v433_v63 = vadd.f32 %v432_v61, %v258_v47  ;;  %v391_v0 = vpop.f32.mrb[3].mxu0  ;;  %v434_v1 = vpop.f32.mrb[3].mxu1 }
  0xee   : > { %v441_v2 = vcombine.low %v386_v53, %v388_v58  ;;  %v442_v3 = vcombine.high %v386_v53, %v388_v58  ;;  %v497_v4 = vcombine.low %v429_v54, %v431_v59  ;;  %v498_v5 = vcombine.high %v429_v54, %v431_v59 }
  0xef   : > { %v392_v6 = vadd.f32 %v391_v0, %v254_v49  ;;  %v435_v7 = vadd.f32 %v434_v1, %v262_v50 }
  0xf0   : > { %v449_v8 = vrot.slane %v441_v2, %v1377_v57  ;;  %v456_v9 = vrot.slane %v442_v3, %v1377_v57  ;;  %1060 = vst.sshfl [vmem:[#allocation2] sm:$0x33 pattern:$0x76325410] %v441_v2  ;;  %v505_v10 = vrot.slane %v497_v4, %v1377_v57  ;;  %v512_v11 = vrot.slane %v498_v5, %v1377_v57 }
  0xf1   : > { %1061 = vst.sshfl [vmem:[#allocation2 + $0x8] sm:$0x33 pattern:$0x76325410] %v442_v3  ;;  %v459_v12 = vcombine.low %v390_v62, %v392_v6  ;;  %v460_v13 = vcombine.high %v390_v62, %v392_v6  ;;  %v515_v14 = vcombine.low %v433_v63, %v435_v7  ;;  %v516_v15 = vcombine.high %v433_v63, %v435_v7 }
  0xf2   : > { %1064 = vst.sshfl [vmem:[#allocation3] sm:$0x33 pattern:$0x76325410] %v497_v4  ;;  %v457_v16 = vcombine.high %v449_v8, %v449_v8  ;;  %v458_v17 = vcombine.high %v456_v9, %v456_v9  ;;  %v513_v18 = vcombine.high %v505_v10, %v505_v10  ;;  %v514_v19 = vcombine.high %v512_v11, %v512_v11 }
  0xf3   : > { %1065 = vst.sshfl [vmem:[#allocation3 + $0x8] sm:$0x33 pattern:$0x76325410] %v498_v5  ;;  %v467_v20 = vrot.slane %v459_v12, %v1377_v57  ;;  %v474_v37 = vrot.slane %v460_v13, %v1377_v57  ;;  %v523_v38 = vrot.slane %v515_v14, %v1377_v57  ;;  %v530_v39 = vrot.slane %v516_v15, %v1377_v57 }
  0xf4   : > { %1062 = vst.sshfl [vmem:[#allocation2 + $0x10] sm:$0x33 pattern:$0x76325410] %v459_v12  ;;  %486 = vst [vmem:[#allocation2 + $0x4] sm:$0xf] %v457_v16 }
  0xf5   : > { %1063 = vst.sshfl [vmem:[#allocation2 + $0x18] sm:$0x33 pattern:$0x76325410] %v460_v13  ;;  %488 = vst [vmem:[#allocation2 + $0xc] sm:$0xf] %v458_v17  ;;  %v475_v40 = vcombine.high %v467_v20, %v467_v20  ;;  %v476_v41 = vcombine.high %v474_v37, %v474_v37  ;;  %v531_v42 = vcombine.high %v523_v38, %v523_v38 }
  0xf6   : > { %1066 = vst.sshfl [vmem:[#allocation3 + $0x10] sm:$0x33 pattern:$0x76325410] %v515_v14  ;;  %542 = vst [vmem:[#allocation3 + $0x4] sm:$0xf] %v513_v18  ;;  %v532_v43 = vcombine.high %v530_v39, %v530_v39 }
  0xf7   : > { %1067 = vst.sshfl [vmem:[#allocation3 + $0x18] sm:$0x33 pattern:$0x76325410] %v516_v15  ;;  %544 = vst [vmem:[#allocation3 + $0xc] sm:$0xf] %v514_v19 }
  0xf8   : > { %490 = vst [vmem:[#allocation2 + $0x14] sm:$0xf] %v475_v40  ;;  %492 = vst [vmem:[#allocation2 + $0x1c] sm:$0xf] %v476_v41 }
  0xf9   : > { %546 = vst [vmem:[#allocation3 + $0x14] sm:$0xf] %v531_v42  ;;  %548 = vst [vmem:[#allocation3 + $0x1c] sm:$0xf] %v532_v43 }
  0xfa LB: >> { %v1071_v44 = vcombine.high %v1297_v21, %v1302_v22  ;;  %v1085_v45 = vcombine.high %v1337_v29, %v1342_v30  ;;  %v1070_v46 = vcombine.low %v1297_v21, %v1302_v22  ;;  %v1084_v47 = vcombine.low %v1337_v29, %v1342_v30  ;;  %v1081_v52 = vld.sshfl [vmem:[#allocation7] sm:$0x3 pattern:$0x76325410]  ;;  %s1192_s24 = smov 64   ;;  %s576_s25 = ssub.s32 7, %s1186_s23  ;;  %s1186_s23 = sphi %s1387_s23, %s575_s23  }
  0xfb   : >> { %v1073_v48 = vcombine.high %v1307_v23, %v1312_v24  ;;  %v1087_v49 = vcombine.high %v1347_v31, %v1352_v32  ;;  %v1072_v50 = vcombine.low %v1307_v23, %v1312_v24  ;;  %v1086_v51 = vcombine.low %v1347_v31, %v1352_v32  ;;  %708 = vrot.lane.b32.xlu0 %v1081_v52, %s1192_s24  ;;  %v1095_v59 = vld.sshfl [vmem:[#allocation9] sm:$0x3 pattern:$0x76325410]  ;;  %v581_v0 = vld [vmem:[#allocation6] sm:$0x3] }
  0xfc   : >> { %626 = vmatprep.subr.bf16.mxu0 %v1071_v44  ;;  %788 = vmatprep.subr.bf16.mxu1 %v1085_v45  ;;  %v1075_v53 = vcombine.high %v1317_v25, %v1322_v26  ;;  %v1089_v54 = vcombine.high %v1357_v33, %v1362_v34  ;;  %v1191_v55 = vmov 0   ;;  %v1074_v56 = vcombine.low %v1317_v25, %v1322_v26  ;;  %v743_v1 = vld [vmem:[#allocation8] sm:$0x3]  ;;  %s1100_s26 = sshll.u32 %s1186_s23, 2  ;;  %s1101_s27 = sshll.u32 %s576_s25, 2 }
  0xfd   : >> { %627 = vmatpush1.bf16.msra.mxu0 %v1070_v46  ;;  %789 = vmatpush1.bf16.msra.mxu1 %v1084_v47  ;;  %v1088_v58 = vcombine.low %v1357_v33, %v1362_v34  ;;  %v1077_v60 = vcombine.high %v1327_v27, %v1332_v28  ;;  %v1091_v61 = vcombine.high %v1367_v35, %v1372_v36  ;;  %s579_s28 = scalar_lea.vmem [#allocation2], %s1100_s26  ;;  %s741_s29 = scalar_lea.vmem [#allocation3], %s1101_s27 }
  0xfe   : >> { %628 = vmatprep.subr.bf16.mxu0 %v1073_v48  ;;  %790 = vmatprep.subr.bf16.mxu1 %v1087_v49  ;;  %v1076_v62 = vcombine.low %v1327_v27, %v1332_v28  ;;  %v1090_v63 = vcombine.low %v1367_v35, %v1372_v36  ;;  %v582_v2 = vpack.c.bf16 %v581_v0, %v581_v0  ;;  %s1068_s30 = sshll.u32 %s1186_s23, 1  ;;  %s1082_s6 = sshll.u32 %s576_s25, 1 }
  0xff   : >> { %658 = vmatprep.mubr.bf16.mxu0 %v1191_v55  ;;  %820 = vmatprep.mubr.bf16.mxu1 %v1191_v55  ;;  %v744_v3 = vpack.c.bf16 %v743_v1, %v743_v1  ;;  %v580_v12 = vld [vmem:[%s579_s28] sm:$0xf]  ;;  %s737_s7 = scalar_lea.vmem [#allocation4], %s1068_s30  ;;  %s899_s8 = scalar_lea.vmem [#allocation5], %s1082_s6 }
 0x100   : >> { %870 = vrot.lane.b32.xlu0 %v1095_v59, %s1192_s24  ;;  %v742_v13 = vld [vmem:[%s741_s29] sm:$0xf]  ;;  %s575_s23 = sadd.s32 1, %s1186_s23  }
 0x101   : >> { %629 = vmatpush1.bf16.msra.mxu0 %v1072_v50  ;;  %791 = vmatpush1.bf16.msra.mxu1 %v1086_v51  ;;  %p572_p4 = scmp.ge.s32.totalorder %s575_s23, 8  }
 0x102   : >> { %630 = vmatprep.subr.bf16.mxu0 %v1075_v53  ;;  %792 = vmatprep.subr.bf16.mxu1 %v1089_v54  ;;  %s1193_s10 = smov (%p572_p4), 64  }
 0x105   : >> { %631 = vmatpush1.bf16.msra.mxu0 %v1074_v56  ;;  %793 = vmatpush1.bf16.msra.mxu1 %v1088_v58 }
 0x106   : >> { %632 = vmatprep.subr.bf16.mxu0 %v1077_v60  ;;  %794 = vmatprep.subr.bf16.mxu1 %v1091_v61 }
 0x109   : >> { %633 = vmatpush1.bf16.msra.mxu0 %v1076_v62  ;;  %795 = vmatpush1.bf16.msra.mxu1 %v1090_v63 }
 0x10c   : >> { %1078 = vmatmul.mubr.msk.bf16.vlgmr.msra.gmra.mrb[0].mxu0 %vm347_vm0, %v582_v2  ;;  %1092 = vmatmul.mubr.msk.bf16.vlgmr.msra.gmra.mrb[0].mxu1 %vm347_vm0, %v744_v3 }
 0x16d   : >> { %v709_v50 = vpop.permute.xlu0 %708 }
 0x172   : >> { %v871_v52 = vpop.permute.xlu0 %870 }
 0x1df   : >> { %v660_v4 = vpop.f32.mrb[0].mxu0  ;;  %v822_v5 = vpop.f32.mrb[0].mxu1 }
 0x1e0   : >> { %v662_v6 = vpop.f32.mrb[1].mxu0  ;;  %v824_v7 = vpop.f32.mrb[1].mxu1 }
 0x1e1   : >> { %v669_v8 = vcombine.low %v660_v4, %v662_v6  ;;  %v831_v9 = vcombine.low %v822_v5, %v824_v7  ;;  %v664_v10 = vpop.f32.mrb[2].mxu0  ;;  %v826_v11 = vpop.f32.mrb[2].mxu1 }
 0x1e2   : >> { %v665_v14 = vpop.f32.mrb[3].mxu0  ;;  %v827_v15 = vpop.f32.mrb[3].mxu1 }
 0x1e3   : >> { %v676_v16 = vrot.slane %v669_v8, %v1377_v57  ;;  %v838_v17 = vrot.slane %v831_v9, %v1377_v57 }
 0x1e5   : >> { %v678_v18 = vadd.f32 %v676_v16, %v580_v12  ;;  %v840_v19 = vadd.f32 %v838_v17, %v742_v13 }
 0x1e7   : >> { %v1079_v20 = vmul.f32 -1.442695, %v678_v18  ;;  %v1093_v37 = vmul.f32 -1.442695, %v840_v19  ;;  %690 = vrot.lane.b32.xlu0 %v678_v18, %s1192_s24  ;;  %v687_v38 = vrot.slane %v678_v18, 2  ;;  %v849_v43 = vrot.slane %v840_v19, 2 }
 0x1e9   : >> { %1148 = vpow2.f32 %v1079_v20 }
 0x1ea   : >> { %1150 = vpow2.f32 %v1093_v37 }
 0x1eb   : >> { %1152 = vtanh.f32 %v687_v38 }
 0x1f3   : >> { %v1149_v39 = vpop.eup %1148 }
 0x1f4   : >> { %v683_v40 = vadd.f32 1.0, %v1149_v39  ;;  %v1151_v41 = vpop.eup %1150 }
 0x1f5   : >> { %v845_v42 = vadd.f32 1.0, %v1151_v41  ;;  %v1153_v44 = vpop.eup %1152 }
 0x1f6   : >> { %1154 = vrcp.f32 %v683_v40 }
 0x1f7   : >> { %1156 = vrcp.f32 %v845_v42 }
 0x1f8   : >> { %1158 = vtanh.f32 %v849_v43 }
 0x200   : >> { %v1155_v45 = vpop.eup %1154 }
 0x201   : >> { %v712_v46 = vmul.f32 %v1155_v45, %v1153_v44  ;;  %v1157_v47 = vpop.eup %1156  ;;  %v711_v51 = vmul.f32 %v1155_v45, %v709_v50 }
 0x202   : >> { %v1159_v48 = vpop.eup %1158  ;;  %v873_v55 = vmul.f32 %v1157_v47, %v871_v52 }
 0x203   : >> { %714 = vrot.lane.b32.xlu1 %v712_v46, %s1192_s24  ;;  %v874_v49 = vmul.f32 %v1159_v48, %v1157_v47 }
 0x207   : >> { %876 = vrot.lane.b32.xlu1 %v874_v49, %s1192_s24 }
 0x20b   : >> { %852 = vrot.lane.b32.xlu1 %v840_v19, %s1192_s24 }
 0x259   : >> { %v691_v63 = vpop.permute.xlu0 %690 }
 0x25a   : >> { %v692_v0 = vrot.slane %v691_v63, 2 }
 0x25c   : >> { %v1080_v2 = vmul.f32 -1.442695, %v692_v0 }
 0x275   : >> { %v715_v53 = vpop.permute.xlu1 %714 }
 0x276   : >> { %v717_v54 = vadd.f32 %v715_v53, %v711_v51 }
 0x278   : >> { %1160 = vtanh.f32 %v717_v54  ;;  %v732_v60 = vrot.slane %v717_v54, %v1377_v57 }
 0x279   : >> { %v877_v56 = vpop.permute.xlu1 %876 }
 0x27a   : >> { %v879_v58 = vadd.f32 %v877_v56, %v873_v55 }
 0x27c   : >> { %1162 = vtanh.f32 %v879_v58  ;;  %v894_v62 = vrot.slane %v879_v58, %v1377_v57 }
 0x27d   : >> { %v853_v1 = vpop.permute.xlu1 %852  ;;  %1164 = vpow2.f32 %v1080_v2 }
 0x27e   : >> { %v854_v3 = vrot.slane %v853_v1, 2 }
 0x280   : >> { %v1094_v4 = vmul.f32 -1.442695, %v854_v3 }
 0x282   : >> { %v1161_v59 = vpop.eup %1160  ;;  %1166 = vpow2.f32 %v1094_v4 }
 0x283   : >> { %720 = vrot.lane.b32.xlu0 %v1161_v59, %s1192_s24 }
 0x286   : >> { %v1163_v61 = vpop.eup %1162 }
 0x287   : >> { %733 = vrot.lane.b32.xlu0 %v732_v60, %s1192_s24  ;;  %882 = vrot.lane.b32.xlu1 %v1163_v61, %s1192_s24  ;;  %v1165_v5 = vpop.eup %1164 }
 0x288   : >> { %v697_v6 = vadd.f32 1.0, %v1165_v5 }
 0x28a   : >> { %1168 = vrcp.f32 %v697_v6 }
 0x28b   : >> { %895 = vrot.lane.b32.xlu1 %v894_v62, %s1192_s24 }
 0x28c   : >> { %v1167_v7 = vpop.eup %1166 }
 0x28d   : >> { %v859_v8 = vadd.f32 1.0, %v1167_v7 }
 0x28f   : >> { %1170 = vrcp.f32 %v859_v8 }
 0x294   : >> { %v1169_v9 = vpop.eup %1168 }
 0x299   : >> { %v1171_v12 = vpop.eup %1170 }
 0x2f5   : >> { %v721_v10 = vpop.permute.xlu0 %720 }
 0x2f6   : >> { %v723_v11 = vmul.f32 %v1169_v9, %v721_v10 }
 0x2f8   : >> { %724 = vst.msk [vmem:[#allocation6] sm:$0x3] %vm549_vm1, %v723_v11  ;;  %738 = vst.msk [vmem:[%s737_s7] sm:$0x3] %vm549_vm1, %v723_v11 }
 0x2f9   : >> { %v734_v13 = vpop.permute.xlu0 %733  ;;  %v883_v14 = vpop.permute.xlu1 %882 }
 0x2fa   : >> { %736 = vst.msk [vmem:[#allocation7] sm:$0x3] %vm549_vm1, %v734_v13  ;;  %v885_v15 = vmul.f32 %v1171_v12, %v883_v14 }
 0x2fc   : >> { %886 = vst.msk [vmem:[#allocation8] sm:$0x3] %vm549_vm1, %v885_v15  ;;  %900 = vst.msk [vmem:[%s899_s8] sm:$0x3] %vm549_vm1, %v885_v15  ;;  %574 = sbr.rel (!%p572_p4) target bundleno = 250 (0xfa), region = 81 }
 0x2fd   : >> { %v896_v16 = vpop.permute.xlu1 %895 }
 0x2fe   : >> { %898 = vst.msk [vmem:[#allocation9] sm:$0x3] %vm549_vm1, %v896_v16 }
 0x2ff   : > { %v903_v21 = vld [vmem:[#allocation4 + $0x4] sm:$0x3] (%p572_p4)  ;;  %v901_v22 = vld [vmem:[#allocation4] sm:$0x3] (%p572_p4)  ;;  %v904_v27 = vld [vmem:[#allocation4 + $0x6] sm:$0x3] (%p572_p4) }
 0x300   : > { %v902_v28 = vld [vmem:[#allocation4 + $0x2] sm:$0x3] (%p572_p4)  ;;  %v906_v33 = vld [vmem:[#allocation4 + $0xa] sm:$0x3] (%p572_p4)  ;;  %v905_v34 = vld [vmem:[#allocation4 + $0x8] sm:$0x3] (%p572_p4) }
 0x301   : > { %v908_v42 = vld [vmem:[#allocation4 + $0xe] sm:$0x3] (%p572_p4)  ;;  %v907_v43 = vld [vmem:[#allocation4 + $0xc] sm:$0x3] (%p572_p4) }
 0x303   : > { %v911_v17 = vld [vmem:[#allocation5 + $0x4] sm:$0x3]  ;;  %v909_v18 = vld [vmem:[#allocation5] sm:$0x3]  ;;  %v912_v19 = vld [vmem:[#allocation5 + $0x6] sm:$0x3] }
 0x304   : > { %929 = vrot.lane.b32.xlu1 %v911_v17, %s1193_s10  ;;  %925 = vrot.lane.b32.xlu0 %v909_v18, %s1193_s10  ;;  %v910_v20 = vld [vmem:[#allocation5 + $0x2] sm:$0x3]  ;;  %v914_v37 = vld [vmem:[#allocation5 + $0xa] sm:$0x3]  ;;  %v913_v38 = vld [vmem:[#allocation5 + $0x8] sm:$0x3] }
 0x305   : > { %v916_v39 = vld [vmem:[#allocation5 + $0xe] sm:$0x3]  ;;  %v915_v40 = vld [vmem:[#allocation5 + $0xc] sm:$0x3] }
 0x308   : > { %931 = vrot.lane.b32.xlu1 %v912_v19, %s1193_s10  ;;  %927 = vrot.lane.b32.xlu0 %v910_v20, %s1193_s10 }
 0x30c   : > { %935 = vrot.lane.b32.xlu1 %v914_v37, %s1193_s10  ;;  %933 = vrot.lane.b32.xlu0 %v913_v38, %s1193_s10 }
 0x310   : > { %939 = vrot.lane.b32.xlu1 %v916_v39, %s1193_s10  ;;  %937 = vrot.lane.b32.xlu0 %v915_v40, %s1193_s10 }
 0x376   : > { %v930_v23 = vpop.permute.xlu1 %929  ;;  %v926_v24 = vpop.permute.xlu0 %925 }
 0x377   : > { %v951_v25 = vsel %vm347_vm0, %v903_v21, %v930_v23  ;;  %v949_v26 = vsel %vm347_vm0, %v901_v22, %v926_v24 }
 0x378   : > { %959 = vst [vmem:[%s1259_s14 + $0x4] sm:$0x3] %v951_v25  ;;  %957 = vst [vmem:[%s1259_s14] sm:$0x3] %v949_v26 }
 0x37a   : > { %v932_v29 = vpop.permute.xlu1 %931  ;;  %v928_v30 = vpop.permute.xlu0 %927 }
 0x37b   : > { %v952_v31 = vsel %vm347_vm0, %v904_v27, %v932_v29  ;;  %v950_v32 = vsel %vm347_vm0, %v902_v28, %v928_v30 }
 0x37c   : > { %960 = vst [vmem:[%s1259_s14 + $0x6] sm:$0x3] %v952_v31  ;;  %958 = vst [vmem:[%s1259_s14 + $0x2] sm:$0x3] %v950_v32 }
 0x37e   : > { %v936_v35 = vpop.permute.xlu1 %935  ;;  %v934_v36 = vpop.permute.xlu0 %933 }
 0x37f   : > { %v954_v57 = vsel %vm347_vm0, %v906_v33, %v936_v35  ;;  %v953_v41 = vsel %vm347_vm0, %v905_v34, %v934_v36 }
 0x380   : > { %962 = vst [vmem:[%s1259_s14 + $0xa] sm:$0x3] %v954_v57  ;;  %961 = vst [vmem:[%s1259_s14 + $0x8] sm:$0x3] %v953_v41 }
 0x382   : > { %v940_v44 = vpop.permute.xlu1 %939  ;;  %v938_v45 = vpop.permute.xlu0 %937 }
 0x383   : > { %v956_v46 = vsel %vm347_vm0, %v908_v42, %v940_v44  ;;  %v955_v47 = vsel %vm347_vm0, %v907_v43, %v938_v45 }
 0x384   : > { %964 = vst [vmem:[%s1259_s14 + $0xe] sm:$0x3] %v956_v46  ;;  %963 = vst [vmem:[%s1259_s14 + $0xc] sm:$0x3] %v955_v47 }
 0x385 PF: > { %s15_s18 = sadd.s32 1, %s1182_s18  }
 0x386   : > { %p12_p5 = scmp.ge.s32.totalorder %s15_s18, 4  }
 0x388   :  { %14 = sbr.rel (!%p12_p5) target bundleno = 1 (0x1), region = 92 }

// kernel: esim_forward.5
= control target key start
LH: loop header
LB: loop body
LE: loop exit
PB: predicated region body
PF: predicated region fallthrough
CT: control target
= control target key end

     0   :  { %16 = vsyncpa [#allocation11], 0  ;;  %vm1130_vm0 = vcmask 519168   ;;  %s3563_s0 = inlined_call_operand.vmem [shape: f32[32,512], index: 0, kind: input, shape index: {}]   ;;  %s3564_s1 = inlined_call_operand.vmem [shape: bf16[512,512], index: 1, kind: input, shape index: {}]   ;;  %s3565_s2 = inlined_call_operand.vmem [shape: bf16[64,256], index: 2, kind: input, shape index: {}]   ;;  %s3566_s3 = inlined_call_operand.vmem [shape: bf16[64,256], index: 3, kind: input, shape index: {}]   ;;  %s3567_s4 = inlined_call_operand.vmem [shape: f32[1,512], index: 4, kind: input, shape index: {}]   ;;  %s3568_s5 = inlined_call_operand.vmem [shape: f32[512,64], index: 5, kind: input, shape index: {}]   ;;  %s3569_s6 = inlined_call_operand.vmem [shape: f32[1,64], index: 6, kind: input, shape index: {}]   ;;  %s3570_s7 = inlined_call_operand.vmem [shape: f32[64,32], index: 7, kind: input, shape index: {}]   ;;  %s3571_s8 = inlined_call_operand.vmem [shape: f32[1,32], index: 8, kind: input, shape index: {}]   ;;  %s3572_s9 = inlined_call_operand.vmem [shape: f32[32,3], index: 9, kind: input, shape index: {}]   ;;  %s3573_s10 = inlined_call_operand.vmem [shape: f32[1,3], index: 10, kind: input, shape index: {}]   ;;  %s3574_s11 = inlined_call_operand.hbm [shape: f32[2,3], index: 11, kind: output, shape index: {}]  }
   0x1   :  { %v2358_v0 = vld [vmem:[%s3564_s1 + $0x4] ss:$16 sps:$4 sm:$0xff]   ;;  %v2360_v1 = vld [vmem:[%s3564_s1 + $0xc] ss:$16 sps:$4 sm:$0xff]   ;;  %v2362_v2 = vld [vmem:[%s3564_s1] ss:$16 sps:$4 sm:$0xff]  }
   0x2   :  { %v2363_v3 = vld [vmem:[%s3564_s1 + $0x8] ss:$16 sps:$4 sm:$0xff]   ;;  %854 = vmatprep.subr.bf16.mxu0 %v2358_v0  ;;  %v2364_v4 = vld [vmem:[%s3564_s1 + $0x24] ss:$16 sps:$4 sm:$0xff]   ;;  %960 = vmatprep.subr.bf16.mxu1 %v2360_v1  ;;  %v2366_v5 = vld [vmem:[%s3564_s1 + $0x2c] ss:$16 sps:$4 sm:$0xff]  }
   0x3   :  { %855 = vmatpush1.bf16.msra.mxu0 %v2362_v2  ;;  %961 = vmatpush1.bf16.msra.mxu1 %v2363_v3  ;;  %v2368_v6 = vld [vmem:[%s3564_s1 + $0x20] ss:$16 sps:$4 sm:$0xff]   ;;  %v2369_v7 = vld [vmem:[%s3564_s1 + $0x28] ss:$16 sps:$4 sm:$0xff]   ;;  %v2370_v8 = vld [vmem:[%s3564_s1 + $0x44] ss:$16 sps:$4 sm:$0xff]  }
   0x4   :  { %856 = vmatprep.subr.bf16.mxu0 %v2364_v4  ;;  %962 = vmatprep.subr.bf16.mxu1 %v2366_v5  ;;  %v2372_v9 = vld [vmem:[%s3564_s1 + $0x4c] ss:$16 sps:$4 sm:$0xff]   ;;  %v2374_v10 = vld [vmem:[%s3564_s1 + $0x40] ss:$16 sps:$4 sm:$0xff]   ;;  %v2375_v11 = vld [vmem:[%s3564_s1 + $0x48] ss:$16 sps:$4 sm:$0xff]  }
   0x5   :  { %v2376_v12 = vld [vmem:[%s3564_s1 + $0x64] ss:$16 sps:$4 sm:$0xff]   ;;  %v2378_v13 = vld [vmem:[%s3564_s1 + $0x6c] ss:$16 sps:$4 sm:$0xff]   ;;  %v2380_v14 = vld [vmem:[%s3564_s1 + $0x60] ss:$16 sps:$4 sm:$0xff]  }
   0x6   :  { %v2381_v15 = vld [vmem:[%s3564_s1 + $0x68] ss:$16 sps:$4 sm:$0xff]   ;;  %v2382_v16 = vld [vmem:[%s3564_s1 + $0x84] ss:$16 sps:$4 sm:$0xff]   ;;  %v2384_v17 = vld [vmem:[%s3564_s1 + $0x8c] ss:$16 sps:$4 sm:$0xff]  }
   0x7   :  { %857 = vmatpush1.bf16.msra.mxu0 %v2368_v6  ;;  %963 = vmatpush1.bf16.msra.mxu1 %v2369_v7  ;;  %v2386_v18 = vld [vmem:[%s3564_s1 + $0x80] ss:$16 sps:$4 sm:$0xff]   ;;  %v2387_v19 = vld [vmem:[%s3564_s1 + $0x88] ss:$16 sps:$4 sm:$0xff]   ;;  %v2388_v20 = vld [vmem:[%s3564_s1 + $0xa4] ss:$16 sps:$4 sm:$0xff]  }
   0x8   :  { %858 = vmatprep.subr.bf16.mxu0 %v2370_v8  ;;  %964 = vmatprep.subr.bf16.mxu1 %v2372_v9  ;;  %v2390_v21 = vld [vmem:[%s3564_s1 + $0xac] ss:$16 sps:$4 sm:$0xff]   ;;  %v2392_v22 = vld [vmem:[%s3564_s1 + $0xa0] ss:$16 sps:$4 sm:$0xff]   ;;  %v2393_v23 = vld [vmem:[%s3564_s1 + $0xa8] ss:$16 sps:$4 sm:$0xff]  }
   0x9   :  { %v2394_v24 = vld [vmem:[%s3564_s1 + $0xc4] ss:$16 sps:$4 sm:$0xff]   ;;  %v2396_v25 = vld [vmem:[%s3564_s1 + $0xcc] ss:$16 sps:$4 sm:$0xff]   ;;  %v2398_v26 = vld [vmem:[%s3564_s1 + $0xc0] ss:$16 sps:$4 sm:$0xff]  }
   0xa   :  { %v2399_v27 = vld [vmem:[%s3564_s1 + $0xc8] ss:$16 sps:$4 sm:$0xff]   ;;  %v2400_v28 = vld [vmem:[%s3564_s1 + $0xe4] ss:$16 sps:$4 sm:$0xff]   ;;  %v2402_v29 = vld [vmem:[%s3564_s1 + $0xec] ss:$16 sps:$4 sm:$0xff]  }
   0xb   :  { %859 = vmatpush1.bf16.msra.mxu0 %v2374_v10  ;;  %965 = vmatpush1.bf16.msra.mxu1 %v2375_v11  ;;  %v2404_v30 = vld [vmem:[%s3564_s1 + $0xe0] ss:$16 sps:$4 sm:$0xff]   ;;  %v2405_v31 = vld [vmem:[%s3564_s1 + $0xe8] ss:$16 sps:$4 sm:$0xff]   ;;  %v2406_v32 = vld [vmem:[%s3564_s1 + $0x104] ss:$16 sps:$4 sm:$0xff]  }
   0xc   :  { %860 = vmatprep.subr.bf16.mxu0 %v2376_v12  ;;  %966 = vmatprep.subr.bf16.mxu1 %v2378_v13  ;;  %v2408_v33 = vld [vmem:[%s3564_s1 + $0x10c] ss:$16 sps:$4 sm:$0xff]   ;;  %v2410_v34 = vld [vmem:[%s3564_s1 + $0x100] ss:$16 sps:$4 sm:$0xff]   ;;  %v2411_v35 = vld [vmem:[%s3564_s1 + $0x108] ss:$16 sps:$4 sm:$0xff]  }
   0xd   :  { %v2412_v36 = vld [vmem:[%s3564_s1 + $0x124] ss:$16 sps:$4 sm:$0xff]   ;;  %v2414_v37 = vld [vmem:[%s3564_s1 + $0x12c] ss:$16 sps:$4 sm:$0xff]   ;;  %v2416_v38 = vld [vmem:[%s3564_s1 + $0x120] ss:$16 sps:$4 sm:$0xff]  }
   0xe   :  { %v2417_v39 = vld [vmem:[%s3564_s1 + $0x128] ss:$16 sps:$4 sm:$0xff]   ;;  %v2418_v40 = vld [vmem:[%s3564_s1 + $0x144] ss:$16 sps:$4 sm:$0xff]   ;;  %v2420_v41 = vld [vmem:[%s3564_s1 + $0x14c] ss:$16 sps:$4 sm:$0xff]  }
   0xf   :  { %861 = vmatpush1.bf16.msra.mxu0 %v2380_v14  ;;  %967 = vmatpush1.bf16.msra.mxu1 %v2381_v15  ;;  %v2422_v42 = vld [vmem:[%s3564_s1 + $0x140] ss:$16 sps:$4 sm:$0xff]   ;;  %v2423_v43 = vld [vmem:[%s3564_s1 + $0x148] ss:$16 sps:$4 sm:$0xff]   ;;  %v2424_v44 = vld [vmem:[%s3564_s1 + $0x164] ss:$16 sps:$4 sm:$0xff]  }
  0x10   :  { %862 = vmatprep.subr.bf16.mxu0 %v2382_v16  ;;  %968 = vmatprep.subr.bf16.mxu1 %v2384_v17  ;;  %v2426_v45 = vld [vmem:[%s3564_s1 + $0x16c] ss:$16 sps:$4 sm:$0xff]   ;;  %v2428_v48 = vld [vmem:[%s3564_s1 + $0x160] ss:$16 sps:$4 sm:$0xff]   ;;  %v2429_v49 = vld [vmem:[%s3564_s1 + $0x168] ss:$16 sps:$4 sm:$0xff]  }
  0x11   :  { %v41_v46 = vld [vmem:[%s3563_s0 + $0x8] sm:$0xff]  ;;  %v2430_v51 = vld [vmem:[%s3564_s1 + $0x184] ss:$16 sps:$4 sm:$0xff]   ;;  %v2434_v53 = vld [vmem:[%s3564_s1 + $0x180] ss:$16 sps:$4 sm:$0xff]  }
  0x12   :  { %v45_v47 = vld [vmem:[%s3563_s0 + $0x28] sm:$0xff]  ;;  %v2436_v55 = vld [vmem:[%s3564_s1 + $0x1a4] ss:$16 sps:$4 sm:$0xff]   ;;  %v2440_v57 = vld [vmem:[%s3564_s1 + $0x1a0] ss:$16 sps:$4 sm:$0xff]  }
  0x13   :  { %863 = vmatpush1.bf16.msra.mxu0 %v2386_v18  ;;  %969 = vmatpush1.bf16.msra.mxu1 %v2387_v19  ;;  %v57_v50 = vpack.c.bf16 %v45_v47, %v41_v46  ;;  %v2432_v52 = vld [vmem:[%s3564_s1 + $0x18c] ss:$16 sps:$4 sm:$0xff]   ;;  %v2435_v54 = vld [vmem:[%s3564_s1 + $0x188] ss:$16 sps:$4 sm:$0xff]   ;;  %v2442_v59 = vld [vmem:[%s3564_s1 + $0x1c4] ss:$16 sps:$4 sm:$0xff]  }
  0x14   :  { %864 = vmatprep.subr.bf16.mxu0 %v2388_v20  ;;  %970 = vmatprep.subr.bf16.mxu1 %v2390_v21  ;;  %v2438_v56 = vld [vmem:[%s3564_s1 + $0x1ac] ss:$16 sps:$4 sm:$0xff]   ;;  %v2441_v58 = vld [vmem:[%s3564_s1 + $0x1a8] ss:$16 sps:$4 sm:$0xff]   ;;  %v2446_v61 = vld [vmem:[%s3564_s1 + $0x1c0] ss:$16 sps:$4 sm:$0xff]  }
  0x15   :  { %886 = vmatprep.mubr.bf16.mxu0 %v57_v50  ;;  %992 = vmatprep.mubr.bf16.mxu1 %v57_v50  ;;  %v2444_v60 = vld [vmem:[%s3564_s1 + $0x1cc] ss:$16 sps:$4 sm:$0xff]   ;;  %v2447_v62 = vld [vmem:[%s3564_s1 + $0x1c8] ss:$16 sps:$4 sm:$0xff]   ;;  %v2448_v63 = vld [vmem:[%s3564_s1 + $0x1e4] ss:$16 sps:$4 sm:$0xff]  }
  0x16   :  { %v2450_v0 = vld [vmem:[%s3564_s1 + $0x1ec] ss:$16 sps:$4 sm:$0xff]   ;;  %v2452_v1 = vld [vmem:[%s3564_s1 + $0x1e0] ss:$16 sps:$4 sm:$0xff]   ;;  %v2453_v4 = vld [vmem:[%s3564_s1 + $0x1e8] ss:$16 sps:$4 sm:$0xff]  }
  0x17   :  { %865 = vmatpush1.bf16.msra.mxu0 %v2392_v22  ;;  %971 = vmatpush1.bf16.msra.mxu1 %v2393_v23  ;;  %v40_v2 = vld [vmem:[%s3563_s0] sm:$0xff]  ;;  %v2459_v6 = vld [vmem:[%s3564_s1 + $0x20c] ss:$16 sps:$4 sm:$0xff]   ;;  %v2457_v9 = vld [vmem:[%s3564_s1 + $0x208] ss:$16 sps:$4 sm:$0xff]  }
  0x18   :  { %866 = vmatprep.subr.bf16.mxu0 %v2394_v24  ;;  %972 = vmatprep.subr.bf16.mxu1 %v2396_v25  ;;  %v44_v3 = vld [vmem:[%s3563_s0 + $0x20] sm:$0xff]  ;;  %v2465_v11 = vld [vmem:[%s3564_s1 + $0x22c] ss:$16 sps:$4 sm:$0xff]   ;;  %v2463_v13 = vld [vmem:[%s3564_s1 + $0x228] ss:$16 sps:$4 sm:$0xff]  }
  0x19   :  { %v2456_v5 = vld [vmem:[%s3564_s1 + $0x204] ss:$16 sps:$4 sm:$0xff]   ;;  %v56_v7 = vpack.c.bf16 %v44_v3, %v40_v2  ;;  %v2454_v8 = vld [vmem:[%s3564_s1 + $0x200] ss:$16 sps:$4 sm:$0xff]   ;;  %v2471_v15 = vld [vmem:[%s3564_s1 + $0x24c] ss:$16 sps:$4 sm:$0xff]  }
  0x1a   :  { %v2462_v10 = vld [vmem:[%s3564_s1 + $0x224] ss:$16 sps:$4 sm:$0xff]   ;;  %v2460_v12 = vld [vmem:[%s3564_s1 + $0x220] ss:$16 sps:$4 sm:$0xff]   ;;  %v2469_v17 = vld [vmem:[%s3564_s1 + $0x248] ss:$16 sps:$4 sm:$0xff]  }
  0x1b   :  { %867 = vmatpush1.bf16.msra.mxu0 %v2398_v26  ;;  %973 = vmatpush1.bf16.msra.mxu1 %v2399_v27  ;;  %v2468_v14 = vld [vmem:[%s3564_s1 + $0x244] ss:$16 sps:$4 sm:$0xff]   ;;  %v2466_v16 = vld [vmem:[%s3564_s1 + $0x240] ss:$16 sps:$4 sm:$0xff]   ;;  %v2477_v19 = vld [vmem:[%s3564_s1 + $0x26c] ss:$16 sps:$4 sm:$0xff]  }
  0x1c   :  { %868 = vmatprep.subr.bf16.mxu0 %v2400_v28  ;;  %974 = vmatprep.subr.bf16.mxu1 %v2402_v29  ;;  %v2474_v18 = vld [vmem:[%s3564_s1 + $0x264] ss:$16 sps:$4 sm:$0xff]   ;;  %v2472_v20 = vld [vmem:[%s3564_s1 + $0x260] ss:$16 sps:$4 sm:$0xff]   ;;  %v2475_v21 = vld [vmem:[%s3564_s1 + $0x268] ss:$16 sps:$4 sm:$0xff]  }
  0x1d   :  { %v2480_v22 = vld [vmem:[%s3564_s1 + $0x284] ss:$16 sps:$4 sm:$0xff]   ;;  %v2483_v23 = vld [vmem:[%s3564_s1 + $0x28c] ss:$16 sps:$4 sm:$0xff]   ;;  %v2478_v24 = vld [vmem:[%s3564_s1 + $0x280] ss:$16 sps:$4 sm:$0xff]  }
  0x1e   :  { %v2481_v25 = vld [vmem:[%s3564_s1 + $0x288] ss:$16 sps:$4 sm:$0xff]   ;;  %v2486_v26 = vld [vmem:[%s3564_s1 + $0x2a4] ss:$16 sps:$4 sm:$0xff]   ;;  %v2489_v27 = vld [vmem:[%s3564_s1 + $0x2ac] ss:$16 sps:$4 sm:$0xff]  }
  0x1f   :  { %869 = vmatpush1.bf16.msra.mxu0 %v2404_v30  ;;  %975 = vmatpush1.bf16.msra.mxu1 %v2405_v31  ;;  %v49_v28 = vld [vmem:[%s3563_s0 + $0x48] sm:$0xff]  ;;  %v48_v30 = vld [vmem:[%s3563_s0 + $0x40] sm:$0xff] }
  0x20   :  { %870 = vmatprep.subr.bf16.mxu0 %v2406_v32  ;;  %976 = vmatprep.subr.bf16.mxu1 %v2408_v33  ;;  %v53_v29 = vld [vmem:[%s3563_s0 + $0x68] sm:$0xff]  ;;  %v52_v31 = vld [vmem:[%s3563_s0 + $0x60] sm:$0xff] }
  0x21   :  { %v61_v32 = vpack.c.bf16 %v53_v29, %v49_v28  ;;  %v60_v33 = vpack.c.bf16 %v52_v31, %v48_v30  ;;  %v2499_v46 = vld [vmem:[%s3564_s1 + $0x2e8] ss:$16 sps:$4 sm:$0xff]   ;;  %v2504_v47 = vld [vmem:[%s3564_s1 + $0x304] ss:$16 sps:$4 sm:$0xff]  }
  0x22   :  { %v2505_v50 = vld [vmem:[%s3564_s1 + $0x308] ss:$16 sps:$4 sm:$0xff]   ;;  %v2534_v3 = vld [vmem:[%s3564_s1 + $0x3a4] ss:$16 sps:$4 sm:$0xff]  }
  0x23   :  { %871 = vmatpush1.bf16.msra.mxu0 %v2410_v34  ;;  %977 = vmatpush1.bf16.msra.mxu1 %v2411_v35  ;;  %v2484_v34 = vld [vmem:[%s3564_s1 + $0x2a0] ss:$16 sps:$4 sm:$0xff]   ;;  %v2487_v35 = vld [vmem:[%s3564_s1 + $0x2a8] ss:$16 sps:$4 sm:$0xff]  }
  0x24   :  { %872 = vmatprep.subr.bf16.mxu0 %v2412_v36  ;;  %978 = vmatprep.subr.bf16.mxu1 %v2414_v37  ;;  %v2492_v36 = vld [vmem:[%s3564_s1 + $0x2c4] ss:$16 sps:$4 sm:$0xff]   ;;  %v2495_v37 = vld [vmem:[%s3564_s1 + $0x2cc] ss:$16 sps:$4 sm:$0xff]   ;;  %v2529_v2 = vld [vmem:[%s3564_s1 + $0x388] ss:$16 sps:$4 sm:$0xff]  }
  0x25   :  { %v3131_v28 = vld [vmem:[%s3565_s2 + $0x18] sm:$0xff]  ;;  %v3136_v29 = vld [vmem:[%s3565_s2 + $0x20] sm:$0xff]  ;;  %v3141_v30 = vld [vmem:[%s3565_s2 + $0x28] sm:$0xff] }
  0x26   :  { %v3146_v31 = vld [vmem:[%s3565_s2 + $0x30] sm:$0xff] }
  0x27   :  { %873 = vmatpush1.bf16.msra.mxu0 %v2416_v38  ;;  %979 = vmatpush1.bf16.msra.mxu1 %v2417_v39  ;;  %v2490_v38 = vld [vmem:[%s3564_s1 + $0x2c0] ss:$16 sps:$4 sm:$0xff]   ;;  %v43_v39 = vld [vmem:[%s3563_s0 + $0x18] sm:$0xff] }
  0x28   :  { %874 = vmatprep.subr.bf16.mxu0 %v2418_v40  ;;  %980 = vmatprep.subr.bf16.mxu1 %v2420_v41  ;;  %v47_v40 = vld [vmem:[%s3563_s0 + $0x38] sm:$0xff] }
  0x29   :  { %v2493_v41 = vld [vmem:[%s3564_s1 + $0x2c8] ss:$16 sps:$4 sm:$0xff]  }
  0x2b   :  { %875 = vmatpush1.bf16.msra.mxu0 %v2422_v42  ;;  %981 = vmatpush1.bf16.msra.mxu1 %v2423_v43  ;;  %v2498_v42 = vld [vmem:[%s3564_s1 + $0x2e4] ss:$16 sps:$4 sm:$0xff]   ;;  %v59_v43 = vpack.c.bf16 %v47_v40, %v43_v39  ;;  %v3191_v40 = vld [vmem:[%s3566_s3 + $0x38] sm:$0xff] }
  0x2c   :  { %876 = vmatprep.subr.bf16.mxu0 %v2424_v44  ;;  %982 = vmatprep.subr.bf16.mxu1 %v2426_v45  ;;  %v2501_v44 = vld [vmem:[%s3564_s1 + $0x2ec] ss:$16 sps:$4 sm:$0xff]   ;;  %v2496_v45 = vld [vmem:[%s3564_s1 + $0x2e0] ss:$16 sps:$4 sm:$0xff]  }
  0x2d   :  { %v3186_v39 = vld [vmem:[%s3566_s3 + $0x30] sm:$0xff] }
  0x2f   :  { %877 = vmatpush1.bf16.msra.mxu0 %v2428_v48  ;;  %983 = vmatpush1.bf16.msra.mxu1 %v2429_v49  ;;  %v2507_v48 = vld [vmem:[%s3564_s1 + $0x30c] ss:$16 sps:$4 sm:$0xff]   ;;  %v2502_v49 = vld [vmem:[%s3564_s1 + $0x300] ss:$16 sps:$4 sm:$0xff]  }
  0x30   :  { %878 = vmatprep.subr.bf16.mxu0 %v2430_v51  ;;  %984 = vmatprep.subr.bf16.mxu1 %v2432_v52  ;;  %v2510_v51 = vld [vmem:[%s3564_s1 + $0x324] ss:$16 sps:$4 sm:$0xff]   ;;  %v2513_v52 = vld [vmem:[%s3564_s1 + $0x32c] ss:$16 sps:$4 sm:$0xff]  }
  0x33   :  { %879 = vmatpush1.bf16.msra.mxu0 %v2434_v53  ;;  %985 = vmatpush1.bf16.msra.mxu1 %v2435_v54  ;;  %v2508_v53 = vld [vmem:[%s3564_s1 + $0x320] ss:$16 sps:$4 sm:$0xff]   ;;  %v2511_v54 = vld [vmem:[%s3564_s1 + $0x328] ss:$16 sps:$4 sm:$0xff]  }
  0x34   :  { %880 = vmatprep.subr.bf16.mxu0 %v2436_v55  ;;  %986 = vmatprep.subr.bf16.mxu1 %v2438_v56  ;;  %v2516_v55 = vld [vmem:[%s3564_s1 + $0x344] ss:$16 sps:$4 sm:$0xff]   ;;  %v2519_v56 = vld [vmem:[%s3564_s1 + $0x34c] ss:$16 sps:$4 sm:$0xff]  }
  0x37   :  { %881 = vmatpush1.bf16.msra.mxu0 %v2440_v57  ;;  %987 = vmatpush1.bf16.msra.mxu1 %v2441_v58  ;;  %v2514_v57 = vld [vmem:[%s3564_s1 + $0x340] ss:$16 sps:$4 sm:$0xff]   ;;  %v2517_v58 = vld [vmem:[%s3564_s1 + $0x348] ss:$16 sps:$4 sm:$0xff]  }
  0x38   :  { %882 = vmatprep.subr.bf16.mxu0 %v2442_v59  ;;  %988 = vmatprep.subr.bf16.mxu1 %v2444_v60  ;;  %v2522_v59 = vld [vmem:[%s3564_s1 + $0x364] ss:$16 sps:$4 sm:$0xff]   ;;  %v2525_v60 = vld [vmem:[%s3564_s1 + $0x36c] ss:$16 sps:$4 sm:$0xff]  }
  0x3b   :  { %883 = vmatpush1.bf16.msra.mxu0 %v2446_v61  ;;  %989 = vmatpush1.bf16.msra.mxu1 %v2447_v62  ;;  %v2520_v61 = vld [vmem:[%s3564_s1 + $0x360] ss:$16 sps:$4 sm:$0xff]   ;;  %v2523_v62 = vld [vmem:[%s3564_s1 + $0x368] ss:$16 sps:$4 sm:$0xff]  }
  0x3c   :  { %884 = vmatprep.subr.bf16.mxu0 %v2448_v63  ;;  %990 = vmatprep.subr.bf16.mxu1 %v2450_v0  ;;  %v2528_v63 = vld [vmem:[%s3564_s1 + $0x384] ss:$16 sps:$4 sm:$0xff]   ;;  %v2531_v0 = vld [vmem:[%s3564_s1 + $0x38c] ss:$16 sps:$4 sm:$0xff]  }
  0x3f   :  { %885 = vmatpush1.bf16.msra.mxu0 %v2452_v1  ;;  %991 = vmatpush1.bf16.msra.mxu1 %v2453_v4  ;;  %v2526_v1 = vld [vmem:[%s3564_s1 + $0x380] ss:$16 sps:$4 sm:$0xff]   ;;  %v2537_v4 = vld [vmem:[%s3564_s1 + $0x3ac] ss:$16 sps:$4 sm:$0xff]  }
  0x40   :  { %907 = vmatprep.subr.bf16.mxu0 %v2456_v5  ;;  %1013 = vmatprep.subr.bf16.mxu1 %v2459_v6  ;;  %v2532_v5 = vld [vmem:[%s3564_s1 + $0x3a0] ss:$16 sps:$4 sm:$0xff]   ;;  %v2535_v6 = vld [vmem:[%s3564_s1 + $0x3a8] ss:$16 sps:$4 sm:$0xff]  }
  0x42   :  { %887 = vmatmul.mubr.bf16.vlgmr.msra.gmra.mrb[0].mxu0 %v56_v7  ;;  %993 = vmatmul.mubr.bf16.vlgmr.msra.gmra.mrb[0].mxu1 %v56_v7  ;;  %v2540_v7 = vld [vmem:[%s3564_s1 + $0x3c4] ss:$16 sps:$4 sm:$0xff]  }
  0x43   :  { %908 = vmatpush1.bf16.msra.mxu0 %v2454_v8  ;;  %1014 = vmatpush1.bf16.msra.mxu1 %v2457_v9  ;;  %v2543_v8 = vld [vmem:[%s3564_s1 + $0x3cc] ss:$16 sps:$4 sm:$0xff]   ;;  %v2538_v9 = vld [vmem:[%s3564_s1 + $0x3c0] ss:$16 sps:$4 sm:$0xff]  }
  0x44   :  { %909 = vmatprep.subr.bf16.mxu0 %v2462_v10  ;;  %1015 = vmatprep.subr.bf16.mxu1 %v2465_v11  ;;  %v2541_v10 = vld [vmem:[%s3564_s1 + $0x3c8] ss:$16 sps:$4 sm:$0xff]   ;;  %v2546_v11 = vld [vmem:[%s3564_s1 + $0x3e4] ss:$16 sps:$4 sm:$0xff]  }
  0x45   :  { %896 = vmatprep.mubr.bf16.mxu0 %v61_v32  ;;  %1002 = vmatprep.mubr.bf16.mxu1 %v61_v32  ;;  %v3151_v32 = vld [vmem:[%s3565_s2 + $0x38] sm:$0xff] }
  0x47   :  { %910 = vmatpush1.bf16.msra.mxu0 %v2460_v12  ;;  %1016 = vmatpush1.bf16.msra.mxu1 %v2463_v13  ;;  %v2549_v12 = vld [vmem:[%s3564_s1 + $0x3ec] ss:$16 sps:$4 sm:$0xff]   ;;  %v2544_v13 = vld [vmem:[%s3564_s1 + $0x3e0] ss:$16 sps:$4 sm:$0xff]  }
  0x48   :  { %911 = vmatprep.subr.bf16.mxu0 %v2468_v14  ;;  %1017 = vmatprep.subr.bf16.mxu1 %v2471_v15  ;;  %v42_v14 = vld [vmem:[%s3563_s0 + $0x10] sm:$0xff] }
  0x49   :  { %v46_v15 = vld [vmem:[%s3563_s0 + $0x30] sm:$0xff] }
  0x4a   :  { %897 = vmatmul.mubr.bf16.gmra.mrb[4].mxu0 %v60_v33  ;;  %1003 = vmatmul.mubr.bf16.gmra.mrb[4].mxu1 %v60_v33  ;;  %v3156_v33 = vld [vmem:[%s3566_s3] sm:$0xff] }
  0x4b   :  { %912 = vmatpush1.bf16.msra.mxu0 %v2466_v16  ;;  %1018 = vmatpush1.bf16.msra.mxu1 %v2469_v17  ;;  %v2547_v16 = vld [vmem:[%s3564_s1 + $0x3e8] ss:$16 sps:$4 sm:$0xff]  }
  0x4c   :  { %913 = vmatprep.subr.bf16.mxu0 %v2474_v18  ;;  %1019 = vmatprep.subr.bf16.mxu1 %v2477_v19  ;;  %v51_v17 = vld [vmem:[%s3563_s0 + $0x58] sm:$0xff]  ;;  %v58_v19 = vpack.c.bf16 %v46_v15, %v42_v14 }
  0x4d   :  { %939 = vmatprep.mubr.bf16.mxu0 %v59_v43  ;;  %1045 = vmatprep.mubr.bf16.mxu1 %v59_v43  ;;  %v55_v18 = vld [vmem:[%s3563_s0 + $0x78] sm:$0xff] }
  0x4f   :  { %914 = vmatpush1.bf16.msra.mxu0 %v2472_v20  ;;  %1020 = vmatpush1.bf16.msra.mxu1 %v2475_v21  ;;  %v63_v20 = vpack.c.bf16 %v55_v18, %v51_v17  ;;  %v50_v21 = vld [vmem:[%s3563_s0 + $0x50] sm:$0xff] }
  0x50   :  { %915 = vmatprep.subr.bf16.mxu0 %v2480_v22  ;;  %1021 = vmatprep.subr.bf16.mxu1 %v2483_v23  ;;  %v54_v22 = vld [vmem:[%s3563_s0 + $0x70] sm:$0xff] }
  0x51   :  { %v62_v23 = vpack.c.bf16 %v54_v22, %v50_v21 }
  0x53   :  { %916 = vmatpush1.bf16.msra.mxu0 %v2478_v24  ;;  %1022 = vmatpush1.bf16.msra.mxu1 %v2481_v25  ;;  %v2606_v24 = vmov 0.0   ;;  %v3116_v25 = vld [vmem:[%s3565_s2] sm:$0xff] }
  0x54   :  { %917 = vmatprep.subr.bf16.mxu0 %v2486_v26  ;;  %1023 = vmatprep.subr.bf16.mxu1 %v2489_v27  ;;  %1131 = vst.msk [vmem:[#allocation6] sm:$0xf] %vm1130_vm0, %v2606_v24  ;;  %1132 = vst.msk [vmem:[#allocation7] sm:$0xf] %vm1130_vm0, %v2606_v24  ;;  %v3121_v26 = vld [vmem:[%s3565_s2 + $0x8] sm:$0xff]  ;;  %v3126_v27 = vld [vmem:[%s3565_s2 + $0x10] sm:$0xff] }
  0x55   :  { %1133 = vst.msk [vmem:[#allocation8] sm:$0xf] %vm1130_vm0, %v2606_v24  ;;  %1134 = vst.msk [vmem:[#allocation9] sm:$0xf] %vm1130_vm0, %v2606_v24 }
  0x57   :  { %918 = vmatpush1.bf16.msra.mxu0 %v2484_v34  ;;  %1024 = vmatpush1.bf16.msra.mxu1 %v2487_v35  ;;  %v3161_v34 = vld [vmem:[%s3566_s3 + $0x8] sm:$0xff]  ;;  %v3166_v35 = vld [vmem:[%s3566_s3 + $0x10] sm:$0xff] }
  0x58   :  { %919 = vmatprep.subr.bf16.mxu0 %v2492_v36  ;;  %1025 = vmatprep.subr.bf16.mxu1 %v2495_v37  ;;  %v3171_v36 = vld [vmem:[%s3566_s3 + $0x18] sm:$0xff]  ;;  %v3176_v37 = vld [vmem:[%s3566_s3 + $0x20] sm:$0xff] }
  0x5b   :  { %920 = vmatpush1.bf16.msra.mxu0 %v2490_v38  ;;  %1026 = vmatpush1.bf16.msra.mxu1 %v2493_v41  ;;  %v3181_v38 = vld [vmem:[%s3566_s3 + $0x28] sm:$0xff]  ;;  %v194_v41 = vlaneseq  ;;  %s3196_s3 = smov 0  }
  0x5c   :  { %921 = vmatprep.subr.bf16.mxu0 %v2498_v42  ;;  %1027 = vmatprep.subr.bf16.mxu1 %v2501_v44  ;;  %v192_v44 = vld [vmem:[%s3567_s4] sm:$0xf] }
  0x5d   :  { %v195_v42 = vshrl.u32 %v194_v41, 7 }
  0x5f   :  { %922 = vmatpush1.bf16.msra.mxu0 %v2496_v45  ;;  %1028 = vmatpush1.bf16.msra.mxu1 %v2499_v46  ;;  %v196_v43 = vsub.s32 0, %v195_v42  ;;  %v204_v45 = vsub.s32 2, %v195_v42  ;;  %v200_v46 = vsub.s32 1, %v195_v42 }
  0x60   :  { %923 = vmatprep.subr.bf16.mxu0 %v2504_v47  ;;  %1029 = vmatprep.subr.bf16.mxu1 %v2507_v48  ;;  %v208_v47 = vsub.s32 3, %v195_v42 }
  0x61   :  { %v197_v48 = vrot.slane %v192_v44, %v196_v43 }
  0x63   :  { %924 = vmatpush1.bf16.msra.mxu0 %v2502_v49  ;;  %1030 = vmatpush1.bf16.msra.mxu1 %v2505_v50  ;;  %v205_v49 = vrot.slane %v192_v44, %v204_v45  ;;  %v201_v50 = vrot.slane %v192_v44, %v200_v46 }
  0x64   :  { %925 = vmatprep.subr.bf16.mxu0 %v2510_v51  ;;  %1031 = vmatprep.subr.bf16.mxu1 %v2513_v52  ;;  %v209_v51 = vrot.slane %v192_v44, %v208_v47 }
  0x67   :  { %926 = vmatpush1.bf16.msra.mxu0 %v2508_v53  ;;  %1032 = vmatpush1.bf16.msra.mxu1 %v2511_v54 }
  0x68   :  { %927 = vmatprep.subr.bf16.mxu0 %v2516_v55  ;;  %1033 = vmatprep.subr.bf16.mxu1 %v2519_v56 }
  0x6b   :  { %928 = vmatpush1.bf16.msra.mxu0 %v2514_v57  ;;  %1034 = vmatpush1.bf16.msra.mxu1 %v2517_v58 }
  0x6c   :  { %929 = vmatprep.subr.bf16.mxu0 %v2522_v59  ;;  %1035 = vmatprep.subr.bf16.mxu1 %v2525_v60 }
  0x6f   :  { %930 = vmatpush1.bf16.msra.mxu0 %v2520_v61  ;;  %1036 = vmatpush1.bf16.msra.mxu1 %v2523_v62 }
  0x70   :  { %931 = vmatprep.subr.bf16.mxu0 %v2528_v63  ;;  %1037 = vmatprep.subr.bf16.mxu1 %v2531_v0 }
  0x73   :  { %932 = vmatpush1.bf16.msra.mxu0 %v2526_v1  ;;  %1038 = vmatpush1.bf16.msra.mxu1 %v2529_v2 }
  0x74   :  { %933 = vmatprep.subr.bf16.mxu0 %v2534_v3  ;;  %1039 = vmatprep.subr.bf16.mxu1 %v2537_v4 }
  0x77   :  { %934 = vmatpush1.bf16.msra.mxu0 %v2532_v5  ;;  %1040 = vmatpush1.bf16.msra.mxu1 %v2535_v6 }
  0x78   :  { %935 = vmatprep.subr.bf16.mxu0 %v2540_v7  ;;  %1041 = vmatprep.subr.bf16.mxu1 %v2543_v8 }
  0x7b   :  { %936 = vmatpush1.bf16.msra.mxu0 %v2538_v9  ;;  %1042 = vmatpush1.bf16.msra.mxu1 %v2541_v10 }
  0x7c   :  { %937 = vmatprep.subr.bf16.mxu0 %v2546_v11  ;;  %1043 = vmatprep.subr.bf16.mxu1 %v2549_v12 }
  0x7f   :  { %938 = vmatpush1.bf16.msra.mxu0 %v2544_v13  ;;  %1044 = vmatpush1.bf16.msra.mxu1 %v2547_v16 }
  0x82   :  { %940 = vmatmul.mubr.bf16.vlgmr.msra.gmra.mrb[0].mxu0 %v58_v19  ;;  %1046 = vmatmul.mubr.bf16.vlgmr.msra.gmra.mrb[0].mxu1 %v58_v19 }
  0x83   :  { %949 = vmatprep.mubr.bf16.mxu0 %v63_v20  ;;  %1055 = vmatprep.mubr.bf16.mxu1 %v63_v20 }
  0x8a   :  { %950 = vmatmul.mubr.bf16.gmra.mrb[4].mxu0 %v62_v23  ;;  %1056 = vmatmul.mubr.bf16.gmra.mrb[4].mxu1 %v62_v23 }
 0x155   :  { %v941_v52 = vpop.f32.mrb[0].mxu0  ;;  %v1047_v54 = vpop.f32.mrb[0].mxu1 }
 0x156   :  { %v2311_v53 = vadd.f32 %v941_v52, %v197_v48  ;;  %v943_v55 = vpop.f32.mrb[1].mxu0  ;;  %v2319_v56 = vadd.f32 %v1047_v54, %v205_v49  ;;  %v1049_v58 = vpop.f32.mrb[1].mxu1 }
 0x157   :  { %v2312_v57 = vadd.f32 %v943_v55, %v201_v50  ;;  %v945_v59 = vpop.f32.mrb[2].mxu0  ;;  %v2320_v60 = vadd.f32 %v1049_v58, %v209_v51  ;;  %v1051_v62 = vpop.f32.mrb[2].mxu1 }
 0x158   :  { %v2313_v61 = vadd.f32 %v945_v59, %v197_v48  ;;  %v947_v63 = vpop.f32.mrb[3].mxu0  ;;  %v2321_v2 = vadd.f32 %v1051_v62, %v205_v49  ;;  %v1053_v4 = vpop.f32.mrb[3].mxu1 }
 0x159   :  { %v1074_v0 = vcombine.low %v2311_v53, %v2312_v57  ;;  %v1075_v1 = vcombine.high %v2311_v53, %v2312_v57  ;;  %v2314_v3 = vadd.f32 %v947_v63, %v201_v50  ;;  %v1106_v5 = vcombine.low %v2319_v56, %v2320_v60 }
 0x15a   :  { %v1107_v6 = vcombine.high %v2319_v56, %v2320_v60  ;;  %v2322_v7 = vadd.f32 %v1053_v4, %v209_v51 }
 0x15b   :  { %1090 = vst [vmem:[#allocation2] sm:$0xff] %v1074_v0  ;;  %1091 = vst [vmem:[#allocation2 + $0x8] sm:$0xff] %v1075_v1  ;;  %v1076_v8 = vcombine.low %v2313_v61, %v2314_v3  ;;  %v1077_v9 = vcombine.high %v2313_v61, %v2314_v3 }
 0x15c   :  { %1122 = vst [vmem:[#allocation3] sm:$0xff] %v1106_v5  ;;  %1123 = vst [vmem:[#allocation3 + $0x8] sm:$0xff] %v1107_v6  ;;  %v1108_v10 = vcombine.low %v2321_v2, %v2322_v7  ;;  %v1109_v11 = vcombine.high %v2321_v2, %v2322_v7 }
 0x15d   :  { %1092 = vst [vmem:[#allocation2 + $0x10] sm:$0xff] %v1076_v8  ;;  %1093 = vst [vmem:[#allocation2 + $0x18] sm:$0xff] %v1077_v9  ;;  %v951_v12 = vpop.f32.mrb[4].mxu0  ;;  %v1057_v14 = vpop.f32.mrb[4].mxu1 }
 0x15e   :  { %1124 = vst [vmem:[#allocation3 + $0x10] sm:$0xff] %v1108_v10  ;;  %1125 = vst [vmem:[#allocation3 + $0x18] sm:$0xff] %v1109_v11  ;;  %v2315_v13 = vadd.f32 %v951_v12, %v197_v48  ;;  %v953_v15 = vpop.f32.mrb[5].mxu0  ;;  %v2323_v16 = vadd.f32 %v1057_v14, %v205_v49  ;;  %v1059_v18 = vpop.f32.mrb[5].mxu1 }
 0x15f   :  { %v2316_v17 = vadd.f32 %v953_v15, %v201_v50  ;;  %v955_v19 = vpop.f32.mrb[6].mxu0  ;;  %v2324_v20 = vadd.f32 %v1059_v18, %v209_v51  ;;  %v1061_v22 = vpop.f32.mrb[6].mxu1 }
 0x160   :  { %v2317_v21 = vadd.f32 %v955_v19, %v197_v48  ;;  %v957_v23 = vpop.f32.mrb[7].mxu0  ;;  %v2325_v43 = vadd.f32 %v1061_v22, %v205_v49  ;;  %v1063_v45 = vpop.f32.mrb[7].mxu1 }
 0x161   :  { %v1078_v41 = vcombine.low %v2315_v13, %v2316_v17  ;;  %v1079_v42 = vcombine.high %v2315_v13, %v2316_v17  ;;  %v2318_v44 = vadd.f32 %v957_v23, %v201_v50  ;;  %v1110_v46 = vcombine.low %v2323_v16, %v2324_v20 }
 0x162   :  { %v1111_v47 = vcombine.high %v2323_v16, %v2324_v20  ;;  %v2326_v52 = vadd.f32 %v1063_v45, %v209_v51 }
 0x163   :  { %1094 = vst [vmem:[#allocation2 + $0x20] sm:$0xff] %v1078_v41  ;;  %1095 = vst [vmem:[#allocation2 + $0x28] sm:$0xff] %v1079_v42  ;;  %v1080_v53 = vcombine.low %v2317_v21, %v2318_v44  ;;  %v1081_v54 = vcombine.high %v2317_v21, %v2318_v44 }
 0x164   :  { %1126 = vst [vmem:[#allocation3 + $0x20] sm:$0xff] %v1110_v46  ;;  %1127 = vst [vmem:[#allocation3 + $0x28] sm:$0xff] %v1111_v47  ;;  %v1112_v55 = vcombine.low %v2325_v43, %v2326_v52  ;;  %v1113_v56 = vcombine.high %v2325_v43, %v2326_v52 }
 0x165   :  { %1096 = vst [vmem:[#allocation2 + $0x30] sm:$0xff] %v1080_v53  ;;  %1097 = vst [vmem:[#allocation2 + $0x38] sm:$0xff] %v1081_v54 }
 0x166   :  { %1128 = vst [vmem:[#allocation3 + $0x30] sm:$0xff] %v1112_v55  ;;  %1129 = vst [vmem:[#allocation3 + $0x38] sm:$0xff] %v1113_v56 }
 0x167 LB: > { %v2083_v48 = vcombine.high %v3116_v25, %v3121_v26  ;;  %v2097_v49 = vcombine.high %v3156_v33, %v3161_v34  ;;  %v2082_v50 = vcombine.low %v3116_v25, %v3121_v26  ;;  %v2096_v51 = vcombine.low %v3156_v33, %v3161_v34  ;;  %v1254_v61 = vld [vmem:[#allocation7] sm:$0xf]  ;;  %s2608_s4 = smov 64   ;;  %v1396_v3 = vld [vmem:[#allocation9] sm:$0xf]  ;;  %s1157_s30 = ssub.s32 7, %s2604_s3  ;;  %s2604_s3 = sphi %s3196_s3, %s1156_s3  }
 0x168   : > { %v2085_v57 = vcombine.high %v3126_v27, %v3131_v28  ;;  %v2099_v58 = vcombine.high %v3166_v35, %v3171_v36  ;;  %v2084_v59 = vcombine.low %v3126_v27, %v3131_v28  ;;  %v2098_v60 = vcombine.low %v3166_v35, %v3171_v36  ;;  %1276 = vrot.lane.b32.xlu0 %v1254_v61, %s2608_s4  ;;  %v1162_v8 = vld [vmem:[#allocation6] sm:$0xf]  ;;  %v1305_v9 = vld [vmem:[#allocation8] sm:$0xf]  ;;  %s2113_s12 = sshll.u32 %s2604_s3, 3  ;;  %s2114_s13 = sshll.u32 %s1157_s30, 3 }
 0x169   : > { %1208 = vmatprep.subr.bf16.mxu0 %v2083_v48  ;;  %1350 = vmatprep.subr.bf16.mxu1 %v2097_v49  ;;  %v2087_v62 = vcombine.high %v3136_v29, %v3141_v30  ;;  %v2101_v63 = vcombine.high %v3176_v37, %v3181_v38  ;;  %v2607_v0 = vmov 0   ;;  %v2086_v1 = vcombine.low %v3136_v29, %v3141_v30  ;;  %s1160_s14 = scalar_lea.vmem [#allocation2], %s2113_s12  ;;  %s1303_s15 = scalar_lea.vmem [#allocation3], %s2114_s13 }
 0x16a   : > { %1209 = vmatpush1.bf16.msra.mxu0 %v2082_v50  ;;  %1351 = vmatpush1.bf16.msra.mxu1 %v2096_v51  ;;  %v2100_v2 = vcombine.low %v3176_v37, %v3181_v38  ;;  %v2089_v4 = vcombine.high %v3146_v31, %v3151_v32  ;;  %v2103_v5 = vcombine.high %v3186_v39, %v3191_v40  ;;  %vm1204_vm1 = vcmask 523264   ;;  %s2093_s16 = sshll.u32 %s2604_s3, 2  ;;  %s2107_s17 = sshll.u32 %s1157_s30, 2 }
 0x16b   : > { %1210 = vmatprep.subr.bf16.mxu0 %v2085_v57  ;;  %1352 = vmatprep.subr.bf16.mxu1 %v2099_v58  ;;  %v2088_v6 = vcombine.low %v3146_v31, %v3151_v32  ;;  %v2102_v7 = vcombine.low %v3186_v39, %v3191_v40  ;;  %v1163_v10 = vpack.c.bf16 %v1162_v8, %v1162_v8  ;;  %s1299_s1 = scalar_lea.vmem [#allocation4], %s2093_s16  ;;  %s1441_s18 = scalar_lea.vmem [#allocation5], %s2107_s17 }
 0x16c   : > { %1240 = vmatprep.mubr.bf16.mxu0 %v2607_v0  ;;  %1382 = vmatprep.mubr.bf16.mxu1 %v2607_v0  ;;  %v1306_v11 = vpack.c.bf16 %v1305_v9, %v1305_v9  ;;  %v1161_v14 = vld [vmem:[%s1160_s14] sm:$0xff]  ;;  %s1156_s3 = sadd.s32 1, %s2604_s3  }
 0x16d   : > { %1418 = vrot.lane.b32.xlu0 %v1396_v3, %s2608_s4  ;;  %v1304_v16 = vld [vmem:[%s1303_s15] sm:$0xff]  ;;  %p1153_p0 = scmp.ge.s32.totalorder %s1156_s3, 8  }
 0x16e   : > { %1211 = vmatpush1.bf16.msra.mxu0 %v2084_v59  ;;  %1353 = vmatpush1.bf16.msra.mxu1 %v2098_v60  ;;  %v1553_v26 = vld [vmem:[%s3568_s5 + $0x80] sm:$0xff] (%p1153_p0)  ;;  %v1554_v27 = vld [vmem:[%s3568_s5 + $0x88] sm:$0xff] (%p1153_p0)  ;;  %v1555_v40 = vld [vmem:[%s3568_s5 + $0x90] sm:$0xff] (%p1153_p0)  ;;  %s2609_s19 = smov (%p1153_p0), 64   ;;  %vm2611_vm2 = vmmov (%p1153_p0), 0   ;;  %vm1849_vm3 = vcmask (%p1153_p0), 261120  }
 0x16f   : > { %1212 = vmatprep.subr.bf16.mxu0 %v2087_v62  ;;  %1354 = vmatprep.subr.bf16.mxu1 %v2101_v63  ;;  %v1537_v28 = vld [vmem:[%s3568_s5] sm:$0xff] (%p1153_p0)  ;;  %v1538_v31 = vld [vmem:[%s3568_s5 + $0x8] sm:$0xff] (%p1153_p0)  ;;  %s2612_s28 = smov (%p1153_p0), [#allocation10]   ;;  %vm1923_vm4 = vcmask (%p1153_p0), 17408  }
 0x170   :  { %v1585_v32 = vld [vmem:[%s3568_s5 + $0x180] sm:$0xff] (%p1153_p0)  ;;  %v1586_v33 = vld [vmem:[%s3568_s5 + $0x188] sm:$0xff] (%p1153_p0)  ;;  %s1931_s29 = sshll.u32 (%p1153_p0), %s2612_s28, 4  ;;  %s1932_s29 = int_to_ptr.vmem [resolvable:$true] %s1931_s29 }
 0x171   :  { %v1569_v38 = vld [vmem:[%s3568_s5 + $0x100] sm:$0xff] (%p1153_p0)  ;;  %v1570_v39 = vld [vmem:[%s3568_s5 + $0x108] sm:$0xff] (%p1153_p0)  ;;  %p2579_p2 = scmp.lt.s32.totalorder (%p1153_p0), %s1932_s29, %s1932_s29 }
 0x172   : > { %1213 = vmatpush1.bf16.msra.mxu0 %v2086_v1  ;;  %1355 = vmatpush1.bf16.msra.mxu1 %v2100_v2 }
 0x173   : > { %1214 = vmatprep.subr.bf16.mxu0 %v2089_v4  ;;  %1356 = vmatprep.subr.bf16.mxu1 %v2103_v5 }
 0x176   : > { %1215 = vmatpush1.bf16.msra.mxu0 %v2088_v6  ;;  %1357 = vmatpush1.bf16.msra.mxu1 %v2102_v7 }
 0x179   : > { %2090 = vmatmul.mubr.msk.bf16.vlgmr.msra.gmra.mrb[0].mxu0 %vm1204_vm1, %v1163_v10  ;;  %2104 = vmatmul.mubr.msk.bf16.vlgmr.msra.gmra.mrb[0].mxu1 %vm1204_vm1, %v1306_v11 }
 0x1da   : > { %v1277_v57 = vpop.permute.xlu0 %1276 }
 0x1df   : > { %v1419_v59 = vpop.permute.xlu0 %1418 }
 0x24c   : > { %v1242_v12 = vpop.f32.mrb[0].mxu0  ;;  %v1384_v13 = vpop.f32.mrb[0].mxu1 }
 0x24d   : > { %v1244_v15 = vpop.f32.mrb[1].mxu0  ;;  %v1386_v17 = vpop.f32.mrb[1].mxu1 }
 0x24e   : > { %v1251_v18 = vcombine.low %v1242_v12, %v1244_v15  ;;  %v1393_v19 = vcombine.low %v1384_v13, %v1386_v17  ;;  %v1246_v20 = vpop.f32.mrb[2].mxu0  ;;  %v1388_v21 = vpop.f32.mrb[2].mxu1 }
 0x24f   : > { %v1247_v22 = vpop.f32.mrb[3].mxu0  ;;  %v1389_v23 = vpop.f32.mrb[3].mxu1 }
 0x250   : > { %v1253_v41 = vadd.f32 %v1251_v18, %v1161_v14  ;;  %v1395_v42 = vadd.f32 %v1393_v19, %v1304_v16 }
 0x252   : > { %v2091_v43 = vmul.f32 -1.442695, %v1253_v41  ;;  %v2105_v44 = vmul.f32 -1.442695, %v1395_v42  ;;  %1265 = vrot.lane.b32.xlu0 %v1253_v41, %s2608_s4  ;;  %v1262_v45 = vrot.slane %v1253_v41, 4  ;;  %v1404_v54 = vrot.slane %v1395_v42, 4 }
 0x254   : > { %2550 = vpow2.f32 %v2091_v43 }
 0x255   : > { %2552 = vpow2.f32 %v2105_v44 }
 0x256   : > { %2554 = vtanh.f32 %v1262_v45 }
 0x25e   : > { %v2551_v46 = vpop.eup %2550 }
 0x25f   : > { %v1258_v47 = vadd.f32 1.0, %v2551_v46  ;;  %v2553_v52 = vpop.eup %2552 }
 0x260   : > { %v1400_v53 = vadd.f32 1.0, %v2553_v52  ;;  %v2555_v55 = vpop.eup %2554 }
 0x261   : > { %2556 = vrcp.f32 %v1258_v47 }
 0x262   : > { %2558 = vrcp.f32 %v1400_v53 }
 0x263   : > { %2560 = vtanh.f32 %v1404_v54 }
 0x26b   : > { %v2557_v56 = vpop.eup %2556 }
 0x26c   : > { %v1280_v48 = vmul.f32 %v2557_v56, %v2555_v55  ;;  %v2559_v49 = vpop.eup %2558  ;;  %v1279_v58 = vmul.f32 %v2557_v56, %v1277_v57 }
 0x26d   : > { %v2561_v50 = vpop.eup %2560  ;;  %v1421_v62 = vmul.f32 %v2559_v49, %v1419_v59  ;;  %v2231_v59 = vpack.c.bf16 (%p1153_p0), %v1538_v31, %v1537_v28  ;;  %v1544_v28 = vld [vmem:[%s3568_s5 + $0x38] sm:$0xff] (%p1153_p0) }
 0x26e   : > { %1282 = vrot.lane.b32.xlu1 %v1280_v48, %s2608_s4  ;;  %v1422_v51 = vmul.f32 %v2561_v50, %v2559_v49  ;;  %v1556_v49 = vld [vmem:[%s3568_s5 + $0x98] sm:$0xff] (%p1153_p0)  ;;  %v1539_v50 = vld [vmem:[%s3568_s5 + $0x10] sm:$0xff] (%p1153_p0) }
 0x272   : > { %1424 = vrot.lane.b32.xlu1 %v1422_v51, %s2608_s4  ;;  %v1540_v51 = vld [vmem:[%s3568_s5 + $0x18] sm:$0xff] (%p1153_p0) }
 0x276   : > { %1407 = vrot.lane.b32.xlu1 %v1395_v42, %s2608_s4 }
 0x2c4   : > { %v1266_v3 = vpop.permute.xlu0 %1265 }
 0x2c5   : > { %v1267_v4 = vrot.slane %v1266_v3, 4  ;;  %v2233_v3 = vpack.c.bf16 (%p1153_p0), %v1556_v49, %v1555_v40  ;;  %v1578_v49 = vld [vmem:[%s3568_s5 + $0x148] sm:$0xff] (%p1153_p0) }
 0x2c7   : > { %v2092_v6 = vmul.f32 -1.442695, %v1267_v4  ;;  %v1572_v4 = vld [vmem:[%s3568_s5 + $0x118] sm:$0xff] (%p1153_p0) }
 0x2e0   : > { %v1283_v60 = vpop.permute.xlu1 %1282 }
 0x2e1   : > { %v1285_v61 = vadd.f32 %v1283_v60, %v1279_v58  ;;  %v2229_v58 = vpack.c.bf16 (%p1153_p0), %v1554_v27, %v1553_v26  ;;  %v2261_v60 = vpack.c.bf16 (%p1153_p0), %v1586_v33, %v1585_v32  ;;  %v1576_v32 = vld [vmem:[%s3568_s5 + $0x138] sm:$0xff] (%p1153_p0)  ;;  %v1561_v33 = vld [vmem:[%s3568_s5 + $0xc0] sm:$0xff] (%p1153_p0) }
 0x2e3   : > { %2562 = vtanh.f32 %v1285_v61  ;;  %2230 = vmatprep.subr.bf16.mxu0 (%p1153_p0), %v2229_v58  ;;  %2262 = vmatprep.subr.bf16.mxu1 (%p1153_p0), %v2261_v60  ;;  %v1596_v58 = vld [vmem:[%s3568_s5 + $0x1d8] sm:$0xff] (%p1153_p0) }
 0x2e4   : > { %v1425_v63 = vpop.permute.xlu1 %1424  ;;  %2232 = vmatpush3.bf16.msra.mxu0 (%p1153_p0), %v2231_v59 }
 0x2e5   : > { %v1427_v0 = vadd.f32 %v1425_v63, %v1421_v62  ;;  %v1588_v62 = vld [vmem:[%s3568_s5 + $0x198] sm:$0xff] (%p1153_p0)  ;;  %v1571_v63 = vld [vmem:[%s3568_s5 + $0x110] sm:$0xff] (%p1153_p0)  ;;  %2234 = vmatprep.subr.bf16.mxu0 (%p1153_p0), %v2233_v3  ;;  %v1565_v3 = vld [vmem:[%s3568_s5 + $0xe0] sm:$0xff] (%p1153_p0) }
 0x2e7   : > { %2564 = vtanh.f32 %v1427_v0 }
 0x2e8   : > { %v1408_v5 = vpop.permute.xlu1 %1407  ;;  %2566 = vpow2.f32 %v2092_v6  ;;  %v1558_v6 = vld [vmem:[%s3568_s5 + $0xa8] sm:$0xff] (%p1153_p0) }
 0x2e9   : > { %v1409_v7 = vrot.slane %v1408_v5, 4  ;;  %v1557_v5 = vld [vmem:[%s3568_s5 + $0xa0] sm:$0xff] (%p1153_p0) }
 0x2eb   : > { %v2106_v8 = vmul.f32 -1.442695, %v1409_v7 }
 0x2ed   : > { %v2563_v1 = vpop.eup %2562  ;;  %2568 = vpow2.f32 %v2106_v8 }
 0x2ee   : > { %1288 = vrot.lane.b32.xlu0 %v2563_v1, %s2608_s4 }
 0x2f1   : > { %v2565_v2 = vpop.eup %2564 }
 0x2f2   : > { %1294 = vrot.lane.b32.xlu0 %v1285_v61, %s2608_s4  ;;  %1430 = vrot.lane.b32.xlu1 %v2565_v2, %s2608_s4  ;;  %v2567_v9 = vpop.eup %2566  ;;  %v1587_v61 = vld [vmem:[%s3568_s5 + $0x190] sm:$0xff] (%p1153_p0)  ;;  %v2263_v2 = vpack.c.bf16 (%p1153_p0), %v1570_v39, %v1569_v38 }
 0x2f3   : > { %v1272_v10 = vadd.f32 1.0, %v2567_v9 }
 0x2f4   :  { %2264 = vmatpush3.bf16.msra.mxu1 (%p1153_p0), %v2263_v2  ;;  %v1580_v2 = vld [vmem:[%s3568_s5 + $0x158] sm:$0xff] (%p1153_p0) }
 0x2f5   : > { %2570 = vrcp.f32 %v1272_v10  ;;  %v2265_v10 = vpack.c.bf16 (%p1153_p0), %v1588_v62, %v1587_v61  ;;  %v1547_v62 = vld [vmem:[%s3568_s5 + $0x50] sm:$0xff] (%p1153_p0) }
 0x2f6   : > { %1436 = vrot.lane.b32.xlu1 %v1427_v0, %s2608_s4 }
 0x2f7   : > { %v2569_v11 = vpop.eup %2568  ;;  %2266 = vmatprep.subr.bf16.mxu1 (%p1153_p0), %v2265_v10  ;;  %v1549_v10 = vld [vmem:[%s3568_s5 + $0x60] sm:$0xff] (%p1153_p0) }
 0x2f8   : > { %v1414_v12 = vadd.f32 1.0, %v2569_v11  ;;  %v1589_v11 = vld [vmem:[%s3568_s5 + $0x1a0] sm:$0xff] (%p1153_p0) }
 0x2fa   : > { %2572 = vrcp.f32 %v1414_v12 }
 0x2ff   : > { %v2571_v13 = vpop.eup %2570 }
 0x304   : > { %v2573_v16 = vpop.eup %2572 }
 0x360   : > { %v1289_v14 = vpop.permute.xlu0 %1288 }
 0x361   : > { %v1291_v15 = vmul.f32 %v2571_v13, %v1289_v14  ;;  %v2235_v13 = vpack.c.bf16 (%p1153_p0), %v1540_v51, %v1539_v50  ;;  %v2267_v14 = vpack.c.bf16 (%p1153_p0), %v1572_v4, %v1571_v63  ;;  %v1563_v50 = vld [vmem:[%s3568_s5 + $0xd0] sm:$0xff] (%p1153_p0)  ;;  %v1564_v51 = vld [vmem:[%s3568_s5 + $0xd8] sm:$0xff] (%p1153_p0)  ;;  %v1566_v4 = vld [vmem:[%s3568_s5 + $0xe8] sm:$0xff] (%p1153_p0) }
 0x362   :  { %v2249_v61 = vpack.c.bf16 (%p1153_p0), %v1564_v51, %v1563_v50  ;;  %v1548_v63 = vld [vmem:[%s3568_s5 + $0x58] sm:$0xff] (%p1153_p0) }
 0x363   : > { %1292 = vst.msk [vmem:[#allocation6] sm:$0xf] %vm1130_vm0, %v1291_v15  ;;  %1300 = vst.msk [vmem:[%s1299_s1] sm:$0xf] %vm1130_vm0, %v1291_v15  ;;  %v1590_v15 = vld [vmem:[%s3568_s5 + $0x1a8] sm:$0xff] (%p1153_p0)  ;;  %2236 = vmatpush3.bf16.msra.mxu0 (%p1153_p0), %v2235_v13  ;;  %2268 = vmatpush3.bf16.msra.mxu1 (%p1153_p0), %v2267_v14 }
 0x364   : > { %v1295_v17 = vpop.permute.xlu0 %1294  ;;  %v1431_v18 = vpop.permute.xlu1 %1430  ;;  %v1582_v14 = vld [vmem:[%s3568_s5 + $0x168] sm:$0xff] (%p1153_p0) }
 0x365   : > { %1297 = vst.msk [vmem:[#allocation7] sm:$0xf] %vm1130_vm0, %v1295_v17  ;;  %v1433_v19 = vmul.f32 %v2573_v16, %v1431_v18  ;;  %v2237_v17 = vpack.c.bf16 (%p1153_p0), %v1558_v6, %v1557_v5  ;;  %v1541_v18 = vld [vmem:[%s3568_s5 + $0x20] sm:$0xff] (%p1153_p0)  ;;  %v1598_v6 = vld [vmem:[%s3568_s5 + $0x1e8] sm:$0xff] (%p1153_p0) }
 0x366   :  { %v1597_v5 = vld [vmem:[%s3568_s5 + $0x1e0] sm:$0xff] (%p1153_p0) }
 0x367   : > { %1434 = vst.msk [vmem:[#allocation8] sm:$0xf] %vm1130_vm0, %v1433_v19  ;;  %1442 = vst.msk [vmem:[%s1441_s18] sm:$0xf] %vm1130_vm0, %v1433_v19  ;;  %1155 = sbr.rel (!%p1153_p0) target bundleno = 359 (0x167), region = 75  ;;  %v1542_v19 = vld [vmem:[%s3568_s5 + $0x28] sm:$0xff] (%p1153_p0)  ;;  %2238 = vmatprep.subr.bf16.mxu0 (%p1153_p0), %v2237_v17  ;;  %v2285_v13 = vpack.c.bf16 (%p1153_p0), %v1598_v6, %v1597_v5 }
 0x368   : > { %v1437_v20 = vpop.permute.xlu1 %1436  ;;  %v1599_v17 = vld [vmem:[%s3568_s5 + $0x1f0] sm:$0xff] (%p1153_p0)  ;;  %v1749_v5 = vld [vmem:[%s3570_s7] sm:$0xff] (%p1153_p0)  ;;  %v1750_v6 = vld [vmem:[%s3570_s7 + $0x8] sm:$0xff] (%p1153_p0) }
 0x369   : > { %1439 = vst.msk [vmem:[#allocation9] sm:$0xf] %vm1130_vm0, %v1437_v20  ;;  %v2269_v20 = vpack.c.bf16 (%p1153_p0), %v1590_v15, %v1589_v11  ;;  %v1550_v11 = vld [vmem:[%s3568_s5 + $0x68] sm:$0xff] (%p1153_p0)  ;;  %v1567_v15 = vld [vmem:[%s3568_s5 + $0xf0] sm:$0xff] (%p1153_p0) }
 0x36b   :  { %2270 = vmatprep.subr.bf16.mxu1 (%p1153_p0), %v2269_v20 }
 0x36e   :  { %v1451_v21 = vld [vmem:[#allocation5] sm:$0xf]  ;;  %v1452_v22 = vld [vmem:[#allocation5 + $0x4] sm:$0xf]  ;;  %v1453_v23 = vld [vmem:[#allocation5 + $0x8] sm:$0xf] }
 0x36f   :  { %v1454_v41 = vld [vmem:[#allocation5 + $0xc] sm:$0xf]  ;;  %v1457_v42 = vld [vmem:[#allocation5 + $0x18] sm:$0xf]  ;;  %v1455_v43 = vld [vmem:[#allocation5 + $0x10] sm:$0xf] }
 0x370   :  { %v1456_v44 = vld [vmem:[#allocation5 + $0x14] sm:$0xf]  ;;  %v3261_v45 = vld [vmem:[#allocation5 + $0x1c] sm:$0xf]  ;;  %v3264_v46 = vsel %vm1130_vm0, %v1453_v23, -inf  ;;  %v3267_v47 = vsel %vm1130_vm0, %v1457_v42, -inf }
 0x371   :  { %v1510_v52 = vsel %vm1130_vm0, %v1451_v21, 0.0  ;;  %v1511_v53 = vsel %vm1130_vm0, %v1452_v22, 0.0  ;;  %v1513_v25 = vsel %vm1130_vm0, %v1453_v23, 0.0  ;;  %v1477_v29 = vsel %vm1130_vm0, %v1454_v41, -inf  ;;  %v1574_v23 = vld [vmem:[%s3568_s5 + $0x128] sm:$0xff] }
 0x372   :  { %v1512_v30 = vadd.f32 %v1511_v53, %v1510_v52  ;;  %v1480_v34 = vsel %vm1130_vm0, %v1456_v44, -inf  ;;  %v1483_v35 = vmax.f32 %v3264_v46, %v3267_v47  ;;  %v1484_v36 = vsel %vm1130_vm0, %v3261_v45, -inf  ;;  %v1591_v46 = vld [vmem:[%s3568_s5 + $0x1b0] sm:$0xff]  ;;  %v1592_v47 = vld [vmem:[%s3568_s5 + $0x1b8] sm:$0xff] }
 0x373   :  { %v1515_v37 = vsel %vm1130_vm0, %v1454_v41, 0.0  ;;  %v1474_v55 = vsel %vm1130_vm0, %v1451_v21, -inf  ;;  %v1475_v56 = vsel %vm1130_vm0, %v1452_v22, -inf  ;;  %v1478_v48 = vsel %vm1130_vm0, %v1455_v43, -inf  ;;  %v1573_v21 = vld [vmem:[%s3568_s5 + $0x120] sm:$0xff]  ;;  %v1559_v41 = vld [vmem:[%s3568_s5 + $0xb0] sm:$0xff] }
 0x374   :  { %v1514_v54 = vadd.f32 %v1513_v25, %v1512_v30  ;;  %v1517_v57 = vsel %vm1130_vm0, %v1455_v43, 0.0  ;;  %v1485_v0 = vmax.f32 %v1477_v29, %v1484_v36  ;;  %v1519_v7 = vsel %vm1130_vm0, %v1456_v44, 0.0  ;;  %v1575_v29 = vld [vmem:[%s3568_s5 + $0x130] sm:$0xff]  ;;  %v1594_v36 = vld [vmem:[%s3568_s5 + $0x1c8] sm:$0xff] }
 0x375   :  { %v1479_v8 = vmax.f32 %v1474_v55, %v1478_v48  ;;  %v1481_v9 = vmax.f32 %v1475_v56, %v1480_v34  ;;  %v1521_v16 = vsel %vm1130_vm0, %v1457_v42, 0.0  ;;  %v1560_v42 = vld [vmem:[%s3568_s5 + $0xb8] sm:$0xff]  ;;  %v1523_v43 = vsel %vm1130_vm0, %v3261_v45, 0.0  ;;  %v1543_v45 = vld [vmem:[%s3568_s5 + $0x30] sm:$0xff]  ;;  %v1562_v34 = vld [vmem:[%s3568_s5 + $0xc8] sm:$0xff] }
 0x376   :  { %v1516_v1 = vadd.f32 %v1515_v37, %v1514_v54  ;;  %v1487_v44 = vmax.f32 %v1483_v35, %v1485_v0  ;;  %v2239_v25 = vpack.c.bf16 %v1542_v19, %v1541_v18  ;;  %v2271_v26 = vpack.c.bf16 %v1574_v23, %v1573_v21  ;;  %v1593_v35 = vld [vmem:[%s3568_s5 + $0x1c0] sm:$0xff]  ;;  %v1546_v55 = vld [vmem:[%s3568_s5 + $0x48] sm:$0xff]  ;;  %v1579_v0 = vld [vmem:[%s3568_s5 + $0x150] sm:$0xff] }
 0x377   :  { %v1486_v53 = vmax.f32 %v1479_v8, %v1481_v9  ;;  %v2241_v27 = vpack.c.bf16 %v1560_v42, %v1559_v41  ;;  %v2273_v31 = vpack.c.bf16 %v1592_v47, %v1591_v46  ;;  %v2243_v38 = vpack.c.bf16 %v1544_v28, %v1543_v45  ;;  %v1545_v54 = vld [vmem:[%s3568_s5 + $0x40] sm:$0xff]  ;;  %v1600_v18 = vld [vmem:[%s3568_s5 + $0x1f8] sm:$0xff]  ;;  %v1583_v42 = vld [vmem:[%s3568_s5 + $0x170] sm:$0xff] }
 0x378   :  { %v1518_v12 = vadd.f32 %v1517_v57, %v1516_v1  ;;  %2240 = vmatpush3.bf16.msra.mxu0 %v2239_v25  ;;  %2272 = vmatpush3.bf16.msra.mxu1 %v2271_v26  ;;  %v2275_v39 = vpack.c.bf16 %v1576_v32, %v1575_v29  ;;  %v2245_v40 = vpack.c.bf16 %v1562_v34, %v1561_v33  ;;  %v1577_v56 = vld [vmem:[%s3568_s5 + $0x140] sm:$0xff]  ;;  %v1595_v57 = vld [vmem:[%s3568_s5 + $0x1d0] sm:$0xff]  ;;  %v1552_v23 = vld [vmem:[%s3568_s5 + $0x78] sm:$0xff]  ;;  %v2610_v47 = vmov 0.0|0.0  }
 0x379   :  { %v1488_v37 = vmax.f32 %v1486_v53, %v1487_v44  ;;  %2242 = vmatprep.subr.bf16.mxu0 %v2241_v27  ;;  %2274 = vmatprep.subr.bf16.mxu1 %v2273_v31  ;;  %v2277_v48 = vpack.c.bf16 %v1594_v36, %v1593_v35  ;;  %v2247_v59 = vpack.c.bf16 %v1546_v55, %v1545_v54  ;;  %v1444_v53 = vld [vmem:[#allocation4 + $0x4] sm:$0xf]  ;;  %v1445_v27 = vld [vmem:[#allocation4 + $0x8] sm:$0xf]  ;;  %v1446_v29 = vld [vmem:[#allocation4 + $0xc] sm:$0xf] }
 0x37a   :  { %v1520_v22 = vadd.f32 %v1519_v7, %v1518_v12  ;;  %v2279_v60 = vpack.c.bf16 %v1578_v49, %v1577_v56  ;;  %v2281_v1 = vpack.c.bf16 %v1596_v58, %v1595_v57  ;;  %v2251_v7 = vpack.c.bf16 %v1548_v63, %v1547_v62  ;;  %v1581_v12 = vld [vmem:[%s3568_s5 + $0x160] sm:$0xff]  ;;  %v1447_v32 = vld [vmem:[#allocation4 + $0x10] sm:$0xf]  ;;  %v1448_v35 = vld [vmem:[#allocation4 + $0x14] sm:$0xf] }
 0x37b   :  { %v2283_v8 = vpack.c.bf16 %v1580_v2, %v1579_v0  ;;  %v2253_v9 = vpack.c.bf16 %v1566_v4, %v1565_v3  ;;  %v2255_v19 = vpack.c.bf16 %v1550_v11, %v1549_v10  ;;  %v2287_v20 = vpack.c.bf16 %v1582_v14, %v1581_v12  ;;  %v1449_v36 = vld [vmem:[#allocation4 + $0x18] sm:$0xf] }
 0x37c   :  { %v1522_v52 = vadd.f32 %v1521_v16, %v1520_v22  ;;  %2244 = vmatpush3.bf16.msra.mxu0 %v2243_v38  ;;  %2276 = vmatpush3.bf16.msra.mxu1 %v2275_v39  ;;  %v1568_v16 = vld [vmem:[%s3568_s5 + $0xf8] sm:$0xff]  ;;  %v1551_v22 = vld [vmem:[%s3568_s5 + $0x70] sm:$0xff]  ;;  %v2289_v41 = vpack.c.bf16 %v1600_v18, %v1599_v17  ;;  %v1496_v26 = vsel %vm1130_vm0, %v1444_v53, 0.0  ;;  %v1498_v28 = vsel %vm1130_vm0, %v1445_v27, 0.0  ;;  %v1753_v18 = vld [vmem:[%s3570_s7 + $0x20] sm:$0xff] }
 0x37d   :  { %2246 = vmatprep.subr.bf16.mxu0 %v2245_v40  ;;  %2278 = vmatprep.subr.bf16.mxu1 %v2277_v48  ;;  %v2257_v21 = vpack.c.bf16 %v1568_v16, %v1567_v15  ;;  %v2259_v44 = vpack.c.bf16 %v1552_v23, %v1551_v22  ;;  %v1500_v31 = vsel %vm1130_vm0, %v1446_v29, 0.0  ;;  %v1502_v34 = vsel %vm1130_vm0, %v1447_v32, 0.0  ;;  %v1752_v14 = vld [vmem:[%s3570_s7 + $0x18] sm:$0xff] }
 0x37e   :  { %v1524_v30 = vadd.f32 %v1523_v43, %v1522_v52  ;;  %v1584_v43 = vld [vmem:[%s3568_s5 + $0x178] sm:$0xff]  ;;  %v1443_v52 = vld [vmem:[#allocation4] sm:$0xf]  ;;  %v1504_v39 = vsel %vm1130_vm0, %v1448_v35, 0.0  ;;  %v1506_v54 = vsel %vm1130_vm0, %v1449_v36, 0.0  ;;  %v1460_v48 = vsel %vm1130_vm0, %v1444_v53, -inf }
 0x37f   :  { %v2291_v46 = vpack.c.bf16 %v1584_v43, %v1583_v42  ;;  %v1495_v25 = vsel %vm1130_vm0, %v1443_v52, 0.0  ;;  %v1459_v56 = vsel %vm1130_vm0, %v1443_v52, -inf  ;;  %v1463_v49 = vsel %vm1130_vm0, %v1447_v32, -inf  ;;  %v1756_v22 = vld [vmem:[%s3570_s7 + $0x38] sm:$0xff]  ;;  %v1839_v42 = vld [vmem:[%s3572_s9 + $0x8] sm:$0xff] }
 0x380   :  { %1526 = vrot.lane.b32.xlu0 %v1524_v30, %s2609_s19  ;;  %2248 = vmatpush3.bf16.msra.mxu0 %v2247_v59  ;;  %v1497_v45 = vadd.f32 %v1496_v26, %v1495_v25  ;;  %v1461_v50 = vsel %vm1130_vm0, %v1445_v27, -inf  ;;  %v1462_v51 = vsel %vm1130_vm0, %v1446_v29, -inf  ;;  %v1465_v57 = vsel %vm1130_vm0, %v1448_v35, -inf  ;;  %v1840_v29 = vld [vmem:[%s3572_s9 + $0x10] sm:$0xff] }
 0x381   :  { %2280 = vmatpush3.bf16.msra.mxu1 %v2279_v60  ;;  %2250 = vmatprep.subr.bf16.mxu0 %v2249_v61  ;;  %v1467_v58 = vsel %vm1130_vm0, %v1449_v36, -inf  ;;  %v1464_v59 = vmax.f32 %v1459_v56, %v1463_v49  ;;  %v1466_v61 = vmax.f32 %v1460_v48, %v1465_v57  ;;  %v2294_v10 = vpack.c.bf16 %v1750_v6, %v1749_v5  ;;  %v2111_v36 = vld [vmem:[%s3573_s10] ss:$0 sm:$0xff] }
 0x382   :  { %2282 = vmatprep.subr.bf16.mxu1 %v2281_v1  ;;  %v1499_v30 = vadd.f32 %v1498_v28, %v1497_v45  ;;  %v1468_v62 = vmax.f32 %v1461_v50, %v1467_v58 }
 0x383   :  { %v1471_v2 = vmax.f32 %v1464_v59, %v1466_v61 }
 0x384   :  { %1490 = vrot.lane.b32.xlu0 %v1488_v37, %s2609_s19  ;;  %2252 = vmatpush3.bf16.msra.mxu0 %v2251_v7  ;;  %v1501_v33 = vadd.f32 %v1500_v31, %v1499_v30  ;;  %v1450_v37 = vld [vmem:[#allocation4 + $0x1c] sm:$0xf]  ;;  %v2109_v31 = vld [vmem:[%s3571_s8] ss:$0 sm:$0xff] }
 0x385   :  { %2284 = vmatpush3.bf16.msra.mxu1 %v2283_v8  ;;  %2254 = vmatprep.subr.bf16.mxu0 %v2253_v9  ;;  %v1469_v40 = vsel %vm1130_vm0, %v1450_v37, -inf  ;;  %v1508_v0 = vsel %vm1130_vm0, %v1450_v37, 0.0 }
 0x386   :  { %2286 = vmatprep.subr.bf16.mxu1 %v2285_v13  ;;  %v1503_v38 = vadd.f32 %v1502_v34, %v1501_v33  ;;  %v1470_v63 = vmax.f32 %v1462_v51, %v1469_v40  ;;  %v1751_v13 = vld [vmem:[%s3570_s7 + $0x10] sm:$0xff] }
 0x387   :  { %v2297_v17 = vpack.c.bf16 %v1752_v14, %v1751_v13 }
 0x388   :  { %2256 = vmatpush3.bf16.msra.mxu0 %v2255_v19  ;;  %v1505_v55 = vadd.f32 %v1504_v39, %v1503_v38  ;;  %v1472_v3 = vmax.f32 %v1468_v62, %v1470_v63  ;;  %v1754_v19 = vld [vmem:[%s3570_s7 + $0x28] sm:$0xff] }
 0x389   :  { %2288 = vmatpush3.bf16.msra.mxu1 %v2287_v20  ;;  %2258 = vmatprep.subr.bf16.mxu0 %v2257_v21  ;;  %v2300_v20 = vpack.c.bf16 %v1754_v19, %v1753_v18  ;;  %v1755_v21 = vld [vmem:[%s3570_s7 + $0x30] sm:$0xff] }
 0x38a   :  { %2290 = vmatprep.subr.bf16.mxu1 %v2289_v41  ;;  %v1507_v60 = vadd.f32 %v1506_v54, %v1505_v55  ;;  %v1473_v8 = vmax.f32 %v1471_v2, %v1472_v3  ;;  %v2303_v23 = vpack.c.bf16 %v1756_v22, %v1755_v21  ;;  %v1838_v41 = vld [vmem:[%s3572_s9] sm:$0xff] }
 0x38b   :  { %v2306_v43 = vpack.c.bf16 %v1839_v42, %v1838_v41 }
 0x38c   :  { %2260 = vmatpush3.bf16.msra.mxu0 %v2259_v44  ;;  %v1509_v1 = vadd.f32 %v1508_v0, %v1507_v60 }
 0x38d   :  { %2292 = vmatpush3.bf16.msra.mxu1 %v2291_v46  ;;  %2293 = vmatprep.subr.bf16.mxu0 %v2610_v47  ;;  %v2108_v46 = vld [vmem:[%s3569_s6] ss:$0 sm:$0xff] }
 0x38e   :  { %2305 = vmatprep.subr.bf16.mxu1 %v2610_v47 }
 0x3f2   :  { %v1527_v4 = vpop.permute.xlu0 %1526 }
 0x3f3   :  { %v1529_v7 = vsel %vm1204_vm1, %v1509_v1, %v1527_v4 }
 0x3f4   :  { %v1530_v9 = vmul.f32 0.125, %v1529_v7 }
 0x3f6   :  { %v1491_v11 = vpop.permute.xlu0 %1490  ;;  %1672 = vmatprep.mubr.f32.mxu0 %v1530_v9  ;;  %v1535_v12 = vrot.slane %v1530_v9, 2 }
 0x3f7   :  { %v1494_v15 = vsel %vm1204_vm1, %v1473_v8, %v1491_v11 }
 0x3f8   :  { %v1532_v16 = vrot.slane %v1494_v15, 2  ;;  %1673 = vmatmul.mubr.f32.vlgmr.msra.gmra.mrb[0].mxu0 %v1494_v15  ;;  %1742 = vmatprep.mubr.f32.mxu1 %v1535_v12 }
 0x3f9   :  { %2295 = vmatpush3.bf16.msra.mxu0 %v2294_v10  ;;  %2215 = vmatprep.mubr.msk.f32.mxu0 %vm2611_vm2, %v2606_v24 }
 0x3fa   :  { %1743 = vmatmul.mubr.f32.vlgmr.msra.gmra.mrb[0].mxu1 %v1532_v16  ;;  %2296 = vmatprep.subr.bf16.mxu0 %v2610_v47 }
 0x3fb   :  { %2226 = vmatprep.mubr.msk.f32.mxu1 %vm2611_vm2, %v2606_v24  ;;  %2307 = vmatpush3.bf16.msra.mxu1 %v2306_v43 }
 0x3fc   :  { %2308 = vmatprep.subr.bf16.mxu1 %v2610_v47 }
 0x3fd   :  { %2298 = vmatpush3.bf16.msra.mxu0 %v2297_v17 }
 0x3fe   :  { %2299 = vmatprep.subr.bf16.mxu0 %v2610_v47 }
 0x401   :  { %2301 = vmatpush3.bf16.msra.mxu0 %v2300_v20 }
 0x402   :  { %2302 = vmatprep.subr.bf16.mxu0 %v2610_v47  ;;  %v1841_v47 = vld [vmem:[%s3572_s9 + $0x18] sm:$0xff]  ;;  %s2574_s9 = scalar_lea.vmem %s1932_s29, 32 }
 0x403   :  { %v2309_v30 = vpack.c.bf16 %v1841_v47, %v1840_v29  ;;  %p2575_p1 = scmp.ne.s32.totalorder %s1932_s29, %s2574_s9  ;;  %p2580_p3 = scmp.lt.s32.totalorder %s2574_s9, %s2574_s9 }
 0x405   :  { %2304 = vmatpush3.bf16.msra.mxu0 %v2303_v23  ;;  %2310 = vmatpush3.bf16.msra.mxu1 %v2309_v30  ;;  %p2581_p4 = por %p2580_p3, %p2579_p2 }
 0x407   :  { %p2582_p5 = pnand %p2581_p4, %p2575_p1 }
 0x4cb   :  { %v2147_v44 = vpop.f32.mrb[0].mxu0 }
 0x4cc   :  { %v2148_v52 = vpop.f32.mrb[1].mxu0 }
 0x4cd   :  { %v2149_v53 = vadd.f32 %v2148_v52, %v2147_v44  ;;  %v2182_v24 = vpop.f32.mrb[0].mxu1 }
 0x4ce   :  { %v2183_v25 = vpop.f32.mrb[1].mxu1 }
 0x4cf   :  { %v1675_v26 = vadd.f32 %v2149_v53, %v2108_v46  ;;  %v2184_v27 = vadd.f32 %v2183_v25, %v2182_v24 }
 0x4d1   :  { %v1745_v45 = vadd.f32 %v2184_v27, %v1675_v26 }
 0x4d3   :  { %v1748_v28 = vmax.f32 %v1745_v45, 0.0 }
 0x4d5   :  { %2216 = vmatmul.mubr.msk.f32.vlgmr.msra.gmra.mrb[2].mxu0 %vm1204_vm1, %v1748_v28 }
 0x5a8   :  { %v1833_v32 = vpop.f32.mrb[2].mxu0 }
 0x5a9   :  { %v1834_v33 = vadd.f32 %v2109_v31, %v1833_v32  ;;  %v2217_v34 = vpop.f32.mrb[3].mxu0 }
 0x5ab   :  { %v1837_v35 = vmax.f32 %v1834_v33, 0.0 }
 0x5ad   :  { %2227 = vmatmul.mubr.msk.f32.vlgmr.msra.gmra.mrb[2].mxu1 %vm1849_vm3, %v1837_v35 }
 0x680   :  { %v1919_v37 = vpop.f32.mrb[2].mxu1 }
 0x681   :  { %v1920_v38 = vadd.f32 %v2111_v36, %v1919_v37  ;;  %v2228_v39 = vpop.f32.mrb[3].mxu1 }
 0x683   :  { %1924 = vst.msk [vmem:[#allocation10] sm:$0x3] %vm1923_vm4, %v1920_v38 }
 0x684   :  { %2585 = shalt.err (!%p2582_p5)
}
 0x685   :  { %s2586_s4 = scalar_lea.hbm %s3574_s11, 32 }
 0x686   :  { %p2587_p6 = scmp.ne.s32.totalorder %s3574_s11, %s2586_s4  ;;  %p2590_p7 = scmp.lt.u32.totalorder %s2586_s4, %s3574_s11 }
 0x688   :  { %p2592_p8 = pnand %p2590_p7, %p2587_p6 }
 0x68a   :  { %2595 = shalt.err (!%p2592_p8)
}
 0x68b   :  { %1934 = dma.vmem_to_hbm [thread:$0]  %s1932_s29, 32, %s3574_s11, [#allocation11]  }
 0x68c   :  { %2600 = dma.done.wait [#allocation11], 32  }
 0x68d   :  { %2601 = vsyncadd [#allocation11], 4294967264 }
 0x68e   :  { %1938 = vsyncpa [#allocation11], 1 }

</bundles_post_ra>
